<compile_context>
chip_gen: v6e
topology: v6e:2x2x1
jax: 0.10.0
libtpu: 0.0.40
codegen_flags: <defaults>
</compile_context>

<pallas_src>
import jax
import jax.numpy as jnp
from jax.experimental import pallas as pl
from jax.experimental.pallas import tpu as pltpu


def mlp_kernel(inp_ref, state_ref, w1a_ref, w1b_ref, b1_ref,
               w2_ref, b2_ref, w3_ref, b3_ref, o_ref):
    # bf16 operands on the MXU, f32 accumulation, f32 bias/activation epilogues.
    inp = inp_ref[...].astype(jnp.bfloat16)
    st = state_ref[...].astype(jnp.bfloat16)

    # lin1 (split over the concatenated feature axis: x = hstack([inp, state])) + ReLU
    h1 = (jnp.dot(inp, w1a_ref[...], preferred_element_type=jnp.float32)
          + jnp.dot(st, w1b_ref[...], preferred_element_type=jnp.float32)
          + b1_ref[...])
    h1 = jnp.maximum(h1, 0.0).astype(jnp.bfloat16)

    # lin2 + ReLU
    h2 = jnp.dot(h1, w2_ref[...], preferred_element_type=jnp.float32) + b2_ref[...]
    h2 = jnp.maximum(h2, 0.0).astype(jnp.bfloat16)

    # lin4 + sigmoid
    h3 = jnp.dot(h2, w3_ref[...], preferred_element_type=jnp.float32) + b3_ref[...]
    o_ref[...] = jax.nn.sigmoid(h3).astype(o_ref.dtype)


def prepare_params(params, insize):
    """One-time conversion of PyTorch-layout f32 params to kernel layout.

    Do this ONCE per parameter set, not per forward call:
      weights -> [in_features, out_features], bfloat16 (halves HBM bytes, MXU-native)
      biases  -> [1, out_features], float32
    """
    w1t = params["w1"].T.astype(jnp.bfloat16)          # [insize + aux, 1024]
    return {
        "w1a": jnp.asarray(w1t[:insize]),               # [insize, 1024]
        "w1b": jnp.asarray(w1t[insize:]),               # [aux,    1024]
        "b1": params["b1"].reshape(1, -1).astype(jnp.float32),
        "w2": params["w2"].T.astype(jnp.bfloat16),      # [1024, 1024]
        "b2": params["b2"].reshape(1, -1).astype(jnp.float32),
        "w3": params["w3"].T.astype(jnp.bfloat16),      # [1024, insize]
        "b3": params["b3"].reshape(1, -1).astype(jnp.float32),
    }
    # TODO(synk): int8 (v5e/v6e) or fp8 (v7x) weight quantization would cut HBM
    # traffic another 2x on this bandwidth-bound kernel.


def mlp_forward(inp, state, kparams, *, tile_b=256):
    """inp: [B, insize] f32, state: [B, aux] f32, kparams from prepare_params().
    Returns [B, insize] f32."""
    B, insize = inp.shape
    aux = state.shape[1]
    hidden = kparams["w2"].shape[0]

    # Batch tile: 256-row tiles for large batches (pipelined + parallel across TCs
    # on v7x); tiny batches use a single tile padded up to a sublane multiple of 8.
    if B >= tile_b:
        tb = tile_b
    else:
        tb = max(8, ((B + 7) // 8) * 8)
    Bp = pl.cdiv(B, tb) * tb
    if Bp != B:
        pad = Bp - B
        inp = jnp.pad(inp, ((0, pad), (0, 0)))
        state = jnp.pad(state, ((0, pad), (0, 0)))

    def resident(shape):
        # Weights/biases: same block for every grid step -> DMA'd once, VMEM-resident.
        return pl.BlockSpec(shape, lambda i: (0, 0))

    out = pl.pallas_call(
        mlp_kernel,
        out_shape=jax.ShapeDtypeStruct((Bp, insize), jnp.float32),
        grid=(Bp // tb,),
        in_specs=[
            pl.BlockSpec((tb, insize), lambda i: (i, 0)),   # inp tile
            pl.BlockSpec((tb, aux), lambda i: (i, 0)),      # state tile
            resident((insize, hidden)),                     # W1t[:insize]
            resident((aux, hidden)),                        # W1t[insize:]
            resident((1, hidden)),                          # b1
            resident((hidden, hidden)),                     # W2t
            resident((1, hidden)),                          # b2
            resident((hidden, insize)),                     # W3t
            resident((1, insize)),                          # b3
        ],
        out_specs=pl.BlockSpec((tb, insize), lambda i: (i, 0)),
        compiler_params=pltpu.CompilerParams(
            dimension_semantics=("parallel",)),
    )(inp, state, kparams["w1a"], kparams["w1b"], kparams["b1"],
      kparams["w2"], kparams["b2"], kparams["w3"], kparams["b3"])

    return out[:B] if Bp != B else out


def init_params(key, insize, aux_size, hidden=1024):
    """Deterministic init matching the PyTorch module's parameter shapes
    (nn.Linear weight is [out_features, in_features])."""
    ks = jax.random.split(key, 6)

    def linear_init(kw, kb, fan_in, fan_out):
        bound = 1.0 / jnp.sqrt(jnp.float32(fan_in))
        w = jax.random.uniform(kw, (fan_out, fan_in), jnp.float32, -bound, bound)
        b = jax.random.uniform(kb, (fan_out,), jnp.float32, -bound, bound)
        return w, b

    w1, b1 = linear_init(ks[0], ks[1], insize + aux_size, hidden)
    w2, b2 = linear_init(ks[2], ks[3], hidden, hidden)
    w3, b3 = linear_init(ks[4], ks[5], hidden, insize)
    return {"w1": w1, "b1": b1, "w2": w2, "b2": b2, "w3": w3, "b3": b3}


def mlp_reference(inp, state, params):
    """Pure-JAX f32 reference of the PyTorch forward, for correctness checking."""
    x = jnp.concatenate([inp, state], axis=1)
    x = jax.nn.relu(x @ params["w1"].T + params["b1"])
    x = jax.nn.relu(x @ params["w2"].T + params["b2"])
    return jax.nn.sigmoid(x @ params["w3"].T + params["b3"])


if __name__ == "__main__":
    B, insize, aux_size = 8, 32, 16

    key = jax.random.PRNGKey(0)
    k_inp, k_state, k_params = jax.random.split(key, 3)

    inp = jax.random.normal(k_inp, (B, insize), jnp.float32)
    state = jax.random.normal(k_state, (B, aux_size), jnp.float32)
    params = init_params(k_params, insize, aux_size)

    # One-time weight prep (layout + bf16); excluded from the per-call path.
    kparams = jax.tree_util.tree_map(jax.block_until_ready, prepare_params(params, insize))

    out = jax.jit(mlp_forward)(inp, state, kparams)
    out = jax.block_until_ready(out)

    ref = mlp_reference(inp, state, params)
    assert out.shape == (B, insize), out.shape
    # bf16 weights -> looser tolerance than the f32-only version.
    assert jnp.allclose(out, ref, atol=1e-2, rtol=1e-2), float(jnp.max(jnp.abs(out - ref)))

    print("KERNEL_OK")
</pallas_src>

<mosaic_0001>
module attributes {stable_mosaic.version = 11 : i64} {
  func.func @mlp_kernel(%arg0: i32, %arg1: memref<8x32xf32, #tpu.memory_space<vmem>>, %arg2: memref<8x16xf32, #tpu.memory_space<vmem>>, %arg3: memref<32x1024xbf16, #tpu.memory_space<vmem>>, %arg4: memref<16x1024xbf16, #tpu.memory_space<vmem>>, %arg5: memref<1x1024xf32, #tpu.memory_space<vmem>>, %arg6: memref<1024x1024xbf16, #tpu.memory_space<vmem>>, %arg7: memref<1x1024xf32, #tpu.memory_space<vmem>>, %arg8: memref<1024x32xbf16, #tpu.memory_space<vmem>>, %arg9: memref<1x32xf32, #tpu.memory_space<vmem>>, %arg10: memref<8x32xf32, #tpu.memory_space<vmem>>) attributes {dimension_semantics = [#tpu.dimension_semantics<parallel>], iteration_bounds = array<i64: 1>, scalar_prefetch = 0 : i64, scratch_operands = 0 : i64, tpu.core_type = #tpu.core_type<tc>, window_params = [{transform_indices = @transform_0, window_bounds = array<i64: 8, 32>}, {transform_indices = @transform_1, window_bounds = array<i64: 8, 16>}, {pipeline_mode = #tpu.pipeline_mode<synchronous>, transform_indices = @transform_2, window_bounds = array<i64: 32, 1024>}, {pipeline_mode = #tpu.pipeline_mode<synchronous>, transform_indices = @transform_3, window_bounds = array<i64: 16, 1024>}, {pipeline_mode = #tpu.pipeline_mode<synchronous>, transform_indices = @transform_4, window_bounds = array<i64: 1, 1024>}, {pipeline_mode = #tpu.pipeline_mode<synchronous>, transform_indices = @transform_5, window_bounds = array<i64: 1024, 1024>}, {pipeline_mode = #tpu.pipeline_mode<synchronous>, transform_indices = @transform_6, window_bounds = array<i64: 1, 1024>}, {pipeline_mode = #tpu.pipeline_mode<synchronous>, transform_indices = @transform_7, window_bounds = array<i64: 1024, 32>}, {pipeline_mode = #tpu.pipeline_mode<synchronous>, transform_indices = @transform_8, window_bounds = array<i64: 1, 32>}, {transform_indices = @transform_9, window_bounds = array<i64: 8, 32>}]} {
    %c0 = arith.constant 0 : index
    %c0_0 = arith.constant 0 : index
    %0 = vector.load %arg1[%c0, %c0_0] : memref<8x32xf32, #tpu.memory_space<vmem>>, vector<8x32xf32>
    %1 = arith.truncf %0 : vector<8x32xf32> to vector<8x32xbf16>
    %c0_1 = arith.constant 0 : index
    %c0_2 = arith.constant 0 : index
    %2 = vector.load %arg2[%c0_1, %c0_2] : memref<8x16xf32, #tpu.memory_space<vmem>>, vector<8x16xf32>
    %3 = arith.truncf %2 : vector<8x16xf32> to vector<8x16xbf16>
    %c0_3 = arith.constant 0 : index
    %c0_4 = arith.constant 0 : index
    %4 = vector.load %arg3[%c0_3, %c0_4] : memref<32x1024xbf16, #tpu.memory_space<vmem>>, vector<32x1024xbf16>
    %cst = arith.constant dense<0.000000e+00> : vector<8x1024xf32>
    %5 = tpu.matmul %1, %4, %cst {dimension_numbers = #tpu.dot_dimension_numbers<[1], [0], [0], [1], [0, 0, 1, 1], [], []>} : vector<8x32xbf16>, vector<32x1024xbf16>, vector<8x1024xf32> -> vector<8x1024xf32>
    %c0_5 = arith.constant 0 : index
    %c0_6 = arith.constant 0 : index
    %6 = vector.load %arg4[%c0_5, %c0_6] : memref<16x1024xbf16, #tpu.memory_space<vmem>>, vector<16x1024xbf16>
    %cst_7 = arith.constant dense<0.000000e+00> : vector<8x1024xf32>
    %7 = tpu.matmul %3, %6, %cst_7 {dimension_numbers = #tpu.dot_dimension_numbers<[1], [0], [0], [1], [0, 0, 1, 1], [], []>} : vector<8x16xbf16>, vector<16x1024xbf16>, vector<8x1024xf32> -> vector<8x1024xf32>
    %8 = arith.addf %5, %7 : vector<8x1024xf32>
    %c0_8 = arith.constant 0 : index
    %c0_9 = arith.constant 0 : index
    %9 = vector.load %arg5[%c0_8, %c0_9] : memref<1x1024xf32, #tpu.memory_space<vmem>>, vector<1x1024xf32>
    %10 = vector.broadcast %9 : vector<1x1024xf32> to vector<8x1024xf32>
    %11 = arith.addf %8, %10 : vector<8x1024xf32>
    %cst_10 = arith.constant 0.000000e+00 : f32
    %12 = vector.broadcast %cst_10 : f32 to vector<8x1024xf32>
    %13 = arith.maximumf %11, %12 : vector<8x1024xf32>
    %14 = arith.truncf %13 : vector<8x1024xf32> to vector<8x1024xbf16>
    %c0_11 = arith.constant 0 : index
    %c0_12 = arith.constant 0 : index
    %15 = vector.load %arg6[%c0_11, %c0_12] : memref<1024x1024xbf16, #tpu.memory_space<vmem>>, vector<1024x1024xbf16>
    %cst_13 = arith.constant dense<0.000000e+00> : vector<8x1024xf32>
    %16 = tpu.matmul %14, %15, %cst_13 {dimension_numbers = #tpu.dot_dimension_numbers<[1], [0], [0], [1], [0, 0, 1, 1], [], []>} : vector<8x1024xbf16>, vector<1024x1024xbf16>, vector<8x1024xf32> -> vector<8x1024xf32>
    %c0_14 = arith.constant 0 : index
    %c0_15 = arith.constant 0 : index
    %17 = vector.load %arg7[%c0_14, %c0_15] : memref<1x1024xf32, #tpu.memory_space<vmem>>, vector<1x1024xf32>
    %18 = vector.broadcast %17 : vector<1x1024xf32> to vector<8x1024xf32>
    %19 = arith.addf %16, %18 : vector<8x1024xf32>
    %cst_16 = arith.constant 0.000000e+00 : f32
    %20 = vector.broadcast %cst_16 : f32 to vector<8x1024xf32>
    %21 = arith.maximumf %19, %20 : vector<8x1024xf32>
    %22 = arith.truncf %21 : vector<8x1024xf32> to vector<8x1024xbf16>
    %c0_17 = arith.constant 0 : index
    %c0_18 = arith.constant 0 : index
    %23 = vector.load %arg8[%c0_17, %c0_18] : memref<1024x32xbf16, #tpu.memory_space<vmem>>, vector<1024x32xbf16>
    %cst_19 = arith.constant dense<0.000000e+00> : vector<8x32xf32>
    %24 = tpu.matmul %22, %23, %cst_19 {dimension_numbers = #tpu.dot_dimension_numbers<[1], [0], [0], [1], [0, 0, 1, 1], [], []>} : vector<8x1024xbf16>, vector<1024x32xbf16>, vector<8x32xf32> -> vector<8x32xf32>
    %c0_20 = arith.constant 0 : index
    %c0_21 = arith.constant 0 : index
    %25 = vector.load %arg9[%c0_20, %c0_21] : memref<1x32xf32, #tpu.memory_space<vmem>>, vector<1x32xf32>
    %26 = vector.broadcast %25 : vector<1x32xf32> to vector<8x32xf32>
    %27 = arith.addf %24, %26 : vector<8x32xf32>
    %28 = arith.negf %27 : vector<8x32xf32>
    %29 = math.exp %28 : vector<8x32xf32>
    %cst_22 = arith.constant 1.000000e+00 : f32
    %30 = vector.broadcast %cst_22 : f32 to vector<8x32xf32>
    %31 = arith.addf %30, %29 : vector<8x32xf32>
    %32 = arith.divf %30, %31 : vector<8x32xf32>
    %c0_23 = arith.constant 0 : index
    %c0_24 = arith.constant 0 : index
    %33 = vector.load %arg10[%c0_23, %c0_24] : memref<8x32xf32, #tpu.memory_space<vmem>>, vector<8x32xf32>
    tpu.vector_store %arg10[%c0_23, %c0_24], %32 {strides = array<i32>} : memref<8x32xf32, #tpu.memory_space<vmem>>, vector<8x32xf32>,
    return
  }
  func.func @transform_0(%arg0: i32) -> (i32, i32) {
    %c0_i32 = arith.constant 0 : i32
    %c0_i32_0 = arith.constant 0 : i32
    return %arg0, %c0_i32 : i32, i32
  }
  func.func @transform_1(%arg0: i32) -> (i32, i32) {
    %c0_i32 = arith.constant 0 : i32
    %c0_i32_0 = arith.constant 0 : i32
    return %arg0, %c0_i32 : i32, i32
  }
  func.func @transform_2(%arg0: i32) -> (i32, i32) {
    %c0_i32 = arith.constant 0 : i32
    %c0_i32_0 = arith.constant 0 : i32
    %c0_i32_1 = arith.constant 0 : i32
    return %c0_i32, %c0_i32_0 : i32, i32
  }
  func.func @transform_3(%arg0: i32) -> (i32, i32) {
    %c0_i32 = arith.constant 0 : i32
    %c0_i32_0 = arith.constant 0 : i32
    %c0_i32_1 = arith.constant 0 : i32
    return %c0_i32, %c0_i32_0 : i32, i32
  }
  func.func @transform_4(%arg0: i32) -> (i32, i32) {
    %c0_i32 = arith.constant 0 : i32
    %c0_i32_0 = arith.constant 0 : i32
    %c0_i32_1 = arith.constant 0 : i32
    return %c0_i32, %c0_i32_0 : i32, i32
  }
  func.func @transform_5(%arg0: i32) -> (i32, i32) {
    %c0_i32 = arith.constant 0 : i32
    %c0_i32_0 = arith.constant 0 : i32
    %c0_i32_1 = arith.constant 0 : i32
    return %c0_i32, %c0_i32_0 : i32, i32
  }
  func.func @transform_6(%arg0: i32) -> (i32, i32) {
    %c0_i32 = arith.constant 0 : i32
    %c0_i32_0 = arith.constant 0 : i32
    %c0_i32_1 = arith.constant 0 : i32
    return %c0_i32, %c0_i32_0 : i32, i32
  }
  func.func @transform_7(%arg0: i32) -> (i32, i32) {
    %c0_i32 = arith.constant 0 : i32
    %c0_i32_0 = arith.constant 0 : i32
    %c0_i32_1 = arith.constant 0 : i32
    return %c0_i32, %c0_i32_0 : i32, i32
  }
  func.func @transform_8(%arg0: i32) -> (i32, i32) {
    %c0_i32 = arith.constant 0 : i32
    %c0_i32_0 = arith.constant 0 : i32
    %c0_i32_1 = arith.constant 0 : i32
    return %c0_i32, %c0_i32_0 : i32, i32
  }
  func.func @transform_9(%arg0: i32) -> (i32, i32) {
    %c0_i32 = arith.constant 0 : i32
    %c0_i32_0 = arith.constant 0 : i32
    return %arg0, %c0_i32 : i32, i32
  }
}

</mosaic_0001>

<bundles_post_ra>
// kernel: mlp_forward.1
= control target key start
LH: loop header
LB: loop body
LE: loop exit
PB: predicated region body
PF: predicated region fallthrough
CT: control target
= control target key end

     0   :  { %14 = vsyncpa [#allocation3], 0  ;;  %s6618_s0 = inlined_call_operand.hbm [shape: f32[8,32], index: 0, kind: input, shape index: {}]   ;;  %s6619_s1 = inlined_call_operand.hbm [shape: f32[8,16], index: 1, kind: input, shape index: {}]   ;;  %s6620_s2 = inlined_call_operand.hbm [shape: bf16[32,1024], index: 2, kind: input, shape index: {}]   ;;  %s6621_s3 = inlined_call_operand.hbm [shape: bf16[16,1024], index: 3, kind: input, shape index: {}]   ;;  %s6622_s4 = inlined_call_operand.hbm [shape: f32[1,1024], index: 4, kind: input, shape index: {}]   ;;  %s6623_s5 = inlined_call_operand.hbm [shape: bf16[1024,1024], index: 5, kind: input, shape index: {}]   ;;  %s6624_s6 = inlined_call_operand.hbm [shape: f32[1,1024], index: 6, kind: input, shape index: {}]   ;;  %s6625_s7 = inlined_call_operand.vmem [shape: bf16[1024,32], index: 7, kind: input, shape index: {}]   ;;  %s6626_s8 = inlined_call_operand.hbm [shape: f32[1,32], index: 8, kind: input, shape index: {}]   ;;  %s6627_s9 = inlined_call_operand.hbm [shape: f32[8,32], index: 9, kind: output, shape index: {}]  }
   0x1   :  { %15 = vsyncpa [#allocation6], 0 }
   0x2   :  { %16 = vsyncpa [#allocation9], 0 }
   0x3   :  { %17 = vsyncpa [#allocation12], 0 }
   0x4   :  { %18 = vsyncpa [#allocation15], 0 }
   0x5   :  { %19 = vsyncpa [#allocation4], 0  ;;  %s6145_s30 = smov [#allocation5]  }
   0x6   :  { %s36_s10 = sshll.u32 %s6145_s30, 4  ;;  %s37_s10 = int_to_ptr.vmem [resolvable:$true] %s36_s10 }
   0x7   :  { %s5961_s11 = scalar_lea.vmem %s37_s10, 128  ;;  %p5966_p1 = scmp.lt.s32.totalorder %s37_s10, %s37_s10 }
   0x8   :  { %p5962_p0 = scmp.ne.s32.totalorder %s37_s10, %s5961_s11  ;;  %p5967_p2 = scmp.lt.s32.totalorder %s5961_s11, %s5961_s11 }
   0xa   :  { %p5968_p3 = por %p5967_p2, %p5966_p1 }
   0xc   :  { %p5969_p4 = pnand %p5968_p3, %p5962_p0 }
   0xe   :  { %5972 = shalt.err (!%p5969_p4)
}
   0xf   :  { %39 = dma.hbm_to_vmem [thread:$0]  %s6619_s1, 128, %s37_s10, [#allocation6]  }
  0x10   :  { %s6146_s14 = smov [#allocation8]   ;;  %s6147_s16 = smov [#allocation11]  }
  0x11   :  { %s57_s15 = sshll.u32 %s6146_s14, 4  ;;  %s79_s17 = sshll.u32 %s6147_s16, 4  ;;  %s58_s15 = int_to_ptr.vmem [resolvable:$true] %s57_s15  ;;  %s80_s17 = int_to_ptr.vmem [resolvable:$true] %s79_s17 }
  0x12   :  { %s5981_s18 = scalar_lea.vmem %s58_s15, 1024  ;;  %p5986_p6 = scmp.lt.s32.totalorder %s58_s15, %s58_s15 }
  0x13   :  { %p5982_p5 = scmp.ne.s32.totalorder %s58_s15, %s5981_s18  ;;  %p5987_p7 = scmp.lt.s32.totalorder %s5981_s18, %s5981_s18 }
  0x15   :  { %p5988_p8 = por %p5987_p7, %p5986_p6 }
  0x17   :  { %p5989_p9 = pnand %p5988_p8, %p5982_p5 }
  0x19   :  { %5992 = shalt.err (!%p5989_p9)
}
  0x1a   :  { %s6148_s19 = smov 512   ;;  %s6149_s20 = smov 32  }
  0x1b   :  { %63 = dma.hbm_to_vmem [thread:$0]  %s6621_s3, 1024, %s58_s15, [#allocation9], %s6148_s19, %s6148_s19, %s6149_s20  }
  0x1c   :  { %s6001_s1 = scalar_lea.vmem %s80_s17, 65536  ;;  %p6006_p11 = scmp.lt.s32.totalorder %s80_s17, %s80_s17 }
  0x1d   :  { %p6002_p10 = scmp.ne.s32.totalorder %s80_s17, %s6001_s1  ;;  %p6007_p12 = scmp.lt.s32.totalorder %s6001_s1, %s6001_s1 }
  0x1f   :  { %p6008_p13 = por %p6007_p12, %p6006_p11 }
  0x21   :  { %p6009_p0 = pnand %p6008_p13, %p6002_p10 }
  0x23   :  { %6012 = shalt.err (!%p6009_p0)
}
  0x24   :  { %85 = dma.hbm_to_vmem [thread:$0]  %s6623_s5, 65536, %s80_s17, [#allocation12], %s6148_s19, %s6148_s19, %s6149_s20  }
  0x25   :  { %s6150_s25 = smov [#allocation2]   ;;  %s6151_s27 = smov [#allocation7]  }
  0x26   :  { %s26_s26 = sshll.u32 %s6150_s25, 4  ;;  %s45_s3 = sshll.u32 %s6151_s27, 4  ;;  %s27_s26 = int_to_ptr.vmem [resolvable:$true] %s26_s26  ;;  %s46_s3 = int_to_ptr.vmem [resolvable:$true] %s45_s3 }
  0x27   :  { %s6021_s28 = scalar_lea.vmem %s27_s26, 128  ;;  %p6026_p2 = scmp.lt.s32.totalorder %s27_s26, %s27_s26 }
  0x28   :  { %p6022_p1 = scmp.ne.s32.totalorder %s27_s26, %s6021_s28  ;;  %p6027_p3 = scmp.lt.s32.totalorder %s6021_s28, %s6021_s28 }
  0x2a   :  { %p6028_p4 = por %p6027_p3, %p6026_p2 }
  0x2c   :  { %p6029_p5 = pnand %p6028_p4, %p6022_p1 }
  0x2e   :  { %6032 = shalt.err (!%p6029_p5)
}
  0x2f   :  { %29 = dma.hbm_to_vmem [thread:$0]  %s6618_s0, 128, %s27_s26, [#allocation3]  }
  0x30   :  { %s6041_s10 = scalar_lea.vmem %s46_s3, 2048  ;;  %p6046_p7 = scmp.lt.s32.totalorder %s46_s3, %s46_s3 }
  0x31   :  { %p6042_p6 = scmp.ne.s32.totalorder %s46_s3, %s6041_s10  ;;  %p6047_p8 = scmp.lt.s32.totalorder %s6041_s10, %s6041_s10 }
  0x33   :  { %p6048_p9 = por %p6047_p8, %p6046_p7 }
  0x35   :  { %p6049_p10 = pnand %p6048_p9, %p6042_p6 }
  0x37   :  { %6052 = shalt.err (!%p6049_p10)
}
  0x38   :  { %51 = dma.hbm_to_vmem [thread:$0]  %s6620_s2, 2048, %s46_s3, [#allocation6], %s6148_s19, %s6148_s19, %s6149_s20  }
  0x39   :  { %s6152_s12 = smov [#allocation10]   ;;  %s6153_s14 = smov [#allocation13]  }
  0x3a   :  { %s70_s13 = sshll.u32 %s6152_s12, 4  ;;  %s92_s0 = sshll.u32 %s6153_s14, 4  ;;  %s71_s13 = int_to_ptr.vmem [resolvable:$true] %s70_s13  ;;  %s93_s0 = int_to_ptr.vmem [resolvable:$true] %s92_s0 }
  0x3b   :  { %s6061_s15 = scalar_lea.vmem %s71_s13, 128  ;;  %p6066_p12 = scmp.lt.s32.totalorder %s71_s13, %s71_s13 }
  0x3c   :  { %p6062_p11 = scmp.ne.s32.totalorder %s71_s13, %s6061_s15  ;;  %p6067_p13 = scmp.lt.s32.totalorder %s6061_s15, %s6061_s15 }
  0x3e   :  { %p6068_p0 = por %p6067_p13, %p6066_p12 }
  0x40   :  { %p6069_p1 = pnand %p6068_p0, %p6062_p11 }
  0x42   :  { %6072 = shalt.err (!%p6069_p1)
}
  0x43   :  { %73 = dma.hbm_to_vmem [thread:$0]  %s6622_s4, 128, %s71_s13, [#allocation9]  }
  0x44   :  { %s6081_s18 = scalar_lea.vmem %s93_s0, 128  ;;  %p6086_p3 = scmp.lt.s32.totalorder %s93_s0, %s93_s0 }
  0x45   :  { %p6082_p2 = scmp.ne.s32.totalorder %s93_s0, %s6081_s18  ;;  %p6087_p4 = scmp.lt.s32.totalorder %s6081_s18, %s6081_s18 }
  0x47   :  { %p6088_p5 = por %p6087_p4, %p6086_p3 }
  0x49   :  { %p6089_p6 = pnand %p6088_p5, %p6082_p2 }
  0x4b   :  { %6092 = shalt.err (!%p6089_p6)
}
  0x4c   :  { %95 = dma.hbm_to_vmem [thread:$0]  %s6624_s6, 128, %s93_s0, [#allocation12]  }
  0x4d   :  { %s6154_s20 = smov [#allocation14]  }
  0x4e   :  { %s104_s21 = sshll.u32 %s6154_s20, 4  ;;  %s105_s21 = int_to_ptr.vmem [resolvable:$true] %s104_s21 }
  0x4f   :  { %s6101_s22 = scalar_lea.vmem %s105_s21, 16  ;;  %s6105_s1 = scalar_lea.vmem %s105_s21, 32 }
  0x50   :  { %p6102_p7 = scmp.ne.s32.totalorder %s105_s21, %s6101_s22  ;;  %p6106_p8 = scmp.lt.s32.totalorder %s105_s21, %s105_s21 }
  0x51   :  { %p6107_p9 = scmp.lt.s32.totalorder %s6105_s1, %s6101_s22 }
  0x53   :  { %p6108_p10 = por %p6107_p9, %p6106_p8 }
  0x55   :  { %p6109_p11 = pnand %p6108_p10, %p6102_p7 }
  0x57   :  { %6112 = shalt.err (!%p6109_p11)
}
  0x58   :  { %107 = dma.hbm_to_vmem [thread:$0]  %s6626_s8, 16, %s105_s21, [#allocation15]  }
  0x59   :  { %6133 = dma.done.wait [#allocation3], 128  }
  0x5a   :  { %6134 = vsyncadd [#allocation3], 4294967168 }
  0x5b   :  { %6135 = dma.done.wait [#allocation6], 2176  }
  0x5c   :  { %6136 = vsyncadd [#allocation6], 4294965120 }
  0x5d   :  { %6137 = dma.done.wait [#allocation9], 1152  }
  0x5e   :  { %6138 = vsyncadd [#allocation9], 4294966144 }
  0x5f   :  { %6139 = dma.done.wait [#allocation12], 65664  }
  0x60   :  { %6140 = vsyncadd [#allocation12], 4294901632 }
  0x61   :  { %6141 = dma.done.wait [#allocation15], 16  }
  0x62   :  { %6142 = vsyncadd [#allocation15], 4294967280  ;;  %v6155_v0 = vmov 0   ;;  %v153_v1 = vld [vmem:[#allocation8] sm:$0xff]  ;;  %v154_v3 = vld [vmem:[#allocation8 + $0x8] sm:$0xff]  ;;  %vm201_vm0 = vcmask 130048  }
  0x63   :  { %237 = vmatprep.mubr.bf16.mxu0 %v6155_v0  ;;  %278 = vmatprep.mubr.bf16.mxu1 %v6155_v0  ;;  %v157_v2 = vld [vmem:[#allocation8 + $0x20] sm:$0xff]  ;;  %v158_v5 = vld [vmem:[#allocation8 + $0x28] sm:$0xff]  ;;  %v135_v7 = vld [vmem:[#allocation5] sm:$0xff]  ;;  %vm449_vm1 = vcmask 261120  }
  0x64   :  { %v5175_v4 = vcombine.high %v153_v1, %v157_v2  ;;  %v5174_v6 = vcombine.low %v153_v1, %v157_v2  ;;  %v155_v8 = vld [vmem:[#allocation8 + $0x10] sm:$0xff]  ;;  %v5177_v9 = vcombine.high %v154_v3, %v158_v5  ;;  %v5176_v10 = vcombine.low %v154_v3, %v158_v5  ;;  %v156_v12 = vld [vmem:[#allocation8 + $0x18] sm:$0xff]  ;;  %v145_v17 = vld [vmem:[#allocation7 + $0x40] sm:$0xff] }
  0x65   :  { %v159_v11 = vld [vmem:[#allocation8 + $0x30] sm:$0xff]  ;;  %v160_v13 = vld [vmem:[#allocation8 + $0x38] sm:$0xff]  ;;  %v136_v14 = vpack.c.bf16 %v135_v7, %v135_v7  ;;  %v149_v18 = vld [vmem:[#allocation7 + $0x60] sm:$0xff] }
  0x66   :  { %219 = vmatprep.subr.bf16.mxu0 %v5175_v4  ;;  %v5179_v15 = vcombine.high %v155_v8, %v159_v11  ;;  %v5181_v16 = vcombine.high %v156_v12, %v160_v13  ;;  %260 = vmatprep.subr.bf16.mxu1 %v5177_v9  ;;  %v5178_v19 = vcombine.low %v155_v8, %v159_v11  ;;  %v146_v20 = vld [vmem:[#allocation7 + $0x48] sm:$0xff]  ;;  %v137_v25 = vld [vmem:[#allocation7] sm:$0xff]  ;;  %v147_v33 = vld [vmem:[#allocation7 + $0x50] sm:$0xff] }
  0x67   :  { %220 = vmatpush1.bf16.msra.mxu0 %v5174_v6  ;;  %v150_v21 = vld [vmem:[#allocation7 + $0x68] sm:$0xff]  ;;  %261 = vmatpush1.bf16.msra.mxu1 %v5176_v10  ;;  %v5180_v22 = vcombine.low %v156_v12, %v160_v13  ;;  %v5195_v23 = vcombine.high %v145_v17, %v149_v18  ;;  %v141_v26 = vld [vmem:[#allocation7 + $0x20] sm:$0xff]  ;;  %v5194_v29 = vcombine.low %v145_v17, %v149_v18  ;;  %v151_v34 = vld [vmem:[#allocation7 + $0x70] sm:$0xff] }
  0x68   :  { %301 = vmatprep.subr.bf16.mxu0 %v5179_v15  ;;  %342 = vmatprep.subr.bf16.mxu1 %v5181_v16  ;;  %v5197_v24 = vcombine.high %v146_v20, %v150_v21  ;;  %v138_v27 = vld [vmem:[#allocation7 + $0x8] sm:$0xff]  ;;  %v5196_v30 = vcombine.low %v146_v20, %v150_v21  ;;  %v5187_v31 = vcombine.high %v137_v25, %v141_v26  ;;  %v148_v35 = vld [vmem:[#allocation7 + $0x58] sm:$0xff]  ;;  %v133_v38 = vld [vmem:[#allocation2] sm:$0xff] }
  0x69   :  { %v142_v28 = vld [vmem:[#allocation7 + $0x28] sm:$0xff]  ;;  %v152_v36 = vld [vmem:[#allocation7 + $0x78] sm:$0xff]  ;;  %v5186_v37 = vcombine.low %v137_v25, %v141_v26  ;;  %v5199_v40 = vcombine.high %v147_v33, %v151_v34  ;;  %v139_v42 = vld [vmem:[#allocation7 + $0x10] sm:$0xff]  ;;  %v134_v44 = vpack.c.bf16 %v133_v38, %v133_v38  ;;  %v5198_v47 = vcombine.low %v147_v33, %v151_v34 }
  0x6a   :  { %5182 = vmatmul.mubr.msk.bf16.vlgmr.msra.gmra.mxu0 %vm201_vm0, %v136_v14  ;;  %5183 = vmatmul.mubr.msk.bf16.vlgmr.msra.gmra.mxu1 %vm201_vm0, %v136_v14  ;;  %v5189_v32 = vcombine.high %v138_v27, %v142_v28  ;;  %v5188_v39 = vcombine.low %v138_v27, %v142_v28  ;;  %v5201_v41 = vcombine.high %v148_v35, %v152_v36  ;;  %v143_v43 = vld [vmem:[#allocation7 + $0x30] sm:$0xff]  ;;  %v140_v45 = vld [vmem:[#allocation7 + $0x18] sm:$0xff]  ;;  %v739_v48 = vld [vmem:[#allocation11 + $0x1c0] sm:$0xff] }
  0x6b   :  { %302 = vmatpush1.bf16.msra.mxu0 %v5178_v19  ;;  %343 = vmatpush1.bf16.msra.mxu1 %v5180_v22  ;;  %v144_v46 = vld [vmem:[#allocation7 + $0x38] sm:$0xff]  ;;  %v5200_v49 = vcombine.low %v148_v35, %v152_v36  ;;  %v5191_v50 = vcombine.high %v139_v42, %v143_v43  ;;  %v743_v51 = vld [vmem:[#allocation11 + $0x1e0] sm:$0xff]  ;;  %v5190_v55 = vcombine.low %v139_v42, %v143_v43 }
  0x6c   :  { %319 = vmatprep.mubr.bf16.mxu0 %v6155_v0  ;;  %360 = vmatprep.mubr.bf16.mxu1 %v6155_v0  ;;  %v867_v52 = vld [vmem:[#allocation11 + $0x5c0] sm:$0xff]  ;;  %v5193_v54 = vcombine.high %v140_v45, %v144_v46  ;;  %v5192_v58 = vcombine.low %v140_v45, %v144_v46  ;;  %v5263_v59 = vcombine.high %v739_v48, %v743_v51 }
  0x6d   :  { %465 = vmatprep.subr.bf16.mxu0 %v5195_v23  ;;  %506 = vmatprep.subr.bf16.mxu1 %v5197_v24  ;;  %v871_v53 = vld [vmem:[#allocation11 + $0x5e0] sm:$0xff]  ;;  %v5262_v63 = vcombine.low %v739_v48, %v743_v51 }
  0x6e   :  { %v731_v56 = vld [vmem:[#allocation11 + $0x180] sm:$0xff]  ;;  %v5391_v62 = vcombine.high %v867_v52, %v871_v53  ;;  %v5390_v3 = vcombine.low %v867_v52, %v871_v53 }
  0x6f   :  { %v735_v57 = vld [vmem:[#allocation11 + $0x1a0] sm:$0xff] }
  0x70   :  { %v859_v60 = vld [vmem:[#allocation11 + $0x580] sm:$0xff]  ;;  %v5255_v4 = vcombine.high %v731_v56, %v735_v57  ;;  %v5254_v8 = vcombine.low %v731_v56, %v735_v57 }
  0x71   :  { %v863_v61 = vld [vmem:[#allocation11 + $0x5a0] sm:$0xff] }
  0x72   :  { %5184 = vmatmul.mubr.msk.bf16.vlgmr.msra.gmra.mxu0 %vm201_vm0, %v136_v14  ;;  %5185 = vmatmul.mubr.msk.bf16.vlgmr.msra.gmra.mxu1 %vm201_vm0, %v136_v14  ;;  %v723_v1 = vld [vmem:[#allocation11 + $0x140] sm:$0xff]  ;;  %v5383_v7 = vcombine.high %v859_v60, %v863_v61  ;;  %v5382_v10 = vcombine.low %v859_v60, %v863_v61 }
  0x73   :  { %466 = vmatpush1.bf16.msra.mxu0 %v5194_v29  ;;  %507 = vmatpush1.bf16.msra.mxu1 %v5196_v30  ;;  %v727_v2 = vld [vmem:[#allocation11 + $0x160] sm:$0xff] }
  0x74   :  { %467 = vmatprep.subr.bf16.mxu0 %v5187_v31  ;;  %508 = vmatprep.subr.bf16.mxu1 %v5189_v32  ;;  %v851_v5 = vld [vmem:[#allocation11 + $0x540] sm:$0xff]  ;;  %v5247_v11 = vcombine.high %v723_v1, %v727_v2  ;;  %v5246_v15 = vcombine.low %v723_v1, %v727_v2 }
  0x75   :  { %485 = vmatprep.mubr.bf16.mxu0 %v6155_v0  ;;  %526 = vmatprep.mubr.bf16.mxu1 %v6155_v0  ;;  %v855_v6 = vld [vmem:[#allocation11 + $0x560] sm:$0xff] }
  0x76   :  { %v715_v9 = vld [vmem:[#allocation11 + $0x100] sm:$0xff]  ;;  %v5375_v14 = vcombine.high %v851_v5, %v855_v6  ;;  %v5374_v18 = vcombine.low %v851_v5, %v855_v6 }
  0x77   :  { %468 = vmatpush1.bf16.msra.mxu0 %v5186_v37  ;;  %509 = vmatpush1.bf16.msra.mxu1 %v5188_v39  ;;  %v843_v12 = vld [vmem:[#allocation11 + $0x500] sm:$0xff] }
  0x78   :  { %547 = vmatprep.subr.bf16.mxu0 %v5199_v40  ;;  %588 = vmatprep.subr.bf16.mxu1 %v5201_v41  ;;  %v847_v13 = vld [vmem:[#allocation11 + $0x520] sm:$0xff] }
  0x79   :  { %v707_v16 = vld [vmem:[#allocation11 + $0xc0] sm:$0xff]  ;;  %v5367_v22 = vcombine.high %v843_v12, %v847_v13  ;;  %v5366_v26 = vcombine.low %v843_v12, %v847_v13 }
  0x7a   :  { %5202 = vmatmul.mubr.msk.bf16.vlgmr.msra.gmra.mxu0 %vm449_vm1, %v134_v44  ;;  %5203 = vmatmul.mubr.msk.bf16.vlgmr.msra.gmra.mxu1 %vm449_vm1, %v134_v44  ;;  %v711_v17 = vld [vmem:[#allocation11 + $0xe0] sm:$0xff] }
  0x7b   :  { %548 = vmatpush1.bf16.msra.mxu0 %v5198_v47  ;;  %589 = vmatpush1.bf16.msra.mxu1 %v5200_v49  ;;  %v835_v20 = vld [vmem:[#allocation11 + $0x4c0] sm:$0xff]  ;;  %v5231_v27 = vcombine.high %v707_v16, %v711_v17  ;;  %v5230_v31 = vcombine.low %v707_v16, %v711_v17 }
  0x7c   :  { %549 = vmatprep.subr.bf16.mxu0 %v5191_v50  ;;  %590 = vmatprep.subr.bf16.mxu1 %v5193_v54  ;;  %v839_v21 = vld [vmem:[#allocation11 + $0x4e0] sm:$0xff] }
  0x7d   :  { %567 = vmatprep.mubr.bf16.mxu0 %v6155_v0  ;;  %608 = vmatprep.mubr.bf16.mxu1 %v6155_v0  ;;  %v719_v0 = vld [vmem:[#allocation11 + $0x120] sm:$0xff]  ;;  %v5359_v30 = vcombine.high %v835_v20, %v839_v21  ;;  %v5358_v34 = vcombine.low %v835_v20, %v839_v21 }
  0x7e   :  { %v5239_v19 = vcombine.high %v715_v9, %v719_v0  ;;  %v5238_v23 = vcombine.low %v715_v9, %v719_v0  ;;  %v699_v24 = vld [vmem:[#allocation11 + $0x80] sm:$0xff] }
  0x7f   :  { %550 = vmatpush1.bf16.msra.mxu0 %v5190_v55  ;;  %591 = vmatpush1.bf16.msra.mxu1 %v5192_v58  ;;  %v703_v25 = vld [vmem:[#allocation11 + $0xa0] sm:$0xff] }
  0x80   :  { %3797 = vmatprep.subr.bf16.mxu0 %v5263_v59  ;;  %3838 = vmatprep.subr.bf16.mxu1 %v5391_v62  ;;  %v827_v28 = vld [vmem:[#allocation11 + $0x480] sm:$0xff]  ;;  %v5223_v35 = vcombine.high %v699_v24, %v703_v25  ;;  %v5222_v39 = vcombine.low %v699_v24, %v703_v25 }
  0x81   :  { %v831_v29 = vld [vmem:[#allocation11 + $0x4a0] sm:$0xff] }
  0x82   :  { %5204 = vmatmul.mubr.msk.bf16.vlgmr.msra.gmra.mxu0 %vm449_vm1, %v134_v44  ;;  %5205 = vmatmul.mubr.msk.bf16.vlgmr.msra.gmra.mxu1 %vm449_vm1, %v134_v44  ;;  %v691_v32 = vld [vmem:[#allocation11 + $0x40] sm:$0xff]  ;;  %v5351_v38 = vcombine.high %v827_v28, %v831_v29  ;;  %v5350_v42 = vcombine.low %v827_v28, %v831_v29 }
  0x83   :  { %3798 = vmatpush1.bf16.msra.mxu0 %v5262_v63  ;;  %3839 = vmatpush1.bf16.msra.mxu1 %v5390_v3  ;;  %v695_v33 = vld [vmem:[#allocation11 + $0x60] sm:$0xff] }
  0x84   :  { %3799 = vmatprep.subr.bf16.mxu0 %v5255_v4  ;;  %3840 = vmatprep.subr.bf16.mxu1 %v5383_v7  ;;  %v819_v36 = vld [vmem:[#allocation11 + $0x440] sm:$0xff]  ;;  %v5215_v43 = vcombine.high %v691_v32, %v695_v33  ;;  %v5214_v47 = vcombine.low %v691_v32, %v695_v33 }
  0x85   :  { %v823_v37 = vld [vmem:[#allocation11 + $0x460] sm:$0xff] }
  0x86   :  { %v683_v40 = vld [vmem:[#allocation11] sm:$0xff]  ;;  %v5343_v46 = vcombine.high %v819_v36, %v823_v37  ;;  %v5342_v50 = vcombine.low %v819_v36, %v823_v37 }
  0x87   :  { %3800 = vmatpush1.bf16.msra.mxu0 %v5254_v8  ;;  %3841 = vmatpush1.bf16.msra.mxu1 %v5382_v10  ;;  %v687_v41 = vld [vmem:[#allocation11 + $0x20] sm:$0xff] }
  0x88   :  { %3801 = vmatprep.subr.bf16.mxu0 %v5247_v11  ;;  %3842 = vmatprep.subr.bf16.mxu1 %v5375_v14  ;;  %v811_v44 = vld [vmem:[#allocation11 + $0x400] sm:$0xff]  ;;  %v5207_v51 = vcombine.high %v683_v40, %v687_v41  ;;  %v5206_v55 = vcombine.low %v683_v40, %v687_v41 }
  0x89   :  { %v815_v45 = vld [vmem:[#allocation11 + $0x420] sm:$0xff] }
  0x8a   :  { %v803_v48 = vld [vmem:[#allocation11 + $0x3c0] sm:$0xff]  ;;  %v5335_v54 = vcombine.high %v811_v44, %v815_v45  ;;  %v5334_v58 = vcombine.low %v811_v44, %v815_v45 }
  0x8b   :  { %3802 = vmatpush1.bf16.msra.mxu0 %v5246_v15  ;;  %3843 = vmatpush1.bf16.msra.mxu1 %v5374_v18  ;;  %v807_v49 = vld [vmem:[#allocation11 + $0x3e0] sm:$0xff] }
  0x8c   :  { %3803 = vmatprep.subr.bf16.mxu0 %v5239_v19  ;;  %3844 = vmatprep.subr.bf16.mxu1 %v5367_v22  ;;  %v931_v52 = vld [vmem:[#allocation11 + $0x7c0] sm:$0xff]  ;;  %v5327_v59 = vcombine.high %v803_v48, %v807_v49  ;;  %v5326_v63 = vcombine.low %v803_v48, %v807_v49 }
  0x8d   :  { %v935_v53 = vld [vmem:[#allocation11 + $0x7e0] sm:$0xff] }
  0x8e   :  { %v795_v56 = vld [vmem:[#allocation11 + $0x380] sm:$0xff]  ;;  %v5455_v62 = vcombine.high %v931_v52, %v935_v53  ;;  %v5454_v1 = vcombine.low %v931_v52, %v935_v53 }
  0x8f   :  { %3804 = vmatpush1.bf16.msra.mxu0 %v5238_v23  ;;  %3845 = vmatpush1.bf16.msra.mxu1 %v5366_v26  ;;  %v799_v57 = vld [vmem:[#allocation11 + $0x3a0] sm:$0xff] }
  0x90   :  { %3805 = vmatprep.subr.bf16.mxu0 %v5231_v27  ;;  %3846 = vmatprep.subr.bf16.mxu1 %v5359_v30  ;;  %v923_v60 = vld [vmem:[#allocation11 + $0x780] sm:$0xff]  ;;  %v5319_v2 = vcombine.high %v795_v56, %v799_v57  ;;  %v5318_v4 = vcombine.low %v795_v56, %v799_v57 }
  0x91   :  { %v927_v61 = vld [vmem:[#allocation11 + $0x7a0] sm:$0xff] }
  0x92   :  { %v5447_v3 = vcombine.high %v923_v60, %v927_v61  ;;  %v5446_v5 = vcombine.low %v923_v60, %v927_v61  ;;  %v787_v6 = vld [vmem:[#allocation11 + $0x340] sm:$0xff] }
  0x93   :  { %3806 = vmatpush1.bf16.msra.mxu0 %v5230_v31  ;;  %3847 = vmatpush1.bf16.msra.mxu1 %v5358_v34  ;;  %v791_v7 = vld [vmem:[#allocation11 + $0x360] sm:$0xff] }
  0x94   :  { %3807 = vmatprep.subr.bf16.mxu0 %v5223_v35  ;;  %3848 = vmatprep.subr.bf16.mxu1 %v5351_v38  ;;  %v915_v8 = vld [vmem:[#allocation11 + $0x740] sm:$0xff]  ;;  %v5311_v9 = vcombine.high %v787_v6, %v791_v7  ;;  %v5310_v10 = vcombine.low %v787_v6, %v791_v7 }
  0x95   :  { %v919_v0 = vld [vmem:[#allocation11 + $0x760] sm:$0xff] }
  0x96   :  { %v5438_v11 = vcombine.low %v915_v8, %v919_v0  ;;  %v5439_v12 = vcombine.high %v915_v8, %v919_v0  ;;  %v779_v13 = vld [vmem:[#allocation11 + $0x300] sm:$0xff] }
  0x97   :  { %3808 = vmatpush1.bf16.msra.mxu0 %v5222_v39  ;;  %3849 = vmatpush1.bf16.msra.mxu1 %v5350_v42  ;;  %v783_v14 = vld [vmem:[#allocation11 + $0x320] sm:$0xff] }
  0x98   :  { %3809 = vmatprep.subr.bf16.mxu0 %v5215_v43  ;;  %3850 = vmatprep.subr.bf16.mxu1 %v5343_v46  ;;  %v907_v15 = vld [vmem:[#allocation11 + $0x700] sm:$0xff]  ;;  %v5303_v16 = vcombine.high %v779_v13, %v783_v14  ;;  %v5302_v18 = vcombine.low %v779_v13, %v783_v14  ;;  %v617_v13 = vld [vmem:[#allocation10] sm:$0xff] }
  0x99   :  { %v911_v17 = vld [vmem:[#allocation11 + $0x720] sm:$0xff] }
  0x9a   :  { %v5430_v19 = vcombine.low %v907_v15, %v911_v17  ;;  %v5431_v20 = vcombine.high %v907_v15, %v911_v17  ;;  %v771_v21 = vld [vmem:[#allocation11 + $0x2c0] sm:$0xff] }
  0x9b   :  { %3810 = vmatpush1.bf16.msra.mxu0 %v5214_v47  ;;  %3851 = vmatpush1.bf16.msra.mxu1 %v5342_v50  ;;  %v775_v22 = vld [vmem:[#allocation11 + $0x2e0] sm:$0xff] }
  0x9c   :  { %3811 = vmatprep.subr.bf16.mxu0 %v5207_v51  ;;  %3852 = vmatprep.subr.bf16.mxu1 %v5335_v54  ;;  %v899_v23 = vld [vmem:[#allocation11 + $0x6c0] sm:$0xff]  ;;  %v5295_v24 = vcombine.high %v771_v21, %v775_v22  ;;  %v5294_v26 = vcombine.low %v771_v21, %v775_v22 }
  0x9d   :  { %v903_v25 = vld [vmem:[#allocation11 + $0x6e0] sm:$0xff] }
  0x9e   :  { %v5422_v27 = vcombine.low %v899_v23, %v903_v25  ;;  %v5423_v28 = vcombine.high %v899_v23, %v903_v25  ;;  %v763_v29 = vld [vmem:[#allocation11 + $0x280] sm:$0xff] }
  0x9f   :  { %3812 = vmatpush1.bf16.msra.mxu0 %v5206_v55  ;;  %3853 = vmatpush1.bf16.msra.mxu1 %v5334_v58  ;;  %v767_v30 = vld [vmem:[#allocation11 + $0x2a0] sm:$0xff] }
  0xa0   :  { %3813 = vmatprep.subr.bf16.mxu0 %v5327_v59  ;;  %3854 = vmatprep.subr.bf16.mxu1 %v5455_v62  ;;  %v891_v31 = vld [vmem:[#allocation11 + $0x680] sm:$0xff]  ;;  %v5287_v32 = vcombine.high %v763_v29, %v767_v30  ;;  %v5286_v34 = vcombine.low %v763_v29, %v767_v30 }
  0xa1   :  { %v895_v33 = vld [vmem:[#allocation11 + $0x6a0] sm:$0xff] }
  0xa2   :  { %v5414_v35 = vcombine.low %v891_v31, %v895_v33  ;;  %v5415_v36 = vcombine.high %v891_v31, %v895_v33  ;;  %v755_v37 = vld [vmem:[#allocation11 + $0x240] sm:$0xff] }
  0xa3   :  { %3814 = vmatpush2.bf16.msra.mxu0 %v5326_v63  ;;  %3855 = vmatpush2.bf16.msra.mxu1 %v5454_v1  ;;  %v759_v38 = vld [vmem:[#allocation11 + $0x260] sm:$0xff] }
  0xa4   :  { %3815 = vmatprep.subr.bf16.mxu0 %v5319_v2  ;;  %3856 = vmatprep.subr.bf16.mxu1 %v5447_v3  ;;  %v883_v39 = vld [vmem:[#allocation11 + $0x640] sm:$0xff]  ;;  %v5278_v41 = vcombine.low %v755_v37, %v759_v38  ;;  %v5279_v42 = vcombine.high %v755_v37, %v759_v38  ;;  %v619_v2 = vlaneseq }
  0xa5   :  { %v887_v40 = vld [vmem:[#allocation11 + $0x660] sm:$0xff] }
  0xa6   :  { %v5406_v43 = vcombine.low %v883_v39, %v887_v40  ;;  %v5407_v44 = vcombine.high %v883_v39, %v887_v40  ;;  %v747_v45 = vld [vmem:[#allocation11 + $0x200] sm:$0xff]  ;;  %v6272_v7 = vshrl.u32 %v619_v2, 7 }
  0xa7   :  { %3816 = vmatpush2.bf16.msra.mxu0 %v5318_v4  ;;  %3857 = vmatpush2.bf16.msra.mxu1 %v5446_v5  ;;  %v751_v46 = vld [vmem:[#allocation11 + $0x220] sm:$0xff] }
  0xa8   :  { %3817 = vmatprep.subr.bf16.mxu0 %v5311_v9  ;;  %3858 = vmatprep.subr.bf16.mxu1 %v5439_v12  ;;  %v875_v47 = vld [vmem:[#allocation11 + $0x600] sm:$0xff]  ;;  %v5271_v48 = vcombine.high %v747_v45, %v751_v46  ;;  %v5270_v50 = vcombine.low %v747_v45, %v751_v46  ;;  %v629_v14 = vsub.s32 2, %v6272_v7  ;;  %v641_v39 = vsub.s32 5, %v6272_v7 }
  0xa9   :  { %v879_v49 = vld [vmem:[#allocation11 + $0x620] sm:$0xff]  ;;  %v649_v40 = vsub.s32 7, %v6272_v7 }
  0xaa   :  { %v5398_v51 = vcombine.low %v875_v47, %v879_v49  ;;  %v5399_v52 = vcombine.high %v875_v47, %v879_v49  ;;  %v6256_v53 = vld [vmem:[#allocation11 + $0x9c0] sm:$0xff]  ;;  %v630_v22 = vrot.slane %v617_v13, %v629_v14 }
  0xab   :  { %3818 = vmatpush2.bf16.msra.mxu0 %v5310_v10  ;;  %3859 = vmatpush2.bf16.msra.mxu1 %v5438_v11  ;;  %v6258_v54 = vld [vmem:[#allocation11 + $0x9e0] sm:$0xff]  ;;  %v621_v11 = vsub.s32 0, %v6272_v7  ;;  %v650_v2 = vrot.slane %v617_v13, %v649_v40 }
  0xac   :  { %3819 = vmatprep.subr.bf16.mxu0 %v5303_v16  ;;  %3860 = vmatprep.subr.bf16.mxu1 %v5431_v20  ;;  %v6260_v55 = vld [vmem:[#allocation11 + $0xdc0] sm:$0xff]  ;;  %v5518_v57 = vcombine.low %v6256_v53, %v6258_v54  ;;  %v5519_v58 = vcombine.high %v6256_v53, %v6258_v54  ;;  %v625_v16 = vsub.s32 1, %v6272_v7 }
  0xad   :  { %v6262_v56 = vld [vmem:[#allocation11 + $0xde0] sm:$0xff]  ;;  %v622_v20 = vrot.slane %v617_v13, %v621_v11 }
  0xae   :  { %v5646_v59 = vcombine.low %v6260_v55, %v6262_v56  ;;  %v5647_v60 = vcombine.high %v6260_v55, %v6262_v56  ;;  %v626_v25 = vrot.slane %v617_v13, %v625_v16  ;;  %v991_v49 = vld [vmem:[#allocation11 + $0x9a0] sm:$0xff] }
  0xaf   :  { %3820 = vmatpush2.bf16.msra.mxu0 %v5302_v18  ;;  %3861 = vmatpush2.bf16.msra.mxu1 %v5430_v19  ;;  %v633_v18 = vsub.s32 3, %v6272_v7  ;;  %v1099_v53 = vld [vmem:[#allocation11 + $0xd00] sm:$0xff] }
  0xb0   :  { %3821 = vmatprep.subr.bf16.mxu0 %v5295_v24  ;;  %3862 = vmatprep.subr.bf16.mxu1 %v5423_v28  ;;  %v1103_v54 = vld [vmem:[#allocation11 + $0xd20] sm:$0xff] }
  0xb1   :  { %v634_v28 = vrot.slane %v617_v13, %v633_v18 }
  0xb3   :  { %3822 = vmatpush2.bf16.msra.mxu0 %v5294_v26  ;;  %3863 = vmatpush2.bf16.msra.mxu1 %v5422_v27 }
  0xb4   :  { %3823 = vmatprep.subr.bf16.mxu0 %v5287_v32  ;;  %3864 = vmatprep.subr.bf16.mxu1 %v5415_v36  ;;  %v637_v32 = vsub.s32 4, %v6272_v7  ;;  %v645_v36 = vsub.s32 6, %v6272_v7 }
  0xb6   :  { %v638_v47 = vrot.slane %v617_v13, %v637_v32 }
  0xb7   :  { %3824 = vmatpush2.bf16.msra.mxu0 %v5286_v34  ;;  %3865 = vmatpush2.bf16.msra.mxu1 %v5414_v35 }
  0xb8   :  { %3825 = vmatprep.subr.bf16.mxu0 %v5279_v42  ;;  %3866 = vmatprep.subr.bf16.mxu1 %v5407_v44 }
  0xbb   :  { %3826 = vmatpush2.bf16.msra.mxu0 %v5278_v41  ;;  %3867 = vmatpush2.bf16.msra.mxu1 %v5406_v43 }
  0xbc   :  { %3827 = vmatprep.subr.bf16.mxu0 %v5271_v48  ;;  %3868 = vmatprep.subr.bf16.mxu1 %v5399_v52  ;;  %v987_v48 = vld [vmem:[#allocation11 + $0x980] sm:$0xff]  ;;  %v646_v52 = vrot.slane %v617_v13, %v645_v36 }
  0xbf   :  { %3828 = vmatpush2.bf16.msra.mxu0 %v5270_v50  ;;  %3869 = vmatpush2.bf16.msra.mxu1 %v5398_v51 }
  0xc0   :  { %3879 = vmatprep.subr.bf16.mxu0 %v5519_v58  ;;  %3920 = vmatprep.subr.bf16.mxu1 %v5647_v60  ;;  %v1115_v58 = vld [vmem:[#allocation11 + $0xd80] sm:$0xff] }
  0xc1   :  { %v1119_v60 = vld [vmem:[#allocation11 + $0xda0] sm:$0xff] }
 0x12a   :  { %v239_v61 = vpop.f32.mrf.mxu0  ;;  %v280_v62 = vpop.f32.mrf.mxu1 }
 0x12c   :  { %v241_v63 = vpop.f32.mrf.mxu0  ;;  %v282_v1 = vpop.f32.mrf.mxu1 }
 0x12e   :  { %v243_v3 = vpop.f32.mrf.mxu0  ;;  %v284_v4 = vpop.f32.mrf.mxu1 }
 0x130   :  { %v244_v5 = vpop.f32.mrf.mxu0  ;;  %v285_v6 = vpop.f32.mrf.mxu1 }
 0x132   :  { %v321_v8 = vpop.f32.mrf.mxu0  ;;  %v362_v9 = vpop.f32.mrf.mxu1 }
 0x134   :  { %v323_v0 = vpop.f32.mrf.mxu0  ;;  %v6274_v10 = vpop.f32.mrf.mxu1 }
 0x136   :  { %v325_v12 = vpop.f32.mrf.mxu0  ;;  %v366_v15 = vpop.f32.mrf.mxu1 }
 0x137   :  { %v5511_v12 = vcombine.high %v987_v48, %v991_v49 }
 0x138   :  { %v326_v17 = vpop.f32.mrf.mxu0  ;;  %v367_v19 = vpop.f32.mrf.mxu1 }
 0x13a   :  { %v487_v21 = vpop.f32.mrf.mxu0  ;;  %v528_v24 = vpop.f32.mrf.mxu1 }
 0x13b   :  { %v488_v23 = vadd.f32 %v487_v21, %v239_v61  ;;  %v529_v26 = vadd.f32 %v528_v24, %v280_v62  ;;  %v979_v21 = vld [vmem:[#allocation11 + $0x940] sm:$0xff] }
 0x13c   :  { %v489_v27 = vpop.f32.mrf.mxu0  ;;  %v530_v31 = vpop.f32.mrf.mxu1  ;;  %v1111_v24 = vld [vmem:[#allocation11 + $0xd60] sm:$0xff] }
 0x13d   :  { %v659_v29 = vadd.f32 %v622_v20, %v488_v23  ;;  %v490_v30 = vadd.f32 %v489_v27, %v241_v63  ;;  %v661_v33 = vadd.f32 %v630_v22, %v529_v26  ;;  %v531_v34 = vadd.f32 %v530_v31, %v282_v1  ;;  %v983_v22 = vld [vmem:[#allocation11 + $0x960] sm:$0xff] }
 0x13e   :  { %v491_v35 = vpop.f32.mrf.mxu0  ;;  %v532_v38 = vpop.f32.mrf.mxu1  ;;  %v642_v1 = vrot.slane %v617_v13, %v641_v39  ;;  %v5639_v20 = vcombine.high %v1115_v58, %v1119_v60 }
 0x13f   :  { %v660_v37 = vadd.f32 %v626_v25, %v490_v30  ;;  %v667_v41 = vmax.f32 %v659_v29, 0.0  ;;  %v662_v42 = vadd.f32 %v634_v28, %v531_v34  ;;  %v669_v44 = vmax.f32 %v661_v33, 0.0  ;;  %v971_v34 = vld [vmem:[#allocation11 + $0x900] sm:$0xff] }
 0x140   :  { %v492_v43 = vpop.f32.mrf.mxu0  ;;  %v533_v46 = vpop.f32.mrf.mxu1  ;;  %v5503_v29 = vcombine.high %v979_v21, %v983_v22  ;;  %v975_v35 = vld [vmem:[#allocation11 + $0x920] sm:$0xff] }
 0x141   :  { %v668_v45 = vmax.f32 %v660_v37, 0.0  ;;  %v670_v50 = vmax.f32 %v662_v42, 0.0  ;;  %v6302_v3 = vpack.c.bf16 %v667_v41, %v667_v41  ;;  %v6306_v15 = vpack.c.bf16 %v669_v44, %v669_v44  ;;  %v963_v43 = vld [vmem:[#allocation11 + $0x8c0] sm:$0xff] }
 0x142   :  { %v569_v51 = vpop.f32.mrf.mxu0  ;;  %v610_v63 = vpop.f32.mrf.mxu1  ;;  %v5502_v41 = vcombine.low %v979_v21, %v983_v22  ;;  %v5495_v56 = vcombine.high %v971_v34, %v975_v35  ;;  %v967_v44 = vld [vmem:[#allocation11 + $0x8e0] sm:$0xff] }
 0x143   :  { %v6296_v61 = vpack.c.bf16 %v668_v45, %v668_v45  ;;  %v570_v62 = vadd.f32 %v569_v51, %v321_v8  ;;  %v6304_v4 = vpack.c.bf16 %v670_v50, %v670_v50  ;;  %v611_v5 = vadd.f32 %v610_v63, %v362_v9  ;;  %v1107_v9 = vld [vmem:[#allocation11 + $0xd40] sm:$0xff] }
 0x144   :  { %v571_v6 = vpop.f32.mrf.mxu0  ;;  %v612_v8 = vpop.f32.mrf.mxu1  ;;  %v5631_v33 = vcombine.high %v1107_v9, %v1111_v24  ;;  %v5630_v55 = vcombine.low %v1107_v9, %v1111_v24  ;;  %v1091_v45 = vld [vmem:[#allocation11 + $0xcc0] sm:$0xff] }
 0x145   :  { %v6308_v17 = vadd.f32 %v638_v47, %v570_v62  ;;  %v572_v19 = vadd.f32 %v571_v6, %v323_v0  ;;  %3829 = vmatprep.mubr.bf16.mxu0 %v6296_v61  ;;  %v6311_v23 = vadd.f32 %v646_v52, %v611_v5  ;;  %v613_v13 = vadd.f32 %v612_v8, %v6274_v10  ;;  %v1095_v46 = vld [vmem:[#allocation11 + $0xce0] sm:$0xff] }
 0x146   :  { %3870 = vmatprep.mubr.bf16.mxu1 %v6304_v4  ;;  %3830 = vmatmul.mubr.bf16.vlgmr.msra.gmra.mxu0 %v6302_v3  ;;  %v573_v25 = vpop.f32.mrf.mxu0  ;;  %v5510_v0 = vcombine.low %v987_v48, %v991_v49  ;;  %v614_v27 = vpop.f32.mrf.mxu1  ;;  %v5638_v10 = vcombine.low %v1115_v58, %v1119_v60  ;;  %v5494_v47 = vcombine.low %v971_v34, %v975_v35  ;;  %v955_v51 = vld [vmem:[#allocation11 + $0x880] sm:$0xff] }
 0x147   :  { %v664_v26 = vadd.f32 %v642_v1, %v572_v19  ;;  %3871 = vmatmul.mubr.bf16.vlgmr.msra.gmra.mxu1 %v6306_v15  ;;  %3880 = vmatpush1.bf16.msra.mxu0 %v5518_v57  ;;  %v666_v28 = vadd.f32 %v650_v2, %v613_v13  ;;  %v5622_v48 = vcombine.low %v1099_v53, %v1103_v54  ;;  %v959_v52 = vld [vmem:[#allocation11 + $0x8a0] sm:$0xff] }
 0x148   :  { %3921 = vmatpush1.bf16.msra.mxu1 %v5646_v59  ;;  %3881 = vmatprep.subr.bf16.mxu0 %v5511_v12  ;;  %v574_v30 = vpop.f32.mrf.mxu0  ;;  %v615_v37 = vpop.f32.mrf.mxu1  ;;  %v5623_v59 = vcombine.high %v1099_v53, %v1103_v54  ;;  %v5487_v49 = vcombine.high %v963_v43, %v967_v44  ;;  %v5615_v50 = vcombine.high %v1091_v45, %v1095_v46  ;;  %v1083_v58 = vld [vmem:[#allocation11 + $0xc80] sm:$0xff] }
 0x149   :  { %v672_v31 = vmax.f32 %v664_v26, 0.0  ;;  %3922 = vmatprep.subr.bf16.mxu1 %v5639_v20  ;;  %v674_v38 = vmax.f32 %v666_v28, 0.0  ;;  %v1087_v60 = vld [vmem:[#allocation11 + $0xca0] sm:$0xff]  ;;  %v5486_v62 = vcombine.low %v963_v43, %v967_v44  ;;  %v5614_v63 = vcombine.low %v1091_v45, %v1095_v46 }
 0x14a   :  { %v5479_v1 = vcombine.high %v955_v51, %v959_v52  ;;  %v5607_v2 = vcombine.high %v1083_v58, %v1087_v60  ;;  %v947_v5 = vld [vmem:[#allocation11 + $0x840] sm:$0xff]  ;;  %v5478_v8 = vcombine.low %v955_v51, %v959_v52  ;;  %v5606_v20 = vcombine.low %v1083_v58, %v1087_v60 }
 0x14b   :  { %v6323_v57 = vpack.c.bf16 %v672_v31, %v672_v31  ;;  %3882 = vmatpush1.bf16.msra.mxu0 %v5510_v0  ;;  %v6325_v42 = vpack.c.bf16 %v674_v38, %v674_v38  ;;  %v951_v6 = vld [vmem:[#allocation11 + $0x860] sm:$0xff] }
 0x14c   :  { %3923 = vmatpush1.bf16.msra.mxu1 %v5638_v10  ;;  %3883 = vmatprep.subr.bf16.mxu0 %v5503_v29  ;;  %v1075_v12 = vld [vmem:[#allocation11 + $0xc40] sm:$0xff]  ;;  %v5471_v21 = vcombine.high %v947_v5, %v951_v6  ;;  %v5470_v26 = vcombine.low %v947_v5, %v951_v6 }
 0x14d   :  { %3911 = vmatprep.mubr.bf16.mxu0 %v6323_v57  ;;  %3924 = vmatprep.subr.bf16.mxu1 %v5631_v33  ;;  %v1079_v19 = vld [vmem:[#allocation11 + $0xc60] sm:$0xff] }
 0x14e   :  { %3952 = vmatprep.mubr.bf16.mxu1 %v6325_v42  ;;  %v5599_v22 = vcombine.high %v1075_v12, %v1079_v19  ;;  %v939_v13 = vld [vmem:[#allocation11 + $0x800] sm:$0xff]  ;;  %v5598_v0 = vcombine.low %v1075_v12, %v1079_v19 }
 0x14f   :  { %3884 = vmatpush1.bf16.msra.mxu0 %v5502_v41  ;;  %v943_v9 = vld [vmem:[#allocation11 + $0x820] sm:$0xff] }
 0x150   :  { %3925 = vmatpush1.bf16.msra.mxu1 %v5630_v55  ;;  %3885 = vmatprep.subr.bf16.mxu0 %v5495_v56  ;;  %v1067_v24 = vld [vmem:[#allocation11 + $0xc00] sm:$0xff]  ;;  %v5463_v27 = vcombine.high %v939_v13, %v943_v9  ;;  %v5462_v33 = vcombine.low %v939_v13, %v943_v9 }
 0x151   :  { %3926 = vmatprep.subr.bf16.mxu1 %v5623_v59  ;;  %v1071_v25 = vld [vmem:[#allocation11 + $0xc20] sm:$0xff] }
 0x152   :  { %v5591_v28 = vcombine.high %v1067_v24, %v1071_v25  ;;  %v1059_v10 = vld [vmem:[#allocation11 + $0xbc0] sm:$0xff]  ;;  %v5590_v34 = vcombine.low %v1067_v24, %v1071_v25 }
 0x153   :  { %3886 = vmatpush1.bf16.msra.mxu0 %v5494_v47  ;;  %v1063_v29 = vld [vmem:[#allocation11 + $0xbe0] sm:$0xff] }
 0x154   :  { %3927 = vmatpush1.bf16.msra.mxu1 %v5622_v48  ;;  %3887 = vmatprep.subr.bf16.mxu0 %v5487_v49  ;;  %v1187_v30 = vld [vmem:[#allocation11 + $0xfc0] sm:$0xff]  ;;  %v5583_v35 = vcombine.high %v1059_v10, %v1063_v29  ;;  %v5582_v55 = vcombine.low %v1059_v10, %v1063_v29 }
 0x155   :  { %3928 = vmatprep.subr.bf16.mxu1 %v5615_v50  ;;  %v1191_v31 = vld [vmem:[#allocation11 + $0xfe0] sm:$0xff] }
 0x156   :  { %v5711_v37 = vcombine.high %v1187_v30, %v1191_v31  ;;  %v1051_v38 = vld [vmem:[#allocation11 + $0xb80] sm:$0xff]  ;;  %v5710_v56 = vcombine.low %v1187_v30, %v1191_v31 }
 0x157   :  { %3888 = vmatpush1.bf16.msra.mxu0 %v5486_v62  ;;  %v1055_v53 = vld [vmem:[#allocation11 + $0xba0] sm:$0xff] }
 0x158   :  { %3929 = vmatpush1.bf16.msra.mxu1 %v5614_v63  ;;  %3889 = vmatprep.subr.bf16.mxu0 %v5479_v1  ;;  %v1179_v54 = vld [vmem:[#allocation11 + $0xf80] sm:$0xff]  ;;  %v5575_v59 = vcombine.high %v1051_v38, %v1055_v53  ;;  %v5574_v48 = vcombine.low %v1051_v38, %v1055_v53 }
 0x159   :  { %3930 = vmatprep.subr.bf16.mxu1 %v5607_v2  ;;  %v1183_v41 = vld [vmem:[#allocation11 + $0xfa0] sm:$0xff] }
 0x15a   :  { %v5703_v43 = vcombine.high %v1179_v54, %v1183_v41  ;;  %v1043_v44 = vld [vmem:[#allocation11 + $0xb40] sm:$0xff]  ;;  %v5702_v49 = vcombine.low %v1179_v54, %v1183_v41 }
 0x15b   :  { %3890 = vmatpush1.bf16.msra.mxu0 %v5478_v8  ;;  %v1047_v45 = vld [vmem:[#allocation11 + $0xb60] sm:$0xff] }
 0x15c   :  { %3931 = vmatpush1.bf16.msra.mxu1 %v5606_v20  ;;  %3891 = vmatprep.subr.bf16.mxu0 %v5471_v21  ;;  %v1171_v46 = vld [vmem:[#allocation11 + $0xf40] sm:$0xff]  ;;  %v5567_v50 = vcombine.high %v1043_v44, %v1047_v45  ;;  %v5566_v63 = vcombine.low %v1043_v44, %v1047_v45  ;;  %v740_v45 = vld [vmem:[#allocation11 + $0x1c8] sm:$0xff] }
 0x15d   :  { %3932 = vmatprep.subr.bf16.mxu1 %v5599_v22  ;;  %v1175_v47 = vld [vmem:[#allocation11 + $0xf60] sm:$0xff] }
 0x15e   :  { %v5695_v51 = vcombine.high %v1171_v46, %v1175_v47  ;;  %v1035_v52 = vld [vmem:[#allocation11 + $0xb00] sm:$0xff]  ;;  %v5694_v1 = vcombine.low %v1171_v46, %v1175_v47  ;;  %v744_v46 = vld [vmem:[#allocation11 + $0x1e8] sm:$0xff] }
 0x15f   :  { %3892 = vmatpush1.bf16.msra.mxu0 %v5470_v26  ;;  %v1039_v58 = vld [vmem:[#allocation11 + $0xb20] sm:$0xff]  ;;  %v868_v47 = vld [vmem:[#allocation11 + $0x5c8] sm:$0xff] }
 0x160   :  { %3933 = vmatpush1.bf16.msra.mxu1 %v5598_v0  ;;  %3893 = vmatprep.subr.bf16.mxu0 %v5463_v27  ;;  %v1163_v60 = vld [vmem:[#allocation11 + $0xf00] sm:$0xff]  ;;  %v5559_v2 = vcombine.high %v1035_v52, %v1039_v58  ;;  %v5558_v20 = vcombine.low %v1035_v52, %v1039_v58  ;;  %v5265_v52 = vcombine.high %v740_v45, %v744_v46  ;;  %v673_v58 = vmax.f32 %v6311_v23, 0.0 }
 0x161   :  { %3934 = vmatprep.subr.bf16.mxu1 %v5591_v28  ;;  %v1167_v62 = vld [vmem:[#allocation11 + $0xf20] sm:$0xff] }
 0x162   :  { %v5687_v5 = vcombine.high %v1163_v60, %v1167_v62  ;;  %v1027_v6 = vld [vmem:[#allocation11 + $0xac0] sm:$0xff]  ;;  %v5686_v21 = vcombine.low %v1163_v60, %v1167_v62  ;;  %v732_v62 = vld [vmem:[#allocation11 + $0x188] sm:$0xff] }
 0x163   :  { %3894 = vmatpush1.bf16.msra.mxu0 %v5462_v33  ;;  %v1031_v12 = vld [vmem:[#allocation11 + $0xae0] sm:$0xff] }
 0x164   :  { %3935 = vmatpush1.bf16.msra.mxu1 %v5590_v34  ;;  %3895 = vmatprep.subr.bf16.mxu0 %v5583_v35  ;;  %v1155_v19 = vld [vmem:[#allocation11 + $0xec0] sm:$0xff]  ;;  %v5551_v22 = vcombine.high %v1027_v6, %v1031_v12  ;;  %v5550_v0 = vcombine.low %v1027_v6, %v1031_v12 }
 0x165   :  { %3936 = vmatprep.subr.bf16.mxu1 %v5711_v37  ;;  %v1159_v8 = vld [vmem:[#allocation11 + $0xee0] sm:$0xff] }
 0x166   :  { %v5679_v13 = vcombine.high %v1155_v19, %v1159_v8  ;;  %v1019_v9 = vld [vmem:[#allocation11 + $0xa80] sm:$0xff]  ;;  %v5678_v27 = vcombine.low %v1155_v19, %v1159_v8  ;;  %v724_v8 = vld [vmem:[#allocation11 + $0x148] sm:$0xff] }
 0x167   :  { %3896 = vmatpush2.bf16.msra.mxu0 %v5582_v55  ;;  %v1023_v24 = vld [vmem:[#allocation11 + $0xaa0] sm:$0xff] }
 0x168   :  { %3937 = vmatpush2.bf16.msra.mxu1 %v5710_v56  ;;  %3897 = vmatprep.subr.bf16.mxu0 %v5575_v59  ;;  %v1147_v25 = vld [vmem:[#allocation11 + $0xe80] sm:$0xff]  ;;  %v5543_v28 = vcombine.high %v1019_v9, %v1023_v24  ;;  %v5542_v34 = vcombine.low %v1019_v9, %v1023_v24 }
 0x169   :  { %3938 = vmatprep.subr.bf16.mxu1 %v5703_v43  ;;  %v1151_v26 = vld [vmem:[#allocation11 + $0xea0] sm:$0xff] }
 0x16a   :  { %v5671_v10 = vcombine.high %v1147_v25, %v1151_v26  ;;  %v1011_v29 = vld [vmem:[#allocation11 + $0xa40] sm:$0xff]  ;;  %v5670_v35 = vcombine.low %v1147_v25, %v1151_v26  ;;  %v716_v26 = vld [vmem:[#allocation11 + $0x108] sm:$0xff] }
 0x16b   :  { %3898 = vmatpush2.bf16.msra.mxu0 %v5574_v48  ;;  %v1015_v30 = vld [vmem:[#allocation11 + $0xa60] sm:$0xff]  ;;  %v872_v48 = vld [vmem:[#allocation11 + $0x5e8] sm:$0xff] }
 0x16c   :  { %3939 = vmatpush2.bf16.msra.mxu1 %v5702_v49  ;;  %3899 = vmatprep.subr.bf16.mxu0 %v5567_v50  ;;  %v1139_v31 = vld [vmem:[#allocation11 + $0xe40] sm:$0xff]  ;;  %v5535_v37 = vcombine.high %v1011_v29, %v1015_v30  ;;  %v5534_v56 = vcombine.low %v1011_v29, %v1015_v30  ;;  %v671_v50 = vmax.f32 %v6308_v17, 0.0  ;;  %v5393_v60 = vcombine.high %v868_v47, %v872_v48 }
 0x16d   :  { %3940 = vmatprep.subr.bf16.mxu1 %v5695_v51  ;;  %v1143_v33 = vld [vmem:[#allocation11 + $0xe60] sm:$0xff]  ;;  %v5392_v12 = vcombine.low %v868_v47, %v872_v48  ;;  %v6333_v17 = vpack.c.bf16 %v673_v58, %v673_v58  ;;  %v692_v48 = vld [vmem:[#allocation11 + $0x48] sm:$0xff] }
 0x16e   :  { %v5663_v38 = vcombine.high %v1139_v31, %v1143_v33  ;;  %v1003_v53 = vld [vmem:[#allocation11 + $0xa00] sm:$0xff]  ;;  %v5662_v59 = vcombine.low %v1139_v31, %v1143_v33  ;;  %v6331_v6 = vpack.c.bf16 %v671_v50, %v671_v50  ;;  %v708_v33 = vld [vmem:[#allocation11 + $0xc8] sm:$0xff] }
 0x16f   :  { %3900 = vmatpush2.bf16.msra.mxu0 %v5566_v63  ;;  %v1007_v54 = vld [vmem:[#allocation11 + $0xa20] sm:$0xff]  ;;  %v736_v63 = vld [vmem:[#allocation11 + $0x1a8] sm:$0xff] }
 0x170   :  { %3941 = vmatpush2.bf16.msra.mxu1 %v5694_v1  ;;  %3901 = vmatprep.subr.bf16.mxu0 %v5559_v2  ;;  %v1131_v41 = vld [vmem:[#allocation11 + $0xe00] sm:$0xff]  ;;  %v5527_v43 = vcombine.high %v1003_v53, %v1007_v54  ;;  %v5526_v49 = vcombine.low %v1003_v53, %v1007_v54  ;;  %v5264_v1 = vcombine.low %v740_v45, %v744_v46  ;;  %v860_v2 = vld [vmem:[#allocation11 + $0x588] sm:$0xff] }
 0x171   :  { %3942 = vmatprep.subr.bf16.mxu1 %v5687_v5  ;;  %v1135_v55 = vld [vmem:[#allocation11 + $0xe20] sm:$0xff]  ;;  %v864_v5 = vld [vmem:[#allocation11 + $0x5a8] sm:$0xff]  ;;  %v5257_v19 = vcombine.high %v732_v62, %v736_v63 }
 0x172   :  { %v5655_v44 = vcombine.high %v1131_v41, %v1135_v55  ;;  %v5654_v51 = vcombine.low %v1131_v41, %v1135_v55  ;;  %v5385_v23 = vcombine.high %v860_v2, %v864_v5  ;;  %v5384_v9 = vcombine.low %v860_v2, %v864_v5  ;;  %v700_v55 = vld [vmem:[#allocation11 + $0x88] sm:$0xff] }
 0x173   :  { %3902 = vmatpush2.bf16.msra.mxu0 %v5558_v20  ;;  %v728_v20 = vld [vmem:[#allocation11 + $0x168] sm:$0xff] }
 0x174   :  { %3943 = vmatpush2.bf16.msra.mxu1 %v5686_v21  ;;  %3903 = vmatprep.subr.bf16.mxu0 %v5551_v22  ;;  %v852_v21 = vld [vmem:[#allocation11 + $0x548] sm:$0xff]  ;;  %v5249_v24 = vcombine.high %v724_v8, %v728_v20 }
 0x175   :  { %3944 = vmatprep.subr.bf16.mxu1 %v5679_v13  ;;  %v856_v22 = vld [vmem:[#allocation11 + $0x568] sm:$0xff]  ;;  %v5256_v13 = vcombine.low %v732_v62, %v736_v63 }
 0x176   :  { %v5377_v25 = vcombine.high %v852_v21, %v856_v22  ;;  %v5376_v29 = vcombine.low %v852_v21, %v856_v22  ;;  %v820_v50 = vld [vmem:[#allocation11 + $0x448] sm:$0xff] }
 0x177   :  { %3904 = vmatpush2.bf16.msra.mxu0 %v5550_v0  ;;  %v720_v0 = vld [vmem:[#allocation11 + $0x128] sm:$0xff] }
 0x178   :  { %3945 = vmatpush2.bf16.msra.mxu1 %v5678_v27  ;;  %3905 = vmatprep.subr.bf16.mxu0 %v5543_v28  ;;  %v844_v27 = vld [vmem:[#allocation11 + $0x508] sm:$0xff]  ;;  %v5241_v30 = vcombine.high %v716_v26, %v720_v0 }
 0x179   :  { %3946 = vmatprep.subr.bf16.mxu1 %v5671_v10  ;;  %v848_v28 = vld [vmem:[#allocation11 + $0x528] sm:$0xff]  ;;  %v5248_v10 = vcombine.low %v724_v8, %v728_v20 }
 0x17a   :  { %v5369_v31 = vcombine.high %v844_v27, %v848_v28  ;;  %v5368_v53 = vcombine.low %v844_v27, %v848_v28  ;;  %v684_v63 = vld [vmem:[#allocation11 + $0x8] sm:$0xff] }
 0x17b   :  { %3906 = vmatpush2.bf16.msra.mxu0 %v5542_v34  ;;  %v712_v34 = vld [vmem:[#allocation11 + $0xe8] sm:$0xff] }
 0x17c   :  { %3947 = vmatpush2.bf16.msra.mxu1 %v5670_v35  ;;  %3907 = vmatprep.subr.bf16.mxu0 %v5535_v37  ;;  %v836_v35 = vld [vmem:[#allocation11 + $0x4c8] sm:$0xff]  ;;  %v5233_v54 = vcombine.high %v708_v33, %v712_v34 }
 0x17d   :  { %3948 = vmatprep.subr.bf16.mxu1 %v5663_v38  ;;  %v840_v37 = vld [vmem:[#allocation11 + $0x4e8] sm:$0xff]  ;;  %v5240_v38 = vcombine.low %v716_v26, %v720_v0 }
 0x17e   :  { %v5361_v41 = vcombine.high %v836_v35, %v840_v37  ;;  %v5360_v45 = vcombine.low %v836_v35, %v840_v37  ;;  %v812_v2 = vld [vmem:[#allocation11 + $0x408] sm:$0xff] }
 0x17f   :  { %3908 = vmatpush2.bf16.msra.mxu0 %v5534_v56  ;;  %v704_v56 = vld [vmem:[#allocation11 + $0xa8] sm:$0xff] }
 0x180   :  { %3949 = vmatpush2.bf16.msra.mxu1 %v5662_v59  ;;  %3909 = vmatprep.subr.bf16.mxu0 %v5527_v43  ;;  %v828_v59 = vld [vmem:[#allocation11 + $0x488] sm:$0xff]  ;;  %v5225_v46 = vcombine.high %v700_v55, %v704_v56 }
 0x181   :  { %3950 = vmatprep.subr.bf16.mxu1 %v5655_v44  ;;  %v832_v43 = vld [vmem:[#allocation11 + $0x4a8] sm:$0xff]  ;;  %v5232_v44 = vcombine.low %v708_v33, %v712_v34 }
 0x182   :  { %v5353_v47 = vcombine.high %v828_v59, %v832_v43  ;;  %v5352_v58 = vcombine.low %v828_v59, %v832_v43  ;;  %v816_v5 = vld [vmem:[#allocation11 + $0x428] sm:$0xff] }
 0x183   :  { %3910 = vmatpush2.bf16.msra.mxu0 %v5526_v49  ;;  %v696_v49 = vld [vmem:[#allocation11 + $0x68] sm:$0xff]  ;;  %v5337_v20 = vcombine.high %v812_v2, %v816_v5 }
 0x184   :  { %3951 = vmatpush2.bf16.msra.mxu1 %v5654_v51  ;;  %3961 = vmatprep.subr.bf16.mxu0 %v5265_v52  ;;  %v824_v51 = vld [vmem:[#allocation11 + $0x468] sm:$0xff]  ;;  %v5224_v52 = vcombine.low %v700_v55, %v704_v56 }
 0x185   :  { %4002 = vmatprep.subr.bf16.mxu1 %v5393_v60  ;;  %v5217_v60 = vcombine.high %v692_v48, %v696_v49  ;;  %v5345_v62 = vcombine.high %v820_v50, %v824_v51  ;;  %v808_v21 = vld [vmem:[#allocation11 + $0x3e8] sm:$0xff] }
 0x186   :  { %3912 = vmatmul.mubr.bf16.vlgmr.msra.gmra.mxu0 %v6331_v6  ;;  %v932_v22 = vld [vmem:[#allocation11 + $0x7c8] sm:$0xff] }
 0x187   :  { %3953 = vmatmul.mubr.bf16.vlgmr.msra.gmra.mxu1 %v6333_v17  ;;  %3962 = vmatpush1.bf16.msra.mxu0 %v5264_v1  ;;  %v688_v1 = vld [vmem:[#allocation11 + $0x28] sm:$0xff] }
 0x188   :  { %3993 = vmatprep.mubr.bf16.mxu0 %v6296_v61  ;;  %4003 = vmatpush1.bf16.msra.mxu1 %v5392_v12  ;;  %v5216_v12 = vcombine.low %v692_v48, %v696_v49  ;;  %v5209_v8 = vcombine.high %v684_v63, %v688_v1  ;;  %v796_v0 = vld [vmem:[#allocation11 + $0x388] sm:$0xff] }
 0x189   :  { %4034 = vmatprep.mubr.bf16.mxu1 %v6304_v4  ;;  %3963 = vmatprep.subr.bf16.mxu0 %v5257_v19  ;;  %v5344_v19 = vcombine.low %v820_v50, %v824_v51  ;;  %v800_v27 = vld [vmem:[#allocation11 + $0x3a8] sm:$0xff] }
 0x18a   :  { %4004 = vmatprep.subr.bf16.mxu1 %v5385_v23  ;;  %v804_v23 = vld [vmem:[#allocation11 + $0x3c8] sm:$0xff] }
 0x18b   :  { %3964 = vmatpush1.bf16.msra.mxu0 %v5256_v13  ;;  %v936_v13 = vld [vmem:[#allocation11 + $0x7e8] sm:$0xff] }
 0x18c   :  { %4005 = vmatpush1.bf16.msra.mxu1 %v5384_v9  ;;  %3965 = vmatprep.subr.bf16.mxu0 %v5249_v24  ;;  %v5208_v9 = vcombine.low %v684_v63, %v688_v1  ;;  %v5336_v24 = vcombine.low %v812_v2, %v816_v5  ;;  %v5457_v26 = vcombine.high %v932_v22, %v936_v13  ;;  %v924_v28 = vld [vmem:[#allocation11 + $0x788] sm:$0xff] }
 0x18d   :  { %4006 = vmatprep.subr.bf16.mxu1 %v5377_v25  ;;  %v5329_v25 = vcombine.high %v804_v23, %v808_v21  ;;  %v788_v34 = vld [vmem:[#allocation11 + $0x348] sm:$0xff] }
 0x18e   :  { %v792_v35 = vld [vmem:[#allocation11 + $0x368] sm:$0xff] }
 0x18f   :  { %3966 = vmatpush1.bf16.msra.mxu0 %v5248_v10  ;;  %v928_v10 = vld [vmem:[#allocation11 + $0x7a8] sm:$0xff] }
 0x190   :  { %4007 = vmatpush1.bf16.msra.mxu1 %v5376_v29  ;;  %3967 = vmatprep.subr.bf16.mxu0 %v5241_v30  ;;  %v5328_v29 = vcombine.low %v804_v23, %v808_v21  ;;  %v5456_v30 = vcombine.low %v932_v22, %v936_v13  ;;  %v5449_v33 = vcombine.high %v924_v28, %v928_v10  ;;  %v916_v37 = vld [vmem:[#allocation11 + $0x748] sm:$0xff] }
 0x191   :  { %4008 = vmatprep.subr.bf16.mxu1 %v5369_v31  ;;  %v5321_v31 = vcombine.high %v796_v0, %v800_v27  ;;  %v780_v56 = vld [vmem:[#allocation11 + $0x308] sm:$0xff] }
 0x192   :  { %v784_v59 = vld [vmem:[#allocation11 + $0x328] sm:$0xff] }
 0x193   :  { %3968 = vmatpush1.bf16.msra.mxu0 %v5240_v38  ;;  %v920_v38 = vld [vmem:[#allocation11 + $0x768] sm:$0xff] }
 0x194   :  { %4009 = vmatpush1.bf16.msra.mxu1 %v5368_v53  ;;  %3969 = vmatprep.subr.bf16.mxu0 %v5233_v54  ;;  %v5320_v53 = vcombine.low %v796_v0, %v800_v27  ;;  %v5448_v54 = vcombine.low %v924_v28, %v928_v10  ;;  %v5441_v55 = vcombine.high %v916_v37, %v920_v38  ;;  %v908_v43 = vld [vmem:[#allocation11 + $0x708] sm:$0xff] }
 0x195   :  { %4010 = vmatprep.subr.bf16.mxu1 %v5361_v41  ;;  %v5313_v41 = vcombine.high %v788_v34, %v792_v35  ;;  %v772_v49 = vld [vmem:[#allocation11 + $0x2c8] sm:$0xff] }
 0x196   :  { %v776_v50 = vld [vmem:[#allocation11 + $0x2e8] sm:$0xff] }
 0x197   :  { %3970 = vmatpush1.bf16.msra.mxu0 %v5232_v44  ;;  %v912_v44 = vld [vmem:[#allocation11 + $0x728] sm:$0xff] }
 0x198   :  { %4011 = vmatpush1.bf16.msra.mxu1 %v5360_v45  ;;  %3971 = vmatprep.subr.bf16.mxu0 %v5225_v46  ;;  %v5312_v45 = vcombine.low %v788_v34, %v792_v35  ;;  %v5440_v46 = vcombine.low %v916_v37, %v920_v38  ;;  %v5433_v48 = vcombine.high %v908_v43, %v912_v44  ;;  %v900_v51 = vld [vmem:[#allocation11 + $0x6c8] sm:$0xff] }
 0x199   :  { %4012 = vmatprep.subr.bf16.mxu1 %v5353_v47  ;;  %v5305_v47 = vcombine.high %v780_v56, %v784_v59  ;;  %v764_v1 = vld [vmem:[#allocation11 + $0x288] sm:$0xff] }
 0x19a   :  { %v768_v2 = vld [vmem:[#allocation11 + $0x2a8] sm:$0xff] }
 0x19b   :  { %3972 = vmatpush1.bf16.msra.mxu0 %v5224_v52  ;;  %v904_v52 = vld [vmem:[#allocation11 + $0x6e8] sm:$0xff] }
 0x19c   :  { %4013 = vmatpush1.bf16.msra.mxu1 %v5352_v58  ;;  %3973 = vmatprep.subr.bf16.mxu0 %v5217_v60  ;;  %v5304_v58 = vcombine.low %v780_v56, %v784_v59  ;;  %v5432_v60 = vcombine.low %v908_v43, %v912_v44  ;;  %v5425_v63 = vcombine.high %v900_v51, %v904_v52  ;;  %v892_v5 = vld [vmem:[#allocation11 + $0x688] sm:$0xff] }
 0x19d   :  { %4014 = vmatprep.subr.bf16.mxu1 %v5345_v62  ;;  %v5297_v62 = vcombine.high %v772_v49, %v776_v50  ;;  %v756_v21 = vld [vmem:[#allocation11 + $0x248] sm:$0xff] }
 0x19e   :  { %v760_v22 = vld [vmem:[#allocation11 + $0x268] sm:$0xff] }
 0x19f   :  { %3974 = vmatpush1.bf16.msra.mxu0 %v5216_v12  ;;  %v896_v12 = vld [vmem:[#allocation11 + $0x6a8] sm:$0xff] }
 0x1a0   :  { %4015 = vmatpush1.bf16.msra.mxu1 %v5344_v19  ;;  %3975 = vmatprep.subr.bf16.mxu0 %v5209_v8  ;;  %v5296_v19 = vcombine.low %v772_v49, %v776_v50  ;;  %v5424_v8 = vcombine.low %v900_v51, %v904_v52  ;;  %v5417_v23 = vcombine.high %v892_v5, %v896_v12  ;;  %v884_v13 = vld [vmem:[#allocation11 + $0x648] sm:$0xff] }
 0x1a1   :  { %4016 = vmatprep.subr.bf16.mxu1 %v5337_v20  ;;  %v5289_v20 = vcombine.high %v764_v1, %v768_v2  ;;  %v748_v27 = vld [vmem:[#allocation11 + $0x208] sm:$0xff] }
 0x1a2   :  { %v752_v28 = vld [vmem:[#allocation11 + $0x228] sm:$0xff] }
 0x1a3   :  { %3976 = vmatpush1.bf16.msra.mxu0 %v5208_v9  ;;  %v888_v9 = vld [vmem:[#allocation11 + $0x668] sm:$0xff] }
 0x1a4   :  { %4017 = vmatpush1.bf16.msra.mxu1 %v5336_v24  ;;  %3977 = vmatprep.subr.bf16.mxu0 %v5329_v25  ;;  %v5288_v24 = vcombine.low %v764_v1, %v768_v2  ;;  %v5416_v25 = vcombine.low %v892_v5, %v896_v12  ;;  %v5409_v0 = vcombine.high %v884_v13, %v888_v9  ;;  %v876_v10 = vld [vmem:[#allocation11 + $0x608] sm:$0xff] }
 0x1a5   :  { %4018 = vmatprep.subr.bf16.mxu1 %v5457_v26  ;;  %v5281_v26 = vcombine.high %v756_v21, %v760_v22  ;;  %v996_v35 = vld [vmem:[#allocation11 + $0x9c8] sm:$0xff] }
 0x1a6   :  { %v1000_v37 = vld [vmem:[#allocation11 + $0x9e8] sm:$0xff] }
 0x1a7   :  { %3978 = vmatpush2.bf16.msra.mxu0 %v5328_v29  ;;  %v880_v29 = vld [vmem:[#allocation11 + $0x628] sm:$0xff]  ;;  %v5520_v44 = vcombine.low %v996_v35, %v1000_v37 }
 0x1a8   :  { %4019 = vmatpush2.bf16.msra.mxu1 %v5456_v30  ;;  %3979 = vmatprep.subr.bf16.mxu0 %v5321_v31  ;;  %v5280_v30 = vcombine.low %v756_v21, %v760_v22  ;;  %v5408_v31 = vcombine.low %v884_v13, %v888_v9  ;;  %v5401_v34 = vcombine.high %v876_v10, %v880_v29  ;;  %v1124_v38 = vld [vmem:[#allocation11 + $0xdc8] sm:$0xff] }
 0x1a9   :  { %4020 = vmatprep.subr.bf16.mxu1 %v5449_v33  ;;  %v5273_v33 = vcombine.high %v748_v27, %v752_v28  ;;  %v988_v59 = vld [vmem:[#allocation11 + $0x988] sm:$0xff] }
 0x1aa   :  { %v992_v43 = vld [vmem:[#allocation11 + $0x9a8] sm:$0xff] }
 0x1ab   :  { %3980 = vmatpush2.bf16.msra.mxu0 %v5320_v53  ;;  %v1128_v53 = vld [vmem:[#allocation11 + $0xde8] sm:$0xff] }
 0x1ac   :  { %4021 = vmatpush2.bf16.msra.mxu1 %v5448_v54  ;;  %3981 = vmatprep.subr.bf16.mxu0 %v5313_v41  ;;  %v5272_v54 = vcombine.low %v748_v27, %v752_v28  ;;  %v5400_v41 = vcombine.low %v876_v10, %v880_v29  ;;  %v5649_v56 = vcombine.high %v1124_v38, %v1128_v53  ;;  %v980_v49 = vld [vmem:[#allocation11 + $0x948] sm:$0xff] }
 0x1ad   :  { %4022 = vmatprep.subr.bf16.mxu1 %v5441_v55  ;;  %v5521_v55 = vcombine.high %v996_v35, %v1000_v37  ;;  %v984_v50 = vld [vmem:[#allocation11 + $0x968] sm:$0xff] }
 0x1ae   :  { %v1108_v52 = vld [vmem:[#allocation11 + $0xd48] sm:$0xff] }
 0x1af   :  { %3982 = vmatpush2.bf16.msra.mxu0 %v5312_v45  ;;  %v1116_v45 = vld [vmem:[#allocation11 + $0xd88] sm:$0xff] }
 0x1b0   :  { %4023 = vmatpush2.bf16.msra.mxu1 %v5440_v46  ;;  %3983 = vmatprep.subr.bf16.mxu0 %v5305_v47  ;;  %v1120_v46 = vld [vmem:[#allocation11 + $0xda8] sm:$0xff]  ;;  %v5648_v47 = vcombine.low %v1124_v38, %v1128_v53 }
 0x1b1   :  { %4024 = vmatprep.subr.bf16.mxu1 %v5433_v48  ;;  %v5513_v48 = vcombine.high %v988_v59, %v992_v43  ;;  %v5641_v51 = vcombine.high %v1116_v45, %v1120_v46  ;;  %v972_v2 = vld [vmem:[#allocation11 + $0x908] sm:$0xff] }
 0x1b2   :  { %v976_v5 = vld [vmem:[#allocation11 + $0x928] sm:$0xff] }
 0x1b3   :  { %3984 = vmatpush2.bf16.msra.mxu0 %v5304_v58  ;;  %v1112_v58 = vld [vmem:[#allocation11 + $0xd68] sm:$0xff] }
 0x1b4   :  { %4025 = vmatpush2.bf16.msra.mxu1 %v5432_v60  ;;  %3985 = vmatprep.subr.bf16.mxu0 %v5297_v62  ;;  %v5512_v60 = vcombine.low %v988_v59, %v992_v43  ;;  %v5640_v62 = vcombine.low %v1116_v45, %v1120_v46  ;;  %v5633_v1 = vcombine.high %v1108_v52, %v1112_v58  ;;  %v1100_v12 = vld [vmem:[#allocation11 + $0xd08] sm:$0xff] }
 0x1b5   :  { %4026 = vmatprep.subr.bf16.mxu1 %v5425_v63  ;;  %v5505_v63 = vcombine.high %v980_v49, %v984_v50  ;;  %v964_v22 = vld [vmem:[#allocation11 + $0x8c8] sm:$0xff] }
 0x1b6   :  { %v968_v13 = vld [vmem:[#allocation11 + $0x8e8] sm:$0xff] }
 0x1b7   :  { %3986 = vmatpush2.bf16.msra.mxu0 %v5296_v19  ;;  %v1104_v19 = vld [vmem:[#allocation11 + $0xd28] sm:$0xff] }
 0x1b8   :  { %4027 = vmatpush2.bf16.msra.mxu1 %v5424_v8  ;;  %3987 = vmatprep.subr.bf16.mxu0 %v5289_v20  ;;  %v5504_v8 = vcombine.low %v980_v49, %v984_v50  ;;  %v5632_v20 = vcombine.low %v1108_v52, %v1112_v58  ;;  %v5625_v21 = vcombine.high %v1100_v12, %v1104_v19  ;;  %v1092_v9 = vld [vmem:[#allocation11 + $0xcc8] sm:$0xff] }
 0x1b9   :  { %4028 = vmatprep.subr.bf16.mxu1 %v5417_v23  ;;  %v5497_v23 = vcombine.high %v972_v2, %v976_v5  ;;  %v956_v28 = vld [vmem:[#allocation11 + $0x888] sm:$0xff] }
 0x1ba   :  { %v960_v10 = vld [vmem:[#allocation11 + $0x8a8] sm:$0xff] }
 0x1bb   :  { %3988 = vmatpush2.bf16.msra.mxu0 %v5288_v24  ;;  %v1096_v24 = vld [vmem:[#allocation11 + $0xce8] sm:$0xff] }
 0x1bc   :  { %4029 = vmatpush2.bf16.msra.mxu1 %v5416_v25  ;;  %3989 = vmatprep.subr.bf16.mxu0 %v5281_v26  ;;  %v5496_v25 = vcombine.low %v972_v2, %v976_v5  ;;  %v5624_v26 = vcombine.low %v1100_v12, %v1104_v19  ;;  %v5617_v27 = vcombine.high %v1092_v9, %v1096_v24  ;;  %v1084_v29 = vld [vmem:[#allocation11 + $0xc88] sm:$0xff] }
 0x1bd   :  { %4030 = vmatprep.subr.bf16.mxu1 %v5409_v0  ;;  %v5489_v0 = vcombine.high %v964_v22, %v968_v13  ;;  %v948_v37 = vld [vmem:[#allocation11 + $0x848] sm:$0xff] }
 0x1be   :  { %v952_v38 = vld [vmem:[#allocation11 + $0x868] sm:$0xff] }
 0x1bf   :  { %3990 = vmatpush2.bf16.msra.mxu0 %v5280_v30  ;;  %v1088_v30 = vld [vmem:[#allocation11 + $0xca8] sm:$0xff] }
 0x1c0   :  { %4031 = vmatpush2.bf16.msra.mxu1 %v5408_v31  ;;  %3991 = vmatprep.subr.bf16.mxu0 %v5273_v33  ;;  %v5488_v31 = vcombine.low %v964_v22, %v968_v13  ;;  %v5616_v33 = vcombine.low %v1092_v9, %v1096_v24  ;;  %v5609_v35 = vcombine.high %v1084_v29, %v1088_v30  ;;  %v1076_v53 = vld [vmem:[#allocation11 + $0xc48] sm:$0xff] }
 0x1c1   :  { %4032 = vmatprep.subr.bf16.mxu1 %v5401_v34  ;;  %v5481_v34 = vcombine.high %v956_v28, %v960_v10  ;;  %v940_v43 = vld [vmem:[#allocation11 + $0x808] sm:$0xff] }
 0x1c2   :  { %v1068_v45 = vld [vmem:[#allocation11 + $0xc08] sm:$0xff] }
 0x1c3   :  { %3992 = vmatpush2.bf16.msra.mxu0 %v5272_v54  ;;  %v1080_v54 = vld [vmem:[#allocation11 + $0xc68] sm:$0xff] }
 0x1c4   :  { %4033 = vmatpush2.bf16.msra.mxu1 %v5400_v41  ;;  %4043 = vmatprep.subr.bf16.mxu0 %v5521_v55  ;;  %v5480_v41 = vcombine.low %v956_v28, %v960_v10  ;;  %v5608_v55 = vcombine.low %v1084_v29, %v1088_v30  ;;  %v5601_v59 = vcombine.high %v1076_v53, %v1080_v54  ;;  %v1072_v46 = vld [vmem:[#allocation11 + $0xc28] sm:$0xff] }
 0x1c5   :  { %4084 = vmatprep.subr.bf16.mxu1 %v5649_v56  ;;  %v5473_v56 = vcombine.high %v948_v37, %v952_v38  ;;  %v5593_v50 = vcombine.high %v1068_v45, %v1072_v46  ;;  %v1064_v52 = vld [vmem:[#allocation11 + $0xbe8] sm:$0xff] }
 0x1c6   :  { %3994 = vmatmul.mubr.bf16.vlgmr.msra.gmra.mxu0 %v6302_v3  ;;  %v1188_v58 = vld [vmem:[#allocation11 + $0xfc8] sm:$0xff] }
 0x1c7   :  { %4035 = vmatmul.mubr.bf16.vlgmr.msra.gmra.mxu1 %v6306_v15  ;;  %4044 = vmatpush1.bf16.msra.mxu0 %v5520_v44  ;;  %v944_v44 = vld [vmem:[#allocation11 + $0x828] sm:$0xff] }
 0x1c8   :  { %4075 = vmatprep.mubr.bf16.mxu0 %v6323_v57  ;;  %4085 = vmatpush1.bf16.msra.mxu1 %v5648_v47  ;;  %v5472_v47 = vcombine.low %v948_v37, %v952_v38  ;;  %v5465_v49 = vcombine.high %v940_v43, %v944_v44  ;;  %v1052_v5 = vld [vmem:[#allocation11 + $0xb88] sm:$0xff] }
 0x1c9   :  { %4116 = vmatprep.mubr.bf16.mxu1 %v6325_v42  ;;  %4045 = vmatprep.subr.bf16.mxu0 %v5513_v48  ;;  %v5600_v48 = vcombine.low %v1076_v53, %v1080_v54  ;;  %v1056_v12 = vld [vmem:[#allocation11 + $0xba8] sm:$0xff] }
 0x1ca   :  { %4086 = vmatprep.subr.bf16.mxu1 %v5641_v51  ;;  %v1060_v51 = vld [vmem:[#allocation11 + $0xbc8] sm:$0xff] }
 0x1cb   :  { %4046 = vmatpush1.bf16.msra.mxu0 %v5512_v60  ;;  %v1192_v60 = vld [vmem:[#allocation11 + $0xfe8] sm:$0xff] }
 0x1cc   :  { %4087 = vmatpush1.bf16.msra.mxu1 %v5640_v62  ;;  %4047 = vmatprep.subr.bf16.mxu0 %v5505_v63  ;;  %v5464_v62 = vcombine.low %v940_v43, %v944_v44  ;;  %v5592_v63 = vcombine.low %v1068_v45, %v1072_v46  ;;  %v5713_v2 = vcombine.high %v1188_v58, %v1192_v60  ;;  %v1180_v19 = vld [vmem:[#allocation11 + $0xf88] sm:$0xff] }
 0x1cd   :  { %4088 = vmatprep.subr.bf16.mxu1 %v5633_v1  ;;  %v5585_v1 = vcombine.high %v1060_v51, %v1064_v52  ;;  %v1044_v13 = vld [vmem:[#allocation11 + $0xb48] sm:$0xff] }
 0x1ce   :  { %v1048_v9 = vld [vmem:[#allocation11 + $0xb68] sm:$0xff] }
 0x1cf   :  { %4048 = vmatpush1.bf16.msra.mxu0 %v5504_v8  ;;  %v1184_v8 = vld [vmem:[#allocation11 + $0xfa8] sm:$0xff] }
 0x1d0   :  { %4089 = vmatpush1.bf16.msra.mxu1 %v5632_v20  ;;  %4049 = vmatprep.subr.bf16.mxu0 %v5497_v23  ;;  %v5584_v20 = vcombine.low %v1060_v51, %v1064_v52  ;;  %v5712_v23 = vcombine.low %v1188_v58, %v1192_v60  ;;  %v5705_v22 = vcombine.high %v1180_v19, %v1184_v8  ;;  %v1172_v24 = vld [vmem:[#allocation11 + $0xf48] sm:$0xff] }
 0x1d1   :  { %4090 = vmatprep.subr.bf16.mxu1 %v5625_v21  ;;  %v5577_v21 = vcombine.high %v1052_v5, %v1056_v12  ;;  %v1036_v10 = vld [vmem:[#allocation11 + $0xb08] sm:$0xff] }
 0x1d2   :  { %v1040_v29 = vld [vmem:[#allocation11 + $0xb28] sm:$0xff] }
 0x1d3   :  { %4050 = vmatpush1.bf16.msra.mxu0 %v5496_v25  ;;  %v1176_v25 = vld [vmem:[#allocation11 + $0xf68] sm:$0xff] }
 0x1d4   :  { %4091 = vmatpush1.bf16.msra.mxu1 %v5624_v26  ;;  %4051 = vmatprep.subr.bf16.mxu0 %v5489_v0  ;;  %v5576_v26 = vcombine.low %v1052_v5, %v1056_v12  ;;  %v5704_v0 = vcombine.low %v1180_v19, %v1184_v8  ;;  %v5697_v28 = vcombine.high %v1172_v24, %v1176_v25  ;;  %v1164_v30 = vld [vmem:[#allocation11 + $0xf08] sm:$0xff] }
 0x1d5   :  { %4092 = vmatprep.subr.bf16.mxu1 %v5617_v27  ;;  %v5569_v27 = vcombine.high %v1044_v13, %v1048_v9  ;;  %v1028_v38 = vld [vmem:[#allocation11 + $0xac8] sm:$0xff] }
 0x1d6   :  { %v1032_v53 = vld [vmem:[#allocation11 + $0xae8] sm:$0xff] }
 0x1d7   :  { %4052 = vmatpush1.bf16.msra.mxu0 %v5488_v31  ;;  %v1168_v31 = vld [vmem:[#allocation11 + $0xf28] sm:$0xff] }
 0x1d8   :  { %4093 = vmatpush1.bf16.msra.mxu1 %v5616_v33  ;;  %4053 = vmatprep.subr.bf16.mxu0 %v5481_v34  ;;  %v5568_v33 = vcombine.low %v1044_v13, %v1048_v9  ;;  %v5696_v34 = vcombine.low %v1172_v24, %v1176_v25  ;;  %v5689_v37 = vcombine.high %v1164_v30, %v1168_v31  ;;  %v1156_v54 = vld [vmem:[#allocation11 + $0xec8] sm:$0xff]  ;;  %v741_v9 = vld [vmem:[#allocation11 + $0x1d0] sm:$0xff] }
 0x1d9   :  { %4094 = vmatprep.subr.bf16.mxu1 %v5609_v35  ;;  %v5561_v35 = vcombine.high %v1036_v10, %v1040_v29  ;;  %v1020_v44 = vld [vmem:[#allocation11 + $0xa88] sm:$0xff]  ;;  %v745_v24 = vld [vmem:[#allocation11 + $0x1f0] sm:$0xff] }
 0x1da   :  { %v1024_v45 = vld [vmem:[#allocation11 + $0xaa8] sm:$0xff]  ;;  %v869_v25 = vld [vmem:[#allocation11 + $0x5d0] sm:$0xff] }
 0x1db   :  { %4054 = vmatpush1.bf16.msra.mxu0 %v5480_v41  ;;  %v1160_v41 = vld [vmem:[#allocation11 + $0xee8] sm:$0xff] }
 0x1dc   :  { %4095 = vmatpush1.bf16.msra.mxu1 %v5608_v55  ;;  %4055 = vmatprep.subr.bf16.mxu0 %v5473_v56  ;;  %v5560_v55 = vcombine.low %v1036_v10, %v1040_v29  ;;  %v5688_v56 = vcombine.low %v1164_v30, %v1168_v31  ;;  %v5681_v43 = vcombine.high %v1156_v54, %v1160_v41  ;;  %v1148_v46 = vld [vmem:[#allocation11 + $0xe88] sm:$0xff]  ;;  %v6343_v10 = vld [vmem:[#allocation13] sm:$0xff]  ;;  %v733_v30 = vld [vmem:[#allocation11 + $0x190] sm:$0xff] }
 0x1dd   :  { %4096 = vmatprep.subr.bf16.mxu1 %v5601_v59  ;;  %v5553_v59 = vcombine.high %v1028_v38, %v1032_v53  ;;  %v1012_v52 = vld [vmem:[#allocation11 + $0xa48] sm:$0xff]  ;;  %v737_v31 = vld [vmem:[#allocation11 + $0x1b0] sm:$0xff] }
 0x1de   :  { %v1016_v58 = vld [vmem:[#allocation11 + $0xa68] sm:$0xff] }
 0x1df   :  { %4056 = vmatpush1.bf16.msra.mxu0 %v5472_v47  ;;  %v1152_v47 = vld [vmem:[#allocation11 + $0xea8] sm:$0xff] }
 0x1e0   :  { %4097 = vmatpush1.bf16.msra.mxu1 %v5600_v48  ;;  %4057 = vmatprep.subr.bf16.mxu0 %v5465_v49  ;;  %v5552_v48 = vcombine.low %v1028_v38, %v1032_v53  ;;  %v5680_v49 = vcombine.low %v1156_v54, %v1160_v41  ;;  %v5673_v51 = vcombine.high %v1148_v46, %v1152_v47  ;;  %v1140_v60 = vld [vmem:[#allocation11 + $0xe48] sm:$0xff]  ;;  %v725_v41 = vld [vmem:[#allocation11 + $0x150] sm:$0xff] }
 0x1e1   :  { %4098 = vmatprep.subr.bf16.mxu1 %v5593_v50  ;;  %v5545_v50 = vcombine.high %v1020_v44, %v1024_v45  ;;  %v1004_v12 = vld [vmem:[#allocation11 + $0xa08] sm:$0xff]  ;;  %v1204_v53 = vrot.slane %v6343_v10, %v625_v16  ;;  %v5259_v54 = vcombine.high %v733_v30, %v737_v31 }
 0x1e2   :  { %v1008_v19 = vld [vmem:[#allocation11 + $0xa28] sm:$0xff] }
 0x1e3   :  { %4058 = vmatpush1.bf16.msra.mxu0 %v5464_v62  ;;  %v1144_v62 = vld [vmem:[#allocation11 + $0xe68] sm:$0xff] }
 0x1e4   :  { %4099 = vmatpush1.bf16.msra.mxu1 %v5592_v63  ;;  %4059 = vmatprep.subr.bf16.mxu0 %v5585_v1  ;;  %v5544_v63 = vcombine.low %v1020_v44, %v1024_v45  ;;  %v5672_v1 = vcombine.low %v1148_v46, %v1152_v47  ;;  %v5665_v5 = vcombine.high %v1140_v60, %v1144_v62  ;;  %v1132_v8 = vld [vmem:[#allocation11 + $0xe08] sm:$0xff]  ;;  %v857_v44 = vld [vmem:[#allocation11 + $0x570] sm:$0xff] }
 0x1e5   :  { %4100 = vmatprep.subr.bf16.mxu1 %v5713_v2  ;;  %v5537_v2 = vcombine.high %v1012_v52, %v1016_v58  ;;  %v5258_v46 = vcombine.low %v733_v30, %v737_v31  ;;  %v829_v30 = vld [vmem:[#allocation11 + $0x490] sm:$0xff] }
 0x1e6   :  { %v833_v31 = vld [vmem:[#allocation11 + $0x4b0] sm:$0xff] }
 0x1e7   :  { %4060 = vmatpush2.bf16.msra.mxu0 %v5584_v20  ;;  %v1136_v20 = vld [vmem:[#allocation11 + $0xe28] sm:$0xff] }
 0x1e8   :  { %4101 = vmatpush2.bf16.msra.mxu1 %v5712_v23  ;;  %4061 = vmatprep.subr.bf16.mxu0 %v5577_v21  ;;  %v5536_v23 = vcombine.low %v1012_v52, %v1016_v58  ;;  %v5664_v21 = vcombine.low %v1140_v60, %v1144_v62  ;;  %v5657_v13 = vcombine.high %v1132_v8, %v1136_v20  ;;  %v717_v58 = vld [vmem:[#allocation11 + $0x110] sm:$0xff] }
 0x1e9   :  { %4102 = vmatprep.subr.bf16.mxu1 %v5705_v22  ;;  %v5529_v22 = vcombine.high %v1004_v12, %v1008_v19  ;;  %v721_v60 = vld [vmem:[#allocation11 + $0x130] sm:$0xff] }
 0x1eb   :  { %4062 = vmatpush2.bf16.msra.mxu0 %v5576_v26  ;;  %v873_v26 = vld [vmem:[#allocation11 + $0x5f0] sm:$0xff] }
 0x1ec   :  { %4103 = vmatpush2.bf16.msra.mxu1 %v5704_v0  ;;  %4063 = vmatprep.subr.bf16.mxu0 %v5569_v27  ;;  %v5528_v0 = vcombine.low %v1004_v12, %v1008_v19  ;;  %v5656_v27 = vcombine.low %v1132_v8, %v1136_v20  ;;  %v5395_v29 = vcombine.high %v869_v25, %v873_v26 }
 0x1ed   :  { %4104 = vmatprep.subr.bf16.mxu1 %v5697_v28  ;;  %v5267_v28 = vcombine.high %v741_v9, %v745_v24  ;;  %v5394_v38 = vcombine.low %v869_v25, %v873_v26  ;;  %v5243_v20 = vcombine.high %v717_v58, %v721_v60  ;;  %v5242_v25 = vcombine.low %v717_v58, %v721_v60  ;;  %v933_v58 = vld [vmem:[#allocation11 + $0x7d0] sm:$0xff] }
 0x1ee   :  { %v937_v60 = vld [vmem:[#allocation11 + $0x7f0] sm:$0xff] }
 0x1ef   :  { %4064 = vmatpush2.bf16.msra.mxu0 %v5568_v33  ;;  %v5266_v33 = vcombine.low %v741_v9, %v745_v24  ;;  %v837_v9 = vld [vmem:[#allocation11 + $0x4d0] sm:$0xff] }
 0x1f0   :  { %4105 = vmatpush2.bf16.msra.mxu1 %v5696_v34  ;;  %4065 = vmatprep.subr.bf16.mxu0 %v5561_v35  ;;  %v1200_v34 = vrot.slane %v6343_v10, %v621_v11  ;;  %v861_v35 = vld [vmem:[#allocation11 + $0x590] sm:$0xff] }
 0x1f1   :  { %4106 = vmatprep.subr.bf16.mxu1 %v5689_v37  ;;  %v865_v37 = vld [vmem:[#allocation11 + $0x5b0] sm:$0xff] }
 0x1f2   :  { %v5386_v16 = vcombine.low %v861_v35, %v865_v37  ;;  %v841_v24 = vld [vmem:[#allocation11 + $0x4f0] sm:$0xff] }
 0x1f3   :  { %4066 = vmatpush2.bf16.msra.mxu0 %v5560_v55  ;;  %v729_v55 = vld [vmem:[#allocation11 + $0x170] sm:$0xff] }
 0x1f4   :  { %4107 = vmatpush2.bf16.msra.mxu1 %v5688_v56  ;;  %4067 = vmatprep.subr.bf16.mxu0 %v5553_v59  ;;  %v5387_v59 = vcombine.high %v861_v35, %v865_v37  ;;  %v5250_v12 = vcombine.low %v725_v41, %v729_v55  ;;  %v5355_v37 = vcombine.high %v829_v30, %v833_v31 }
 0x1f5   :  { %4108 = vmatprep.subr.bf16.mxu1 %v5681_v43  ;;  %v853_v43 = vld [vmem:[#allocation11 + $0x550] sm:$0xff] }
 0x1f6   :  { %v5379_v52 = vcombine.high %v853_v43, %v857_v44  ;;  %v5378_v8 = vcombine.low %v853_v43, %v857_v44  ;;  %v685_v44 = vld [vmem:[#allocation11 + $0x10] sm:$0xff] }
 0x1f7   :  { %4068 = vmatpush2.bf16.msra.mxu0 %v5552_v48  ;;  %v5251_v48 = vcombine.high %v725_v41, %v729_v55  ;;  %v825_v41 = vld [vmem:[#allocation11 + $0x470] sm:$0xff] }
 0x1f8   :  { %4109 = vmatpush2.bf16.msra.mxu1 %v5680_v49  ;;  %4069 = vmatprep.subr.bf16.mxu0 %v5545_v50 }
 0x1f9   :  { %4110 = vmatprep.subr.bf16.mxu1 %v5673_v51 }
 0x1fb   :  { %4070 = vmatpush2.bf16.msra.mxu0 %v5544_v63  ;;  %v845_v63 = vld [vmem:[#allocation11 + $0x510] sm:$0xff] }
 0x1fc   :  { %4111 = vmatpush2.bf16.msra.mxu1 %v5672_v1  ;;  %4071 = vmatprep.subr.bf16.mxu0 %v5537_v2  ;;  %v849_v1 = vld [vmem:[#allocation11 + $0x530] sm:$0xff] }
 0x1fd   :  { %4112 = vmatprep.subr.bf16.mxu1 %v5665_v5  ;;  %v5370_v26 = vcombine.low %v845_v63, %v849_v1 }
 0x1ff   :  { %4072 = vmatpush2.bf16.msra.mxu0 %v5536_v23 }
 0x200   :  { %4113 = vmatpush2.bf16.msra.mxu1 %v5664_v21  ;;  %4073 = vmatprep.subr.bf16.mxu0 %v5529_v22  ;;  %v5371_v21 = vcombine.high %v845_v63, %v849_v1  ;;  %v709_v22 = vld [vmem:[#allocation11 + $0xd0] sm:$0xff] }
 0x201   :  { %4114 = vmatprep.subr.bf16.mxu1 %v5657_v13  ;;  %v713_v13 = vld [vmem:[#allocation11 + $0xf0] sm:$0xff] }
 0x203   :  { %4074 = vmatpush2.bf16.msra.mxu0 %v5528_v0  ;;  %v5235_v0 = vcombine.high %v709_v22, %v713_v13 }
 0x204   :  { %4115 = vmatpush2.bf16.msra.mxu1 %v5656_v27  ;;  %4125 = vmatprep.subr.bf16.mxu0 %v5267_v28  ;;  %v5363_v27 = vcombine.high %v837_v9, %v841_v24  ;;  %v701_v28 = vld [vmem:[#allocation11 + $0x90] sm:$0xff] }
 0x205   :  { %4166 = vmatprep.subr.bf16.mxu1 %v5395_v29  ;;  %v705_v29 = vld [vmem:[#allocation11 + $0xb0] sm:$0xff] }
 0x206   :  { %4076 = vmatmul.mubr.bf16.vlgmr.msra.gmra.mxu0 %v6331_v6  ;;  %v3831_v56 = vpop.f32.mrf.mxu0  ;;  %v5227_v35 = vcombine.high %v701_v28, %v705_v29  ;;  %v5226_v55 = vcombine.low %v701_v28, %v705_v29 }
 0x207   :  { %4117 = vmatmul.mubr.bf16.vlgmr.msra.gmra.mxu1 %v6333_v17  ;;  %v3832_v11 = vadd.f32 %v3831_v56, %v1200_v34  ;;  %v3872_v45 = vpop.f32.mrf.mxu1  ;;  %4126 = vmatpush1.bf16.msra.mxu0 %v5266_v33  ;;  %v5234_v33 = vcombine.low %v709_v22, %v713_v13  ;;  %v5362_v34 = vcombine.low %v837_v9, %v841_v24  ;;  %v789_v9 = vld [vmem:[#allocation11 + $0x350] sm:$0xff] }
 0x208   :  { %4157 = vmatprep.mubr.bf16.mxu0 %v6296_v61  ;;  %4167 = vmatpush1.bf16.msra.mxu1 %v5394_v38  ;;  %v3833_v47 = vpop.f32.mrf.mxu0  ;;  %v693_v38 = vld [vmem:[#allocation11 + $0x50] sm:$0xff]  ;;  %v5354_v56 = vcombine.low %v829_v30, %v833_v31 }
 0x209   :  { %v6354_v49 = vadd.f32 %v3872_v45, %v3832_v11  ;;  %4198 = vmatprep.mubr.bf16.mxu1 %v6304_v4  ;;  %v3834_v50 = vadd.f32 %v3833_v47, %v1204_v53  ;;  %v3874_v51 = vpop.f32.mrf.mxu1  ;;  %4127 = vmatprep.subr.bf16.mxu0 %v5259_v54  ;;  %v697_v53 = vld [vmem:[#allocation11 + $0x70] sm:$0xff] }
 0x20a   :  { %4168 = vmatprep.subr.bf16.mxu1 %v5387_v59  ;;  %v3835_v62 = vpop.f32.mrf.mxu0  ;;  %v821_v54 = vld [vmem:[#allocation11 + $0x450] sm:$0xff]  ;;  %v5219_v59 = vcombine.high %v693_v38, %v697_v53  ;;  %v5218_v47 = vcombine.low %v693_v38, %v697_v53 }
 0x20b   :  { %v6357_v2 = vadd.f32 %v3874_v51, %v3834_v50  ;;  %v3876_v5 = vpop.f32.mrf.mxu1  ;;  %4128 = vmatpush1.bf16.msra.mxu0 %v5258_v46  ;;  %v5347_v43 = vcombine.high %v821_v54, %v825_v41  ;;  %v689_v11 = vld [vmem:[#allocation11 + $0x30] sm:$0xff] }
 0x20c   :  { %4169 = vmatpush1.bf16.msra.mxu1 %v5386_v16  ;;  %v3836_v19 = vpop.f32.mrf.mxu0  ;;  %4129 = vmatprep.subr.bf16.mxu0 %v5251_v48  ;;  %v813_v45 = vld [vmem:[#allocation11 + $0x410] sm:$0xff]  ;;  %v5346_v16 = vcombine.low %v821_v54, %v825_v41  ;;  %v5211_v48 = vcombine.high %v685_v44, %v689_v11  ;;  %v5210_v62 = vcombine.low %v685_v44, %v689_v11 }
 0x20d   :  { %v3877_v23 = vpop.f32.mrf.mxu1  ;;  %4170 = vmatprep.subr.bf16.mxu1 %v5379_v52  ;;  %v817_v46 = vld [vmem:[#allocation11 + $0x430] sm:$0xff]  ;;  %v5459_v5 = vcombine.high %v933_v58, %v937_v60 }
 0x20e   :  { %v5339_v50 = vcombine.high %v813_v45, %v817_v46  ;;  %v805_v51 = vld [vmem:[#allocation11 + $0x3d0] sm:$0xff]  ;;  %v5338_v63 = vcombine.low %v813_v45, %v817_v46 }
 0x20f   :  { %4130 = vmatpush1.bf16.msra.mxu0 %v5250_v12  ;;  %v809_v52 = vld [vmem:[#allocation11 + $0x3f0] sm:$0xff] }
 0x210   :  { %4171 = vmatpush1.bf16.msra.mxu1 %v5378_v8  ;;  %4131 = vmatprep.subr.bf16.mxu0 %v5243_v20  ;;  %v5331_v1 = vcombine.high %v805_v51, %v809_v52  ;;  %v797_v12 = vld [vmem:[#allocation11 + $0x390] sm:$0xff]  ;;  %v5330_v23 = vcombine.low %v805_v51, %v809_v52 }
 0x211   :  { %4172 = vmatprep.subr.bf16.mxu1 %v5371_v21  ;;  %v801_v19 = vld [vmem:[#allocation11 + $0x3b0] sm:$0xff]  ;;  %v5458_v21 = vcombine.low %v933_v58, %v937_v60 }
 0x212   :  { %v925_v8 = vld [vmem:[#allocation11 + $0x790] sm:$0xff]  ;;  %v5323_v22 = vcombine.high %v797_v12, %v801_v19 }
 0x213   :  { %4132 = vmatpush1.bf16.msra.mxu0 %v5242_v25  ;;  %v929_v20 = vld [vmem:[#allocation11 + $0x7b0] sm:$0xff] }
 0x214   :  { %4173 = vmatpush1.bf16.msra.mxu1 %v5370_v26  ;;  %4133 = vmatprep.subr.bf16.mxu0 %v5235_v0  ;;  %v5451_v13 = vcombine.high %v925_v8, %v929_v20  ;;  %v793_v24 = vld [vmem:[#allocation11 + $0x370] sm:$0xff]  ;;  %v5322_v0 = vcombine.low %v797_v12, %v801_v19 }
 0x215   :  { %4174 = vmatprep.subr.bf16.mxu1 %v5363_v27  ;;  %v917_v25 = vld [vmem:[#allocation11 + $0x750] sm:$0xff]  ;;  %v5450_v27 = vcombine.low %v925_v8, %v929_v20  ;;  %v5315_v28 = vcombine.high %v789_v9, %v793_v24 }
 0x216   :  { %v921_v26 = vld [vmem:[#allocation11 + $0x770] sm:$0xff] }
 0x217   :  { %4134 = vmatpush1.bf16.msra.mxu0 %v5234_v33  ;;  %v5443_v29 = vcombine.high %v917_v25, %v921_v26  ;;  %v781_v30 = vld [vmem:[#allocation11 + $0x310] sm:$0xff] }
 0x218   :  { %4175 = vmatpush1.bf16.msra.mxu1 %v5362_v34  ;;  %4135 = vmatprep.subr.bf16.mxu0 %v5227_v35  ;;  %v785_v31 = vld [vmem:[#allocation11 + $0x330] sm:$0xff]  ;;  %v5314_v35 = vcombine.low %v789_v9, %v793_v24 }
 0x219   :  { %4176 = vmatprep.subr.bf16.mxu1 %v5355_v37  ;;  %v909_v33 = vld [vmem:[#allocation11 + $0x710] sm:$0xff]  ;;  %v5442_v37 = vcombine.low %v917_v25, %v921_v26  ;;  %v5307_v38 = vcombine.high %v781_v30, %v785_v31 }
 0x21a   :  { %v913_v34 = vld [vmem:[#allocation11 + $0x730] sm:$0xff] }
 0x21b   :  { %4136 = vmatpush1.bf16.msra.mxu0 %v5226_v55  ;;  %v5435_v53 = vcombine.high %v909_v33, %v913_v34  ;;  %v773_v54 = vld [vmem:[#allocation11 + $0x2d0] sm:$0xff] }
 0x21c   :  { %4177 = vmatpush1.bf16.msra.mxu1 %v5354_v56  ;;  %4137 = vmatprep.subr.bf16.mxu0 %v5219_v59  ;;  %v777_v41 = vld [vmem:[#allocation11 + $0x2f0] sm:$0xff]  ;;  %v5306_v59 = vcombine.low %v781_v30, %v785_v31 }
 0x21d   :  { %4178 = vmatprep.subr.bf16.mxu1 %v5347_v43  ;;  %v901_v55 = vld [vmem:[#allocation11 + $0x6d0] sm:$0xff]  ;;  %v5434_v43 = vcombine.low %v909_v33, %v913_v34  ;;  %v5299_v44 = vcombine.high %v773_v54, %v777_v41 }
 0x21e   :  { %v905_v56 = vld [vmem:[#allocation11 + $0x6f0] sm:$0xff] }
 0x21f   :  { %4138 = vmatpush1.bf16.msra.mxu0 %v5218_v47  ;;  %v5427_v11 = vcombine.high %v901_v55, %v905_v56  ;;  %v765_v45 = vld [vmem:[#allocation11 + $0x290] sm:$0xff] }
 0x220   :  { %4179 = vmatpush1.bf16.msra.mxu1 %v5346_v16  ;;  %4139 = vmatprep.subr.bf16.mxu0 %v5211_v48  ;;  %v769_v46 = vld [vmem:[#allocation11 + $0x2b0] sm:$0xff]  ;;  %v5298_v48 = vcombine.low %v773_v54, %v777_v41 }
 0x221   :  { %4180 = vmatprep.subr.bf16.mxu1 %v5339_v50  ;;  %v893_v47 = vld [vmem:[#allocation11 + $0x690] sm:$0xff]  ;;  %v5426_v50 = vcombine.low %v901_v55, %v905_v56  ;;  %v5291_v51 = vcombine.high %v765_v45, %v769_v46 }
 0x222   :  { %v897_v16 = vld [vmem:[#allocation11 + $0x6b0] sm:$0xff] }
 0x223   :  { %4140 = vmatpush1.bf16.msra.mxu0 %v5210_v62  ;;  %v5419_v52 = vcombine.high %v893_v47, %v897_v16  ;;  %v757_v58 = vld [vmem:[#allocation11 + $0x250] sm:$0xff] }
 0x224   :  { %4181 = vmatpush1.bf16.msra.mxu1 %v5338_v63  ;;  %4141 = vmatprep.subr.bf16.mxu0 %v5331_v1  ;;  %v761_v60 = vld [vmem:[#allocation11 + $0x270] sm:$0xff]  ;;  %v5290_v1 = vcombine.low %v765_v45, %v769_v46 }
 0x225   :  { %4182 = vmatprep.subr.bf16.mxu1 %v5459_v5  ;;  %v885_v62 = vld [vmem:[#allocation11 + $0x650] sm:$0xff]  ;;  %v5418_v5 = vcombine.low %v893_v47, %v897_v16  ;;  %v5283_v12 = vcombine.high %v757_v58, %v761_v60 }
 0x226   :  { %v889_v63 = vld [vmem:[#allocation11 + $0x670] sm:$0xff] }
 0x227   :  { %4142 = vmatpush2.bf16.msra.mxu0 %v5330_v23  ;;  %v5411_v19 = vcombine.high %v885_v62, %v889_v63  ;;  %v749_v8 = vld [vmem:[#allocation11 + $0x210] sm:$0xff] }
 0x228   :  { %4183 = vmatpush2.bf16.msra.mxu1 %v5458_v21  ;;  %4143 = vmatprep.subr.bf16.mxu0 %v5323_v22  ;;  %v753_v20 = vld [vmem:[#allocation11 + $0x230] sm:$0xff]  ;;  %v5282_v22 = vcombine.low %v757_v58, %v761_v60 }
 0x229   :  { %4184 = vmatprep.subr.bf16.mxu1 %v5451_v13  ;;  %v877_v23 = vld [vmem:[#allocation11 + $0x610] sm:$0xff]  ;;  %v5410_v13 = vcombine.low %v885_v62, %v889_v63  ;;  %v5275_v9 = vcombine.high %v749_v8, %v753_v20 }
 0x22a   :  { %v881_v21 = vld [vmem:[#allocation11 + $0x630] sm:$0xff] }
 0x22b   :  { %4144 = vmatpush2.bf16.msra.mxu0 %v5322_v0  ;;  %v5403_v24 = vcombine.high %v877_v23, %v881_v21  ;;  %v997_v25 = vld [vmem:[#allocation11 + $0x9d0] sm:$0xff] }
 0x22c   :  { %4185 = vmatpush2.bf16.msra.mxu1 %v5450_v27  ;;  %4145 = vmatprep.subr.bf16.mxu0 %v5315_v28  ;;  %v1001_v26 = vld [vmem:[#allocation11 + $0x9f0] sm:$0xff]  ;;  %v5274_v28 = vcombine.low %v749_v8, %v753_v20 }
 0x22d   :  { %4186 = vmatprep.subr.bf16.mxu1 %v5443_v29  ;;  %v1125_v0 = vld [vmem:[#allocation11 + $0xdd0] sm:$0xff]  ;;  %v5402_v29 = vcombine.low %v877_v23, %v881_v21  ;;  %v5523_v30 = vcombine.high %v997_v25, %v1001_v26 }
 0x22e   :  { %v1129_v27 = vld [vmem:[#allocation11 + $0xdf0] sm:$0xff] }
 0x22f   :  { %4146 = vmatpush2.bf16.msra.mxu0 %v5314_v35  ;;  %v5651_v31 = vcombine.high %v1125_v0, %v1129_v27  ;;  %v989_v33 = vld [vmem:[#allocation11 + $0x990] sm:$0xff]  ;;  %v5522_v35 = vcombine.low %v997_v25, %v1001_v26 }
 0x230   :  { %4187 = vmatpush2.bf16.msra.mxu1 %v5442_v37  ;;  %4147 = vmatprep.subr.bf16.mxu0 %v5307_v38  ;;  %v993_v34 = vld [vmem:[#allocation11 + $0x9b0] sm:$0xff] }
 0x231   :  { %4188 = vmatprep.subr.bf16.mxu1 %v5435_v53  ;;  %v1117_v37 = vld [vmem:[#allocation11 + $0xd90] sm:$0xff]  ;;  %v5650_v53 = vcombine.low %v1125_v0, %v1129_v27  ;;  %v5515_v54 = vcombine.high %v989_v33, %v993_v34  ;;  %v5514_v46 = vcombine.low %v989_v33, %v993_v34 }
 0x232   :  { %v1121_v38 = vld [vmem:[#allocation11 + $0xdb0] sm:$0xff] }
 0x233   :  { %4148 = vmatpush2.bf16.msra.mxu0 %v5306_v59  ;;  %v981_v41 = vld [vmem:[#allocation11 + $0x950] sm:$0xff]  ;;  %v5643_v59 = vcombine.high %v1117_v37, %v1121_v38  ;;  %v5642_v16 = vcombine.low %v1117_v37, %v1121_v38 }
 0x234   :  { %4189 = vmatpush2.bf16.msra.mxu1 %v5434_v43  ;;  %4149 = vmatprep.subr.bf16.mxu0 %v5299_v44  ;;  %v985_v55 = vld [vmem:[#allocation11 + $0x970] sm:$0xff] }
 0x235   :  { %4190 = vmatprep.subr.bf16.mxu1 %v5427_v11  ;;  %v1109_v43 = vld [vmem:[#allocation11 + $0xd50] sm:$0xff] }
 0x236   :  { %v1113_v44 = vld [vmem:[#allocation11 + $0xd70] sm:$0xff] }
 0x237   :  { %4150 = vmatpush2.bf16.msra.mxu0 %v5298_v48  ;;  %v5507_v48 = vcombine.high %v981_v41, %v985_v55  ;;  %v973_v58 = vld [vmem:[#allocation11 + $0x910] sm:$0xff]  ;;  %v5634_v20 = vcombine.low %v1109_v43, %v1113_v44 }
 0x238   :  { %4191 = vmatpush2.bf16.msra.mxu1 %v5426_v50  ;;  %4151 = vmatprep.subr.bf16.mxu0 %v5291_v51  ;;  %v977_v60 = vld [vmem:[#allocation11 + $0x930] sm:$0xff] }
 0x239   :  { %4192 = vmatprep.subr.bf16.mxu1 %v5419_v52  ;;  %v1101_v63 = vld [vmem:[#allocation11 + $0xd10] sm:$0xff]  ;;  %v5499_v23 = vcombine.high %v973_v58, %v977_v60  ;;  %v5498_v25 = vcombine.low %v973_v58, %v977_v60 }
 0x23a   :  { %v949_v38 = vld [vmem:[#allocation11 + $0x850] sm:$0xff] }
 0x23b   :  { %4152 = vmatpush2.bf16.msra.mxu0 %v5290_v1  ;;  %v1105_v1 = vld [vmem:[#allocation11 + $0xd30] sm:$0xff] }
 0x23c   :  { %4193 = vmatpush2.bf16.msra.mxu1 %v5418_v5  ;;  %4153 = vmatprep.subr.bf16.mxu0 %v5283_v12  ;;  %v5627_v21 = vcombine.high %v1101_v63, %v1105_v1  ;;  %v5626_v26 = vcombine.low %v1101_v63, %v1105_v1  ;;  %v1189_v58 = vld [vmem:[#allocation11 + $0xfd0] sm:$0xff] }
 0x23d   :  { %4194 = vmatprep.subr.bf16.mxu1 %v5411_v19  ;;  %v5506_v19 = vcombine.low %v981_v41, %v985_v55  ;;  %v1081_v41 = vld [vmem:[#allocation11 + $0xc70] sm:$0xff] }
 0x23e   :  { %v1193_v60 = vld [vmem:[#allocation11 + $0xff0] sm:$0xff] }
 0x23f   :  { %4154 = vmatpush2.bf16.msra.mxu0 %v5282_v22  ;;  %v965_v22 = vld [vmem:[#allocation11 + $0x8d0] sm:$0xff] }
 0x240   :  { %4195 = vmatpush2.bf16.msra.mxu1 %v5410_v13  ;;  %4155 = vmatprep.subr.bf16.mxu0 %v5275_v9  ;;  %v969_v13 = vld [vmem:[#allocation11 + $0x8f0] sm:$0xff] }
 0x241   :  { %4196 = vmatprep.subr.bf16.mxu1 %v5403_v24  ;;  %v1093_v9 = vld [vmem:[#allocation11 + $0xcd0] sm:$0xff]  ;;  %v5491_v0 = vcombine.high %v965_v22, %v969_v13  ;;  %v5490_v33 = vcombine.low %v965_v22, %v969_v13 }
 0x242   :  { %v1097_v24 = vld [vmem:[#allocation11 + $0xcf0] sm:$0xff] }
 0x243   :  { %4156 = vmatpush2.bf16.msra.mxu0 %v5274_v28  ;;  %v5619_v27 = vcombine.high %v1093_v9, %v1097_v24  ;;  %v957_v28 = vld [vmem:[#allocation11 + $0x890] sm:$0xff]  ;;  %v5618_v34 = vcombine.low %v1093_v9, %v1097_v24 }
 0x244   :  { %4197 = vmatpush2.bf16.msra.mxu1 %v5402_v29  ;;  %4207 = vmatprep.subr.bf16.mxu0 %v5523_v30  ;;  %v961_v29 = vld [vmem:[#allocation11 + $0x8b0] sm:$0xff] }
 0x245   :  { %4248 = vmatprep.subr.bf16.mxu1 %v5651_v31  ;;  %v1085_v30 = vld [vmem:[#allocation11 + $0xc90] sm:$0xff]  ;;  %v5482_v55 = vcombine.low %v957_v28, %v961_v29 }
 0x246   :  { %v3913_v56 = vpop.f32.mrf.mxu0  ;;  %4158 = vmatmul.mubr.bf16.vlgmr.msra.gmra.mxu0 %v6302_v3  ;;  %v1089_v31 = vld [vmem:[#allocation11 + $0xcb0] sm:$0xff] }
 0x247   :  { %v3914_v11 = vadd.f32 %v3913_v56, %v6354_v49  ;;  %v3954_v45 = vpop.f32.mrf.mxu1  ;;  %4199 = vmatmul.mubr.bf16.vlgmr.msra.gmra.mxu1 %v6306_v15  ;;  %4208 = vmatpush1.bf16.msra.mxu0 %v5522_v35  ;;  %v5635_v49 = vcombine.high %v1109_v43, %v1113_v44  ;;  %v5483_v35 = vcombine.high %v957_v28, %v961_v29  ;;  %v941_v44 = vld [vmem:[#allocation11 + $0x810] sm:$0xff] }
 0x248   :  { %4239 = vmatprep.mubr.bf16.mxu0 %v6323_v57  ;;  %4249 = vmatpush1.bf16.msra.mxu1 %v5650_v53  ;;  %v3915_v47 = vpop.f32.mrf.mxu0  ;;  %v5611_v37 = vcombine.high %v1085_v30, %v1089_v31  ;;  %v953_v53 = vld [vmem:[#allocation11 + $0x870] sm:$0xff]  ;;  %v5610_v56 = vcombine.low %v1085_v30, %v1089_v31 }
 0x249   :  { %v6363_v50 = vadd.f32 %v3954_v45, %v3914_v11  ;;  %4280 = vmatprep.mubr.bf16.mxu1 %v6325_v42  ;;  %v3916_v51 = vadd.f32 %v3915_v47, %v6357_v2  ;;  %v3956_v52 = vpop.f32.mrf.mxu1  ;;  %4209 = vmatprep.subr.bf16.mxu0 %v5515_v54  ;;  %v1077_v54 = vld [vmem:[#allocation11 + $0xc50] sm:$0xff]  ;;  %v5474_v47 = vcombine.low %v949_v38, %v953_v53 }
 0x24a   :  { %v3917_v62 = vpop.f32.mrf.mxu0  ;;  %4250 = vmatprep.subr.bf16.mxu1 %v5643_v59  ;;  %v5475_v59 = vcombine.high %v949_v38, %v953_v53  ;;  %v5603_v43 = vcombine.high %v1077_v54, %v1081_v41  ;;  %v945_v11 = vld [vmem:[#allocation11 + $0x830] sm:$0xff] }
 0x24b   :  { %v6367_v5 = vadd.f32 %v3956_v52, %v3916_v51  ;;  %v3958_v12 = vpop.f32.mrf.mxu1  ;;  %4210 = vmatpush1.bf16.msra.mxu0 %v5514_v46  ;;  %v1069_v45 = vld [vmem:[#allocation11 + $0xc10] sm:$0xff]  ;;  %v5466_v62 = vcombine.low %v941_v44, %v945_v11 }
 0x24c   :  { %4251 = vmatpush1.bf16.msra.mxu1 %v5642_v16  ;;  %v3918_v8 = vpop.f32.mrf.mxu0  ;;  %4211 = vmatprep.subr.bf16.mxu0 %v5507_v48  ;;  %v1073_v46 = vld [vmem:[#allocation11 + $0xc30] sm:$0xff]  ;;  %v5602_v16 = vcombine.low %v1077_v54, %v1081_v41  ;;  %v5467_v48 = vcombine.high %v941_v44, %v945_v11  ;;  %v5715_v12 = vcombine.high %v1189_v58, %v1193_v60 }
 0x24d   :  { %v3959_v2 = vpop.f32.mrf.mxu1  ;;  %4252 = vmatprep.subr.bf16.mxu1 %v5635_v49  ;;  %v5595_v51 = vcombine.high %v1069_v45, %v1073_v46  ;;  %v1061_v52 = vld [vmem:[#allocation11 + $0xbd0] sm:$0xff]  ;;  %v5594_v63 = vcombine.low %v1069_v45, %v1073_v46 }
 0x24e   :  { %v1065_v49 = vld [vmem:[#allocation11 + $0xbf0] sm:$0xff] }
 0x24f   :  { %4212 = vmatpush1.bf16.msra.mxu0 %v5506_v19  ;;  %v5587_v1 = vcombine.high %v1061_v52, %v1065_v49  ;;  %v1053_v19 = vld [vmem:[#allocation11 + $0xb90] sm:$0xff]  ;;  %v5586_v2 = vcombine.low %v1061_v52, %v1065_v49 }
 0x250   :  { %4253 = vmatpush1.bf16.msra.mxu1 %v5634_v20  ;;  %4213 = vmatprep.subr.bf16.mxu0 %v5499_v23  ;;  %v1057_v8 = vld [vmem:[#allocation11 + $0xbb0] sm:$0xff] }
 0x251   :  { %4254 = vmatprep.subr.bf16.mxu1 %v5627_v21  ;;  %v1181_v20 = vld [vmem:[#allocation11 + $0xf90] sm:$0xff]  ;;  %v5714_v21 = vcombine.low %v1189_v58, %v1193_v60  ;;  %v5579_v22 = vcombine.high %v1053_v19, %v1057_v8 }
 0x252   :  { %v1185_v23 = vld [vmem:[#allocation11 + $0xfb0] sm:$0xff] }
 0x253   :  { %4214 = vmatpush1.bf16.msra.mxu0 %v5498_v25  ;;  %v5707_v13 = vcombine.high %v1181_v20, %v1185_v23  ;;  %v1045_v9 = vld [vmem:[#allocation11 + $0xb50] sm:$0xff] }
 0x254   :  { %4255 = vmatpush1.bf16.msra.mxu1 %v5626_v26  ;;  %4215 = vmatprep.subr.bf16.mxu0 %v5491_v0  ;;  %v1049_v24 = vld [vmem:[#allocation11 + $0xb70] sm:$0xff]  ;;  %v5578_v0 = vcombine.low %v1053_v19, %v1057_v8 }
 0x255   :  { %4256 = vmatprep.subr.bf16.mxu1 %v5619_v27  ;;  %v1173_v25 = vld [vmem:[#allocation11 + $0xf50] sm:$0xff]  ;;  %v5706_v27 = vcombine.low %v1181_v20, %v1185_v23  ;;  %v5571_v28 = vcombine.high %v1045_v9, %v1049_v24 }
 0x256   :  { %v1177_v26 = vld [vmem:[#allocation11 + $0xf70] sm:$0xff] }
 0x257   :  { %4216 = vmatpush1.bf16.msra.mxu0 %v5490_v33  ;;  %v5699_v29 = vcombine.high %v1173_v25, %v1177_v26  ;;  %v1037_v30 = vld [vmem:[#allocation11 + $0xb10] sm:$0xff] }
 0x258   :  { %4257 = vmatpush1.bf16.msra.mxu1 %v5618_v34  ;;  %4217 = vmatprep.subr.bf16.mxu0 %v5483_v35  ;;  %v1041_v31 = vld [vmem:[#allocation11 + $0xb30] sm:$0xff]  ;;  %v5570_v35 = vcombine.low %v1045_v9, %v1049_v24 }
 0x259   :  { %4258 = vmatprep.subr.bf16.mxu1 %v5611_v37  ;;  %v1165_v33 = vld [vmem:[#allocation11 + $0xf10] sm:$0xff]  ;;  %v5698_v37 = vcombine.low %v1173_v25, %v1177_v26  ;;  %v5563_v38 = vcombine.high %v1037_v30, %v1041_v31  ;;  %v742_v25 = vld [vmem:[#allocation11 + $0x1d8] sm:$0xff] }
 0x25a   :  { %v1169_v34 = vld [vmem:[#allocation11 + $0xf30] sm:$0xff]  ;;  %v746_v26 = vld [vmem:[#allocation11 + $0x1f8] sm:$0xff] }
 0x25b   :  { %4218 = vmatpush1.bf16.msra.mxu0 %v5482_v55  ;;  %v5691_v53 = vcombine.high %v1165_v33, %v1169_v34  ;;  %v1029_v54 = vld [vmem:[#allocation11 + $0xad0] sm:$0xff] }
 0x25c   :  { %4259 = vmatpush1.bf16.msra.mxu1 %v5610_v56  ;;  %4219 = vmatprep.subr.bf16.mxu0 %v5475_v59  ;;  %v1033_v41 = vld [vmem:[#allocation11 + $0xaf0] sm:$0xff]  ;;  %v5562_v59 = vcombine.low %v1037_v30, %v1041_v31  ;;  %v5269_v30 = vcombine.high %v742_v25, %v746_v26 }
 0x25d   :  { %4260 = vmatprep.subr.bf16.mxu1 %v5603_v43  ;;  %v1157_v55 = vld [vmem:[#allocation11 + $0xed0] sm:$0xff]  ;;  %v5690_v43 = vcombine.low %v1165_v33, %v1169_v34  ;;  %v5555_v44 = vcombine.high %v1029_v54, %v1033_v41  ;;  %v734_v33 = vld [vmem:[#allocation11 + $0x198] sm:$0xff] }
 0x25e   :  { %v1161_v56 = vld [vmem:[#allocation11 + $0xef0] sm:$0xff]  ;;  %v738_v34 = vld [vmem:[#allocation11 + $0x1b8] sm:$0xff] }
 0x25f   :  { %4220 = vmatpush1.bf16.msra.mxu0 %v5474_v47  ;;  %v5683_v11 = vcombine.high %v1157_v55, %v1161_v56  ;;  %v1021_v45 = vld [vmem:[#allocation11 + $0xa90] sm:$0xff] }
 0x260   :  { %4261 = vmatpush1.bf16.msra.mxu1 %v5602_v16  ;;  %4221 = vmatprep.subr.bf16.mxu0 %v5467_v48  ;;  %v1025_v46 = vld [vmem:[#allocation11 + $0xab0] sm:$0xff]  ;;  %v5554_v48 = vcombine.low %v1029_v54, %v1033_v41  ;;  %v1212_v41 = vrot.slane %v6343_v10, %v633_v18 }
 0x261   :  { %4262 = vmatprep.subr.bf16.mxu1 %v5595_v51  ;;  %v1149_v47 = vld [vmem:[#allocation11 + $0xe90] sm:$0xff]  ;;  %v5682_v51 = vcombine.low %v1157_v55, %v1161_v56  ;;  %v5547_v52 = vcombine.high %v1021_v45, %v1025_v46  ;;  %v5261_v55 = vcombine.high %v734_v33, %v738_v34  ;;  %v726_v56 = vld [vmem:[#allocation11 + $0x158] sm:$0xff] }
 0x262   :  { %v1153_v16 = vld [vmem:[#allocation11 + $0xeb0] sm:$0xff] }
 0x263   :  { %4222 = vmatpush1.bf16.msra.mxu0 %v5466_v62  ;;  %v5675_v49 = vcombine.high %v1149_v47, %v1153_v16  ;;  %v1013_v58 = vld [vmem:[#allocation11 + $0xa50] sm:$0xff] }
 0x264   :  { %4263 = vmatpush1.bf16.msra.mxu1 %v5594_v63  ;;  %4223 = vmatprep.subr.bf16.mxu0 %v5587_v1  ;;  %v1017_v60 = vld [vmem:[#allocation11 + $0xa70] sm:$0xff]  ;;  %v5546_v1 = vcombine.low %v1021_v45, %v1025_v46 }
 0x265   :  { %4264 = vmatprep.subr.bf16.mxu1 %v5715_v12  ;;  %v1141_v62 = vld [vmem:[#allocation11 + $0xe50] sm:$0xff]  ;;  %v5674_v12 = vcombine.low %v1149_v47, %v1153_v16  ;;  %v5539_v19 = vcombine.high %v1013_v58, %v1017_v60  ;;  %v5260_v47 = vcombine.low %v734_v33, %v738_v34 }
 0x266   :  { %v1145_v63 = vld [vmem:[#allocation11 + $0xe70] sm:$0xff] }
 0x267   :  { %4224 = vmatpush2.bf16.msra.mxu0 %v5586_v2  ;;  %v5667_v8 = vcombine.high %v1141_v62, %v1145_v63  ;;  %v1005_v20 = vld [vmem:[#allocation11 + $0xa10] sm:$0xff] }
 0x268   :  { %4265 = vmatpush2.bf16.msra.mxu1 %v5714_v21  ;;  %4225 = vmatprep.subr.bf16.mxu0 %v5579_v22  ;;  %v1009_v23 = vld [vmem:[#allocation11 + $0xa30] sm:$0xff]  ;;  %v5538_v22 = vcombine.low %v1013_v58, %v1017_v60  ;;  %v718_v58 = vld [vmem:[#allocation11 + $0x118] sm:$0xff] }
 0x269   :  { %4266 = vmatprep.subr.bf16.mxu1 %v5707_v13  ;;  %v1133_v2 = vld [vmem:[#allocation11 + $0xe10] sm:$0xff]  ;;  %v5666_v13 = vcombine.low %v1141_v62, %v1145_v63  ;;  %v5531_v9 = vcombine.high %v1005_v20, %v1009_v23  ;;  %v722_v60 = vld [vmem:[#allocation11 + $0x138] sm:$0xff] }
 0x26a   :  { %v1137_v21 = vld [vmem:[#allocation11 + $0xe30] sm:$0xff]  ;;  %v846_v63 = vld [vmem:[#allocation11 + $0x518] sm:$0xff] }
 0x26b   :  { %4226 = vmatpush2.bf16.msra.mxu0 %v5578_v0  ;;  %v5659_v24 = vcombine.high %v1133_v2, %v1137_v21  ;;  %v870_v0 = vld [vmem:[#allocation11 + $0x5d8] sm:$0xff] }
 0x26c   :  { %4267 = vmatpush2.bf16.msra.mxu1 %v5706_v27  ;;  %4227 = vmatprep.subr.bf16.mxu0 %v5571_v28  ;;  %v874_v27 = vld [vmem:[#allocation11 + $0x5f8] sm:$0xff]  ;;  %v5530_v28 = vcombine.low %v1005_v20, %v1009_v23 }
 0x26d   :  { %4268 = vmatprep.subr.bf16.mxu1 %v5699_v29  ;;  %v5658_v29 = vcombine.low %v1133_v2, %v1137_v21  ;;  %v5397_v31 = vcombine.high %v870_v0, %v874_v27  ;;  %v5396_v54 = vcombine.low %v870_v0, %v874_v27  ;;  %v710_v21 = vld [vmem:[#allocation11 + $0xd8] sm:$0xff] }
 0x26e   :  { %v702_v27 = vld [vmem:[#allocation11 + $0x98] sm:$0xff] }
 0x26f   :  { %4228 = vmatpush2.bf16.msra.mxu0 %v5570_v35  ;;  %v1208_v35 = vrot.slane %v6343_v10, %v629_v14  ;;  %v858_v14 = vld [vmem:[#allocation11 + $0x578] sm:$0xff] }
 0x270   :  { %4269 = vmatpush2.bf16.msra.mxu1 %v5698_v37  ;;  %4229 = vmatprep.subr.bf16.mxu0 %v5563_v38  ;;  %v5268_v37 = vcombine.low %v742_v25, %v746_v26  ;;  %v862_v38 = vld [vmem:[#allocation11 + $0x598] sm:$0xff] }
 0x271   :  { %4270 = vmatprep.subr.bf16.mxu1 %v5691_v53  ;;  %v866_v53 = vld [vmem:[#allocation11 + $0x5b8] sm:$0xff] }
 0x272   :  { %v5388_v18 = vcombine.low %v862_v38, %v866_v53 }
 0x273   :  { %4230 = vmatpush2.bf16.msra.mxu0 %v5562_v59  ;;  %v730_v59 = vld [vmem:[#allocation11 + $0x178] sm:$0xff] }
 0x274   :  { %4271 = vmatpush2.bf16.msra.mxu1 %v5690_v43  ;;  %4231 = vmatprep.subr.bf16.mxu0 %v5555_v44  ;;  %v5389_v44 = vcombine.high %v862_v38, %v866_v53  ;;  %v5253_v10 = vcombine.high %v726_v56, %v730_v59  ;;  %v698_v38 = vld [vmem:[#allocation11 + $0x78] sm:$0xff] }
 0x275   :  { %4272 = vmatprep.subr.bf16.mxu1 %v5683_v11  ;;  %v854_v11 = vld [vmem:[#allocation11 + $0x558] sm:$0xff] }
 0x276   :  { %v5380_v20 = vcombine.low %v854_v11, %v858_v14  ;;  %v822_v53 = vld [vmem:[#allocation11 + $0x458] sm:$0xff] }
 0x277   :  { %4232 = vmatpush2.bf16.msra.mxu0 %v5554_v48 }
 0x278   :  { %4273 = vmatpush2.bf16.msra.mxu1 %v5682_v51  ;;  %4233 = vmatprep.subr.bf16.mxu0 %v5547_v52 }
 0x279   :  { %4274 = vmatprep.subr.bf16.mxu1 %v5675_v49  ;;  %v5381_v49 = vcombine.high %v854_v11, %v858_v14  ;;  %v814_v11 = vld [vmem:[#allocation11 + $0x418] sm:$0xff] }
 0x27a   :  { %v818_v14 = vld [vmem:[#allocation11 + $0x438] sm:$0xff] }
 0x27b   :  { %4234 = vmatpush2.bf16.msra.mxu0 %v5546_v1  ;;  %v850_v1 = vld [vmem:[#allocation11 + $0x538] sm:$0xff] }
 0x27c   :  { %4275 = vmatpush2.bf16.msra.mxu1 %v5674_v12  ;;  %4235 = vmatprep.subr.bf16.mxu0 %v5539_v19  ;;  %v5252_v19 = vcombine.low %v726_v56, %v730_v59  ;;  %v5373_v2 = vcombine.high %v846_v63, %v850_v1  ;;  %v5372_v25 = vcombine.low %v846_v63, %v850_v1  ;;  %v798_v63 = vld [vmem:[#allocation11 + $0x398] sm:$0xff] }
 0x27d   :  { %4276 = vmatprep.subr.bf16.mxu1 %v5667_v8  ;;  %v802_v1 = vld [vmem:[#allocation11 + $0x3b8] sm:$0xff] }
 0x27f   :  { %4236 = vmatpush2.bf16.msra.mxu0 %v5538_v22  ;;  %v714_v22 = vld [vmem:[#allocation11 + $0xf8] sm:$0xff] }
 0x280   :  { %4277 = vmatpush2.bf16.msra.mxu1 %v5666_v13  ;;  %4237 = vmatprep.subr.bf16.mxu0 %v5531_v9  ;;  %v838_v13 = vld [vmem:[#allocation11 + $0x4d8] sm:$0xff]  ;;  %v5237_v26 = vcombine.high %v710_v21, %v714_v22 }
 0x281   :  { %4278 = vmatprep.subr.bf16.mxu1 %v5659_v24  ;;  %v842_v9 = vld [vmem:[#allocation11 + $0x4f8] sm:$0xff]  ;;  %v5244_v24 = vcombine.low %v718_v58, %v722_v60 }
 0x282   :  { %v5365_v0 = vcombine.high %v838_v13, %v842_v9  ;;  %v5364_v33 = vcombine.low %v838_v13, %v842_v9  ;;  %v922_v13 = vld [vmem:[#allocation11 + $0x778] sm:$0xff]  ;;  %v5324_v9 = vcombine.low %v798_v63, %v802_v1 }
 0x283   :  { %4238 = vmatpush2.bf16.msra.mxu0 %v5530_v28  ;;  %v706_v28 = vld [vmem:[#allocation11 + $0xb8] sm:$0xff] }
 0x284   :  { %4279 = vmatpush2.bf16.msra.mxu1 %v5658_v29  ;;  %4289 = vmatprep.subr.bf16.mxu0 %v5269_v30  ;;  %v830_v29 = vld [vmem:[#allocation11 + $0x498] sm:$0xff]  ;;  %v5229_v34 = vcombine.high %v702_v27, %v706_v28 }
 0x285   :  { %4330 = vmatprep.subr.bf16.mxu1 %v5397_v31  ;;  %v834_v30 = vld [vmem:[#allocation11 + $0x4b8] sm:$0xff]  ;;  %v5236_v31 = vcombine.low %v710_v21, %v714_v22 }
 0x286   :  { %v3995_v43 = vpop.f32.mrf.mxu0  ;;  %4240 = vmatmul.mubr.bf16.vlgmr.msra.gmra.mxu0 %v6331_v6  ;;  %v794_v21 = vld [vmem:[#allocation11 + $0x378] sm:$0xff] }
 0x287   :  { %v3996_v45 = vadd.f32 %v3995_v43, %v1208_v35  ;;  %v4036_v46 = vpop.f32.mrf.mxu1  ;;  %4281 = vmatmul.mubr.bf16.vlgmr.msra.gmra.mxu1 %v6333_v17  ;;  %4290 = vmatpush1.bf16.msra.mxu0 %v5268_v37  ;;  %v5357_v35 = vcombine.high %v830_v29, %v834_v30  ;;  %v694_v37 = vld [vmem:[#allocation11 + $0x58] sm:$0xff] }
 0x288   :  { %4321 = vmatprep.mubr.bf16.mxu0 %v6296_v61  ;;  %4331 = vmatpush1.bf16.msra.mxu1 %v5396_v54  ;;  %v3997_v16 = vpop.f32.mrf.mxu0  ;;  %v826_v54 = vld [vmem:[#allocation11 + $0x478] sm:$0xff]  ;;  %v5221_v56 = vcombine.high %v694_v37, %v698_v38 }
 0x289   :  { %v6378_v48 = vadd.f32 %v4036_v46, %v3996_v45  ;;  %4362 = vmatprep.mubr.bf16.mxu1 %v6304_v4  ;;  %v3998_v51 = vadd.f32 %v3997_v16, %v1212_v41  ;;  %v4038_v52 = vpop.f32.mrf.mxu1  ;;  %4291 = vmatprep.subr.bf16.mxu0 %v5261_v55  ;;  %v5245_v4 = vcombine.high %v718_v58, %v722_v60  ;;  %v686_v43 = vld [vmem:[#allocation11 + $0x18] sm:$0xff] }
 0x28a   :  { %v3999_v62 = vpop.f32.mrf.mxu0  ;;  %4332 = vmatprep.subr.bf16.mxu1 %v5389_v44  ;;  %v5228_v41 = vcombine.low %v702_v27, %v706_v28  ;;  %v5356_v55 = vcombine.low %v830_v29, %v834_v30  ;;  %v5349_v59 = vcombine.high %v822_v53, %v826_v54  ;;  %v690_v44 = vld [vmem:[#allocation11 + $0x38] sm:$0xff]  ;;  %v5220_v45 = vcombine.low %v694_v37, %v698_v38 }
 0x28b   :  { %v6381_v12 = vadd.f32 %v4038_v52, %v3998_v51  ;;  %v4040_v61 = vpop.f32.mrf.mxu1  ;;  %4292 = vmatpush1.bf16.msra.mxu0 %v5260_v47  ;;  %v5348_v46 = vcombine.low %v822_v53, %v826_v54  ;;  %v5213_v47 = vcombine.high %v686_v43, %v690_v44  ;;  %v5341_v16 = vcombine.high %v814_v11, %v818_v14  ;;  %v934_v51 = vld [vmem:[#allocation11 + $0x7d8] sm:$0xff] }
 0x28c   :  { %4333 = vmatpush1.bf16.msra.mxu1 %v5388_v18  ;;  %v4000_v8 = vpop.f32.mrf.mxu0  ;;  %4293 = vmatprep.subr.bf16.mxu0 %v5253_v10  ;;  %v806_v18 = vld [vmem:[#allocation11 + $0x3d8] sm:$0xff]  ;;  %v5340_v58 = vcombine.low %v814_v11, %v818_v14 }
 0x28d   :  { %v4041_v23 = vpop.f32.mrf.mxu1  ;;  %4334 = vmatprep.subr.bf16.mxu1 %v5381_v49  ;;  %v810_v10 = vld [vmem:[#allocation11 + $0x3f8] sm:$0xff]  ;;  %v5212_v49 = vcombine.low %v686_v43, %v690_v44 }
 0x28e   :  { %v938_v52 = vld [vmem:[#allocation11 + $0x7f8] sm:$0xff]  ;;  %v5333_v60 = vcombine.high %v806_v18, %v810_v10  ;;  %v5332_v8 = vcombine.low %v806_v18, %v810_v10 }
 0x28f   :  { %4294 = vmatpush1.bf16.msra.mxu0 %v5252_v19  ;;  %v5461_v62 = vcombine.high %v934_v51, %v938_v52  ;;  %v926_v61 = vld [vmem:[#allocation11 + $0x798] sm:$0xff] }
 0x290   :  { %4335 = vmatpush1.bf16.msra.mxu1 %v5380_v20  ;;  %4295 = vmatprep.subr.bf16.mxu0 %v5245_v4  ;;  %v930_v19 = vld [vmem:[#allocation11 + $0x7b8] sm:$0xff]  ;;  %v5460_v20 = vcombine.low %v934_v51, %v938_v52  ;;  %v5325_v4 = vcombine.high %v798_v63, %v802_v1 }
 0x291   :  { %4336 = vmatprep.subr.bf16.mxu1 %v5373_v2  ;;  %v5453_v23 = vcombine.high %v926_v61, %v930_v19  ;;  %v790_v2 = vld [vmem:[#allocation11 + $0x358] sm:$0xff] }
 0x292   :  { %v918_v22 = vld [vmem:[#allocation11 + $0x758] sm:$0xff]  ;;  %v5316_v30 = vcombine.low %v790_v2, %v794_v21 }
 0x293   :  { %4296 = vmatpush1.bf16.msra.mxu0 %v5244_v24  ;;  %v5452_v24 = vcombine.low %v926_v61, %v930_v19  ;;  %v786_v27 = vld [vmem:[#allocation11 + $0x338] sm:$0xff] }
 0x294   :  { %4337 = vmatpush1.bf16.msra.mxu1 %v5372_v25  ;;  %4297 = vmatprep.subr.bf16.mxu0 %v5237_v26  ;;  %v5317_v25 = vcombine.high %v790_v2, %v794_v21  ;;  %v5445_v26 = vcombine.high %v918_v22, %v922_v13  ;;  %v910_v28 = vld [vmem:[#allocation11 + $0x718] sm:$0xff] }
 0x295   :  { %4338 = vmatprep.subr.bf16.mxu1 %v5365_v0  ;;  %v782_v0 = vld [vmem:[#allocation11 + $0x318] sm:$0xff] }
 0x296   :  { %v914_v29 = vld [vmem:[#allocation11 + $0x738] sm:$0xff]  ;;  %v5308_v54 = vcombine.low %v782_v0, %v786_v27 }
 0x297   :  { %4298 = vmatpush1.bf16.msra.mxu0 %v5236_v31  ;;  %v5444_v31 = vcombine.low %v918_v22, %v922_v13  ;;  %v778_v37 = vld [vmem:[#allocation11 + $0x2f8] sm:$0xff] }
 0x298   :  { %4339 = vmatpush1.bf16.msra.mxu1 %v5364_v33  ;;  %4299 = vmatprep.subr.bf16.mxu0 %v5229_v34  ;;  %v5309_v33 = vcombine.high %v782_v0, %v786_v27  ;;  %v5437_v34 = vcombine.high %v910_v28, %v914_v29  ;;  %v902_v38 = vld [vmem:[#allocation11 + $0x6d8] sm:$0xff] }
 0x299   :  { %4340 = vmatprep.subr.bf16.mxu1 %v5357_v35  ;;  %v774_v35 = vld [vmem:[#allocation11 + $0x2d8] sm:$0xff] }
 0x29a   :  { %v906_v53 = vld [vmem:[#allocation11 + $0x6f8] sm:$0xff]  ;;  %v5300_v14 = vcombine.low %v774_v35, %v778_v37 }
 0x29b   :  { %4300 = vmatpush1.bf16.msra.mxu0 %v5228_v41  ;;  %v5436_v41 = vcombine.low %v910_v28, %v914_v29  ;;  %v770_v43 = vld [vmem:[#allocation11 + $0x2b8] sm:$0xff] }
 0x29c   :  { %4341 = vmatpush1.bf16.msra.mxu1 %v5356_v55  ;;  %4301 = vmatprep.subr.bf16.mxu0 %v5221_v56  ;;  %v5301_v55 = vcombine.high %v774_v35, %v778_v37  ;;  %v5429_v56 = vcombine.high %v902_v38, %v906_v53  ;;  %v894_v44 = vld [vmem:[#allocation11 + $0x698] sm:$0xff] }
 0x29d   :  { %4342 = vmatprep.subr.bf16.mxu1 %v5349_v59  ;;  %v766_v59 = vld [vmem:[#allocation11 + $0x298] sm:$0xff] }
 0x29e   :  { %v898_v11 = vld [vmem:[#allocation11 + $0x6b8] sm:$0xff]  ;;  %v5292_v52 = vcombine.low %v766_v59, %v770_v43 }
 0x29f   :  { %4302 = vmatpush1.bf16.msra.mxu0 %v5220_v45  ;;  %v5428_v45 = vcombine.low %v902_v38, %v906_v53  ;;  %v762_v18 = vld [vmem:[#allocation11 + $0x278] sm:$0xff] }
 0x2a0   :  { %4343 = vmatpush1.bf16.msra.mxu1 %v5348_v46  ;;  %4303 = vmatprep.subr.bf16.mxu0 %v5213_v47  ;;  %v5293_v46 = vcombine.high %v766_v59, %v770_v43  ;;  %v5421_v47 = vcombine.high %v894_v44, %v898_v11  ;;  %v886_v10 = vld [vmem:[#allocation11 + $0x658] sm:$0xff] }
 0x2a1   :  { %4344 = vmatprep.subr.bf16.mxu1 %v5341_v16  ;;  %v758_v16 = vld [vmem:[#allocation11 + $0x258] sm:$0xff] }
 0x2a2   :  { %v890_v51 = vld [vmem:[#allocation11 + $0x678] sm:$0xff]  ;;  %v5284_v19 = vcombine.low %v758_v16, %v762_v18 }
 0x2a3   :  { %4304 = vmatpush1.bf16.msra.mxu0 %v5212_v49  ;;  %v5420_v49 = vcombine.low %v894_v44, %v898_v11  ;;  %v754_v63 = vld [vmem:[#allocation11 + $0x238] sm:$0xff] }
 0x2a4   :  { %4345 = vmatpush1.bf16.msra.mxu1 %v5340_v58  ;;  %4305 = vmatprep.subr.bf16.mxu0 %v5333_v60  ;;  %v5285_v58 = vcombine.high %v758_v16, %v762_v18  ;;  %v5413_v60 = vcombine.high %v886_v10, %v890_v51  ;;  %v878_v1 = vld [vmem:[#allocation11 + $0x618] sm:$0xff] }
 0x2a5   :  { %4346 = vmatprep.subr.bf16.mxu1 %v5461_v62  ;;  %v750_v62 = vld [vmem:[#allocation11 + $0x218] sm:$0xff] }
 0x2a6   :  { %v882_v61 = vld [vmem:[#allocation11 + $0x638] sm:$0xff]  ;;  %v5276_v13 = vcombine.low %v750_v62, %v754_v63 }
 0x2a7   :  { %4306 = vmatpush2.bf16.msra.mxu0 %v5332_v8  ;;  %v5412_v8 = vcombine.low %v886_v10, %v890_v51  ;;  %v1002_v2 = vld [vmem:[#allocation11 + $0x9f8] sm:$0xff] }
 0x2a8   :  { %4347 = vmatpush2.bf16.msra.mxu1 %v5460_v20  ;;  %4307 = vmatprep.subr.bf16.mxu0 %v5325_v4  ;;  %v5277_v20 = vcombine.high %v750_v62, %v754_v63  ;;  %v5405_v4 = vcombine.high %v878_v1, %v882_v61  ;;  %v1126_v21 = vld [vmem:[#allocation11 + $0xdd8] sm:$0xff] }
 0x2a9   :  { %4348 = vmatprep.subr.bf16.mxu1 %v5453_v23  ;;  %v998_v23 = vld [vmem:[#allocation11 + $0x9d8] sm:$0xff] }
 0x2aa   :  { %v1130_v22 = vld [vmem:[#allocation11 + $0xdf8] sm:$0xff]  ;;  %v5524_v27 = vcombine.low %v998_v23, %v1002_v2 }
 0x2ab   :  { %4308 = vmatpush2.bf16.msra.mxu0 %v5324_v9  ;;  %v5404_v9 = vcombine.low %v878_v1, %v882_v61  ;;  %v994_v0 = vld [vmem:[#allocation11 + $0x9b8] sm:$0xff] }
 0x2ac   :  { %4349 = vmatpush2.bf16.msra.mxu1 %v5452_v24  ;;  %4309 = vmatprep.subr.bf16.mxu0 %v5317_v25  ;;  %v5525_v24 = vcombine.high %v998_v23, %v1002_v2  ;;  %v5653_v25 = vcombine.high %v1126_v21, %v1130_v22  ;;  %v1118_v28 = vld [vmem:[#allocation11 + $0xd98] sm:$0xff] }
 0x2ad   :  { %4350 = vmatprep.subr.bf16.mxu1 %v5445_v26  ;;  %v990_v26 = vld [vmem:[#allocation11 + $0x998] sm:$0xff] }
 0x2ae   :  { %v1122_v29 = vld [vmem:[#allocation11 + $0xdb8] sm:$0xff] }
 0x2af   :  { %4310 = vmatpush2.bf16.msra.mxu0 %v5316_v30  ;;  %v5652_v30 = vcombine.low %v1126_v21, %v1130_v22  ;;  %v5645_v37 = vcombine.high %v1118_v28, %v1122_v29  ;;  %v1110_v38 = vld [vmem:[#allocation11 + $0xd58] sm:$0xff]  ;;  %v5644_v59 = vcombine.low %v1118_v28, %v1122_v29 }
 0x2b0   :  { %4351 = vmatpush2.bf16.msra.mxu1 %v5444_v31  ;;  %4311 = vmatprep.subr.bf16.mxu0 %v5309_v33  ;;  %v5517_v31 = vcombine.high %v990_v26, %v994_v0  ;;  %v982_v33 = vld [vmem:[#allocation11 + $0x958] sm:$0xff] }
 0x2b1   :  { %4352 = vmatprep.subr.bf16.mxu1 %v5437_v34  ;;  %v986_v34 = vld [vmem:[#allocation11 + $0x978] sm:$0xff] }
 0x2b2   :  { %v1114_v53 = vld [vmem:[#allocation11 + $0xd78] sm:$0xff]  ;;  %v5509_v43 = vcombine.high %v982_v33, %v986_v34 }
 0x2b3   :  { %4312 = vmatpush2.bf16.msra.mxu0 %v5308_v54  ;;  %v974_v11 = vld [vmem:[#allocation11 + $0x918] sm:$0xff]  ;;  %v5636_v18 = vcombine.low %v1110_v38, %v1114_v53 }
 0x2b4   :  { %4353 = vmatpush2.bf16.msra.mxu1 %v5436_v41  ;;  %4313 = vmatprep.subr.bf16.mxu0 %v5301_v55  ;;  %v5516_v55 = vcombine.low %v990_v26, %v994_v0  ;;  %v942_v29 = vld [vmem:[#allocation11 + $0x818] sm:$0xff] }
 0x2b5   :  { %4354 = vmatprep.subr.bf16.mxu1 %v5429_v56 }
 0x2b7   :  { %4314 = vmatpush2.bf16.msra.mxu0 %v5300_v14  ;;  %v978_v14 = vld [vmem:[#allocation11 + $0x938] sm:$0xff] }
 0x2b8   :  { %4355 = vmatpush2.bf16.msra.mxu1 %v5428_v45  ;;  %4315 = vmatprep.subr.bf16.mxu0 %v5293_v46  ;;  %v1102_v45 = vld [vmem:[#allocation11 + $0xd18] sm:$0xff]  ;;  %v5501_v10 = vcombine.high %v974_v11, %v978_v14  ;;  %v5500_v62 = vcombine.low %v974_v11, %v978_v14 }
 0x2b9   :  { %4356 = vmatprep.subr.bf16.mxu1 %v5421_v47  ;;  %v1106_v46 = vld [vmem:[#allocation11 + $0xd38] sm:$0xff]  ;;  %v5508_v47 = vcombine.low %v982_v33, %v986_v34 }
 0x2ba   :  { %v5628_v63 = vcombine.low %v1102_v45, %v1106_v46  ;;  %v1074_v33 = vld [vmem:[#allocation11 + $0xc38] sm:$0xff] }
 0x2bb   :  { %4316 = vmatpush2.bf16.msra.mxu0 %v5292_v52  ;;  %v966_v52 = vld [vmem:[#allocation11 + $0x8d8] sm:$0xff] }
 0x2bc   :  { %4357 = vmatpush2.bf16.msra.mxu1 %v5420_v49  ;;  %4317 = vmatprep.subr.bf16.mxu0 %v5285_v58  ;;  %v970_v49 = vld [vmem:[#allocation11 + $0x8f8] sm:$0xff] }
 0x2bd   :  { %4358 = vmatprep.subr.bf16.mxu1 %v5413_v60  ;;  %v1094_v58 = vld [vmem:[#allocation11 + $0xcd8] sm:$0xff]  ;;  %v5493_v1 = vcombine.high %v966_v52, %v970_v49  ;;  %v5492_v23 = vcombine.low %v966_v52, %v970_v49 }
 0x2be   :  { %v1098_v60 = vld [vmem:[#allocation11 + $0xcf8] sm:$0xff] }
 0x2bf   :  { %4318 = vmatpush2.bf16.msra.mxu0 %v5284_v19  ;;  %v5621_v61 = vcombine.high %v1094_v58, %v1098_v60  ;;  %v958_v19 = vld [vmem:[#allocation11 + $0x898] sm:$0xff]  ;;  %v5620_v2 = vcombine.low %v1094_v58, %v1098_v60 }
 0x2c0   :  { %4359 = vmatpush2.bf16.msra.mxu1 %v5412_v8  ;;  %4319 = vmatprep.subr.bf16.mxu0 %v5277_v20  ;;  %v962_v8 = vld [vmem:[#allocation11 + $0x8b8] sm:$0xff] }
 0x2c1   :  { %4360 = vmatprep.subr.bf16.mxu1 %v5405_v4  ;;  %v1086_v20 = vld [vmem:[#allocation11 + $0xc98] sm:$0xff]  ;;  %v5485_v21 = vcombine.high %v958_v19, %v962_v8  ;;  %v5484_v26 = vcombine.low %v958_v19, %v962_v8 }
 0x2c2   :  { %v1090_v4 = vld [vmem:[#allocation11 + $0xcb8] sm:$0xff] }
 0x2c3   :  { %4320 = vmatpush2.bf16.msra.mxu0 %v5276_v13  ;;  %v5613_v22 = vcombine.high %v1086_v20, %v1090_v4  ;;  %v950_v13 = vld [vmem:[#allocation11 + $0x858] sm:$0xff]  ;;  %v5612_v0 = vcombine.low %v1086_v20, %v1090_v4 }
 0x2c4   :  { %4361 = vmatpush2.bf16.msra.mxu1 %v5404_v9  ;;  %4371 = vmatprep.subr.bf16.mxu0 %v5525_v24  ;;  %v954_v9 = vld [vmem:[#allocation11 + $0x878] sm:$0xff] }
 0x2c5   :  { %4412 = vmatprep.subr.bf16.mxu1 %v5653_v25  ;;  %v1078_v24 = vld [vmem:[#allocation11 + $0xc58] sm:$0xff]  ;;  %v5476_v34 = vcombine.low %v950_v13, %v954_v9 }
 0x2c6   :  { %v4077_v35 = vpop.f32.mrf.mxu0  ;;  %4322 = vmatmul.mubr.bf16.vlgmr.msra.gmra.mxu0 %v6302_v3  ;;  %v1082_v25 = vld [vmem:[#allocation11 + $0xc78] sm:$0xff] }
 0x2c7   :  { %v4078_v54 = vadd.f32 %v4077_v35, %v6378_v48  ;;  %v4118_v41 = vpop.f32.mrf.mxu1  ;;  %4363 = vmatmul.mubr.bf16.vlgmr.msra.gmra.mxu1 %v6306_v15  ;;  %4372 = vmatpush1.bf16.msra.mxu0 %v5524_v27  ;;  %v5637_v48 = vcombine.high %v1110_v38, %v1114_v53  ;;  %v5477_v27 = vcombine.high %v950_v13, %v954_v9  ;;  %v1062_v53 = vld [vmem:[#allocation11 + $0xbd8] sm:$0xff] }
 0x2c8   :  { %4403 = vmatprep.mubr.bf16.mxu0 %v6323_v57  ;;  %4413 = vmatpush1.bf16.msra.mxu1 %v5652_v30  ;;  %v6387_v56 = vpop.f32.mrf.mxu0  ;;  %v5605_v28 = vcombine.high %v1078_v24, %v1082_v25  ;;  %v946_v30 = vld [vmem:[#allocation11 + $0x838] sm:$0xff]  ;;  %v5604_v35 = vcombine.low %v1078_v24, %v1082_v25 }
 0x2c9   :  { %v6389_v44 = vadd.f32 %v4118_v41, %v4078_v54  ;;  %4444 = vmatprep.mubr.bf16.mxu1 %v6325_v42  ;;  %v6392_v3 = vpop.f32.mrf.mxu1  ;;  %4373 = vmatprep.subr.bf16.mxu0 %v5517_v31  ;;  %v5629_v42 = vcombine.high %v1102_v45, %v1106_v46  ;;  %v1070_v31 = vld [vmem:[#allocation11 + $0xc18] sm:$0xff] }
 0x2ca   :  { %v4081_v15 = vpop.f32.mrf.mxu0  ;;  %4414 = vmatprep.subr.bf16.mxu1 %v5645_v37  ;;  %v5469_v37 = vcombine.high %v942_v29, %v946_v30  ;;  %v5597_v38 = vcombine.high %v1070_v31, %v1074_v33  ;;  %v1066_v54 = vld [vmem:[#allocation11 + $0xbf8] sm:$0xff] }
 0x2cb   :  { %v4122_v57 = vpop.f32.mrf.mxu1  ;;  %4374 = vmatpush1.bf16.msra.mxu0 %v5516_v55  ;;  %v1190_v41 = vld [vmem:[#allocation11 + $0xfd8] sm:$0xff] }
 0x2cc   :  { %4415 = vmatpush1.bf16.msra.mxu1 %v5644_v59  ;;  %v4082_v16 = vpop.f32.mrf.mxu0  ;;  %4375 = vmatprep.subr.bf16.mxu0 %v5509_v43  ;;  %v1194_v55 = vld [vmem:[#allocation11 + $0xff8] sm:$0xff]  ;;  %v5468_v59 = vcombine.low %v942_v29, %v946_v30  ;;  %v5596_v43 = vcombine.low %v1070_v31, %v1074_v33  ;;  %v5588_v57 = vcombine.low %v1062_v53, %v1066_v54 }
 0x2cd   :  { %v4123_v51 = vpop.f32.mrf.mxu1  ;;  %4416 = vmatprep.subr.bf16.mxu1 %v5637_v48  ;;  %v5589_v48 = vcombine.high %v1062_v53, %v1066_v54  ;;  %v5717_v11 = vcombine.high %v1190_v41, %v1194_v55  ;;  %v1054_v14 = vld [vmem:[#allocation11 + $0xb98] sm:$0xff] }
 0x2ce   :  { %v1058_v15 = vld [vmem:[#allocation11 + $0xbb8] sm:$0xff] }
 0x2cf   :  { %4376 = vmatpush1.bf16.msra.mxu0 %v5508_v47  ;;  %v1182_v45 = vld [vmem:[#allocation11 + $0xf98] sm:$0xff]  ;;  %v5716_v47 = vcombine.low %v1190_v41, %v1194_v55  ;;  %v5581_v16 = vcombine.high %v1054_v14, %v1058_v15  ;;  %v5580_v49 = vcombine.low %v1054_v14, %v1058_v15  ;;  %v4080_v15 = vadd.f32 %v6387_v56, %v6381_v12  ;;  %v5885_v12 = vld [vmem:[%s6625_s7 + $0xf8] sm:$0xff]  }
 0x2d0   :  { %4417 = vmatpush1.bf16.msra.mxu1 %v5636_v18  ;;  %4377 = vmatprep.subr.bf16.mxu0 %v5501_v10  ;;  %v1186_v46 = vld [vmem:[#allocation11 + $0xfb8] sm:$0xff]  ;;  %v4454_v56 = vmax.f32 %v6367_v5, 0.0 }
 0x2d1   :  { %4418 = vmatprep.subr.bf16.mxu1 %v5629_v42  ;;  %v5709_v18 = vcombine.high %v1182_v45, %v1186_v46  ;;  %v1046_v10 = vld [vmem:[#allocation11 + $0xb58] sm:$0xff]  ;;  %v5708_v58 = vcombine.low %v1182_v45, %v1186_v46 }
 0x2d2   :  { %v1050_v51 = vld [vmem:[#allocation11 + $0xb78] sm:$0xff] }
 0x2d3   :  { %4378 = vmatpush1.bf16.msra.mxu0 %v5500_v62  ;;  %v1174_v42 = vld [vmem:[#allocation11 + $0xf58] sm:$0xff]  ;;  %v5573_v60 = vcombine.high %v1046_v10, %v1050_v51  ;;  %v5572_v8 = vcombine.low %v1046_v10, %v1050_v51  ;;  %v5884_v51 = vld [vmem:[%s6625_s7 + $0x78] sm:$0xff]  }
 0x2d4   :  { %4419 = vmatpush1.bf16.msra.mxu1 %v5628_v63  ;;  %4379 = vmatprep.subr.bf16.mxu0 %v5493_v1  ;;  %v1178_v52 = vld [vmem:[#allocation11 + $0xf78] sm:$0xff] }
 0x2d5   :  { %4420 = vmatprep.subr.bf16.mxu1 %v5621_v61  ;;  %v5701_v62 = vcombine.high %v1174_v42, %v1178_v52  ;;  %v1038_v63 = vld [vmem:[#allocation11 + $0xb18] sm:$0xff]  ;;  %v5700_v20 = vcombine.low %v1174_v42, %v1178_v52  ;;  %v5887_v52 = vld [vmem:[%s6625_s7 + $0xb8] sm:$0xff]  }
 0x2d6   :  { %v1042_v1 = vld [vmem:[#allocation11 + $0xb38] sm:$0xff] }
 0x2d7   :  { %4380 = vmatpush1.bf16.msra.mxu0 %v5492_v23  ;;  %v1166_v61 = vld [vmem:[#allocation11 + $0xf18] sm:$0xff]  ;;  %v5565_v4 = vcombine.high %v1038_v63, %v1042_v1  ;;  %v5564_v9 = vcombine.low %v1038_v63, %v1042_v1 }
 0x2d8   :  { %4421 = vmatpush1.bf16.msra.mxu1 %v5620_v2  ;;  %4381 = vmatprep.subr.bf16.mxu0 %v5485_v21  ;;  %v1170_v19 = vld [vmem:[#allocation11 + $0xf38] sm:$0xff] }
 0x2d9   :  { %4422 = vmatprep.subr.bf16.mxu1 %v5613_v22  ;;  %v5693_v23 = vcombine.high %v1166_v61, %v1170_v19  ;;  %v1030_v2 = vld [vmem:[#allocation11 + $0xad8] sm:$0xff]  ;;  %v5692_v24 = vcombine.low %v1166_v61, %v1170_v19  ;;  %v5892_v19 = vld [vmem:[%s6625_s7 + $0x68] sm:$0xff]  }
 0x2da   :  { %v1034_v21 = vld [vmem:[#allocation11 + $0xaf8] sm:$0xff] }
 0x2db   :  { %4382 = vmatpush1.bf16.msra.mxu0 %v5484_v26  ;;  %v1158_v22 = vld [vmem:[#allocation11 + $0xed8] sm:$0xff]  ;;  %v5557_v25 = vcombine.high %v1030_v2, %v1034_v21  ;;  %v5556_v30 = vcombine.low %v1030_v2, %v1034_v21  ;;  %v5895_v21 = vld [vmem:[%s6625_s7 + $0xa8] sm:$0xff]  }
 0x2dc   :  { %4423 = vmatpush1.bf16.msra.mxu1 %v5612_v0  ;;  %4383 = vmatprep.subr.bf16.mxu0 %v5477_v27  ;;  %v1162_v13 = vld [vmem:[#allocation11 + $0xef8] sm:$0xff] }
 0x2dd   :  { %4424 = vmatprep.subr.bf16.mxu1 %v5605_v28  ;;  %v5685_v26 = vcombine.high %v1158_v22, %v1162_v13  ;;  %v1022_v0 = vld [vmem:[#allocation11 + $0xa98] sm:$0xff]  ;;  %v5684_v31 = vcombine.low %v1158_v22, %v1162_v13  ;;  %v5896_v22 = vld [vmem:[%s6625_s7 + $0x60] sm:$0xff]  }
 0x2de   :  { %v1026_v27 = vld [vmem:[#allocation11 + $0xab8] sm:$0xff] }
 0x2df   :  { %4384 = vmatpush1.bf16.msra.mxu0 %v5476_v34  ;;  %v1150_v28 = vld [vmem:[#allocation11 + $0xe98] sm:$0xff]  ;;  %v5549_v33 = vcombine.high %v1022_v0, %v1026_v27  ;;  %v5548_v54 = vcombine.low %v1022_v0, %v1026_v27  ;;  %v5901_v0 = vld [vmem:[%s6625_s7 + $0xd8] sm:$0xff]  }
 0x2e0   :  { %4425 = vmatpush1.bf16.msra.mxu1 %v5604_v35  ;;  %4385 = vmatprep.subr.bf16.mxu0 %v5469_v37  ;;  %v1154_v29 = vld [vmem:[#allocation11 + $0xeb8] sm:$0xff]  ;;  %v5902_v27 = vld [vmem:[%s6625_s7 + $0x18] sm:$0xff]  }
 0x2e1   :  { %4426 = vmatprep.subr.bf16.mxu1 %v5597_v38  ;;  %v5677_v34 = vcombine.high %v1150_v28, %v1154_v29  ;;  %v1014_v35 = vld [vmem:[#allocation11 + $0xa58] sm:$0xff]  ;;  %v5676_v41 = vcombine.low %v1150_v28, %v1154_v29  ;;  %v5903_v28 = vld [vmem:[%s6625_s7 + $0x98] sm:$0xff]  }
 0x2e2   :  { %v1018_v37 = vld [vmem:[#allocation11 + $0xa78] sm:$0xff] }
 0x2e3   :  { %4386 = vmatpush1.bf16.msra.mxu0 %v5468_v59  ;;  %v1142_v38 = vld [vmem:[#allocation11 + $0xe58] sm:$0xff]  ;;  %v5541_v55 = vcombine.high %v1014_v35, %v1018_v37  ;;  %v5540_v45 = vcombine.low %v1014_v35, %v1018_v37  ;;  %v5909_v35 = vld [vmem:[%s6625_s7 + $0xc8] sm:$0xff]  }
 0x2e4   :  { %4427 = vmatpush1.bf16.msra.mxu1 %v5596_v43  ;;  %4387 = vmatprep.subr.bf16.mxu0 %v5589_v48  ;;  %v1146_v53 = vld [vmem:[#allocation11 + $0xe78] sm:$0xff]  ;;  %v5910_v37 = vld [vmem:[%s6625_s7 + $0x8] sm:$0xff]  }
 0x2e5   :  { %4428 = vmatprep.subr.bf16.mxu1 %v5717_v11  ;;  %v5669_v59 = vcombine.high %v1142_v38, %v1146_v53  ;;  %v1006_v43 = vld [vmem:[#allocation11 + $0xa18] sm:$0xff]  ;;  %v5668_v46 = vcombine.low %v1142_v38, %v1146_v53  ;;  %v5911_v38 = vld [vmem:[%s6625_s7 + $0x88] sm:$0xff]   ;;  %v5912_v53 = vld [vmem:[%s6625_s7 + $0x40] sm:$0xff]  }
 0x2e6   :  { %v1010_v48 = vld [vmem:[#allocation11 + $0xa38] sm:$0xff] }
 0x2e7   :  { %4388 = vmatpush2.bf16.msra.mxu0 %v5588_v57  ;;  %v1134_v11 = vld [vmem:[#allocation11 + $0xe18] sm:$0xff]  ;;  %v5533_v57 = vcombine.high %v1006_v43, %v1010_v48 }
 0x2e8   :  { %4429 = vmatpush2.bf16.msra.mxu1 %v5716_v47  ;;  %4389 = vmatprep.subr.bf16.mxu0 %v5581_v16  ;;  %v1138_v14 = vld [vmem:[#allocation11 + $0xe38] sm:$0xff]  ;;  %v4121_v16 = vadd.f32 %v6392_v3, %v4080_v15  ;;  %v5886_v3 = vld [vmem:[%s6625_s7 + $0x38] sm:$0xff]  }
 0x2e9   :  { %4430 = vmatprep.subr.bf16.mxu1 %v5709_v18  ;;  %v5661_v47 = vcombine.high %v1134_v11, %v1138_v14  ;;  %v5532_v18 = vcombine.low %v1006_v43, %v1010_v48  ;;  %v5660_v10 = vcombine.low %v1134_v11, %v1138_v14  ;;  %v5889_v5 = vld [vmem:[%s6625_s7 + $0xf0] sm:$0xff]   ;;  %v5916_v43 = vld [vmem:[%s6625_s7 + $0x178] sm:$0xff]   ;;  %v4455_v48 = vmax.f32 %v6389_v44, 0.0 }
 0x2ea   :  { %v4456_v42 = vmax.f32 %v4121_v16, 0.0  ;;  %v5890_v1 = vld [vmem:[%s6625_s7 + $0x30] sm:$0xff]   ;;  %v5932_v11 = vld [vmem:[%s6625_s7 + $0x1f8] sm:$0xff]  }
 0x2eb   :  { %4390 = vmatpush2.bf16.msra.mxu0 %v5580_v49  ;;  %v5888_v49 = vld [vmem:[%s6625_s7 + $0x70] sm:$0xff]   ;;  %v5933_v44 = vld [vmem:[%s6625_s7 + $0x1b8] sm:$0xff]  }
 0x2ec   :  { %4431 = vmatpush2.bf16.msra.mxu1 %v5708_v58  ;;  %4391 = vmatprep.subr.bf16.mxu0 %v5573_v60  ;;  %v4462_v58 = vpack.c.bf16 %v4454_v56, %v4454_v56  ;;  %v5904_v29 = vld [vmem:[%s6625_s7 + $0x50] sm:$0xff]   ;;  %v5938_v56 = vld [vmem:[%s6625_s7 + $0x1e0] sm:$0xff]  }
 0x2ed   :  { %4432 = vmatprep.subr.bf16.mxu1 %v5701_v62  ;;  %v4464_v62 = vpack.c.bf16 %v4456_v42, %v4456_v42  ;;  %v5918_v15 = vld [vmem:[%s6625_s7 + $0x170] sm:$0xff]   ;;  %v5923_v42 = vld [vmem:[%s6625_s7 + $0x120] sm:$0xff]  }
 0x2ee   :  { %v5935_v16 = vld [vmem:[%s6625_s7 + $0x1b0] sm:$0xff]  }
 0x2ef   :  { %4392 = vmatpush2.bf16.msra.mxu0 %v5572_v8 }
 0x2f0   :  { %4433 = vmatpush2.bf16.msra.mxu1 %v5700_v20  ;;  %4393 = vmatprep.subr.bf16.mxu0 %v5565_v4 }
 0x2f1   :  { %4434 = vmatprep.subr.bf16.mxu1 %v5693_v23  ;;  %v5894_v23 = vld [vmem:[%s6625_s7 + $0x28] sm:$0xff]  }
 0x2f3   :  { %4394 = vmatpush2.bf16.msra.mxu0 %v5564_v9  ;;  %v5897_v9 = vld [vmem:[%s6625_s7 + $0xe0] sm:$0xff]  }
 0x2f4   :  { %4435 = vmatpush2.bf16.msra.mxu1 %v5692_v24  ;;  %4395 = vmatprep.subr.bf16.mxu0 %v5557_v25  ;;  %v5898_v24 = vld [vmem:[%s6625_s7 + $0x20] sm:$0xff]  }
 0x2f5   :  { %4436 = vmatprep.subr.bf16.mxu1 %v5685_v26  ;;  %v5899_v25 = vld [vmem:[%s6625_s7 + $0xa0] sm:$0xff]   ;;  %v5900_v26 = vld [vmem:[%s6625_s7 + $0x58] sm:$0xff]  }
 0x2f7   :  { %4396 = vmatpush2.bf16.msra.mxu0 %v5556_v30  ;;  %v5905_v30 = vld [vmem:[%s6625_s7 + $0xd0] sm:$0xff]  }
 0x2f8   :  { %4437 = vmatpush2.bf16.msra.mxu1 %v5684_v31  ;;  %4397 = vmatprep.subr.bf16.mxu0 %v5549_v33  ;;  %v5906_v31 = vld [vmem:[%s6625_s7 + $0x10] sm:$0xff]  }
 0x2f9   :  { %4438 = vmatprep.subr.bf16.mxu1 %v5677_v34  ;;  %v5907_v33 = vld [vmem:[%s6625_s7 + $0x90] sm:$0xff]   ;;  %v5908_v34 = vld [vmem:[%s6625_s7 + $0x48] sm:$0xff]  }
 0x2fb   :  { %4398 = vmatpush2.bf16.msra.mxu0 %v5548_v54  ;;  %v5913_v54 = vld [vmem:[%s6625_s7 + $0xc0] sm:$0xff]  }
 0x2fc   :  { %4439 = vmatpush2.bf16.msra.mxu1 %v5676_v41  ;;  %4399 = vmatprep.subr.bf16.mxu0 %v5541_v55  ;;  %v5914_v41 = vld [vmem:[%s6625_s7] sm:$0xff]   ;;  %v4453_v55 = vmax.f32 %v6363_v50, 0.0  ;;  %v5917_v50 = vld [vmem:[%s6625_s7 + $0x138] sm:$0xff]  }
 0x2fd   :  { %4440 = vmatprep.subr.bf16.mxu1 %v5669_v59  ;;  %v5915_v59 = vld [vmem:[%s6625_s7 + $0x80] sm:$0xff]  }
 0x2fe   :  { %v4461_v14 = vpack.c.bf16 %v4453_v55, %v4453_v55 }
 0x2ff   :  { %4400 = vmatpush2.bf16.msra.mxu0 %v5540_v45  ;;  %v4463_v45 = vpack.c.bf16 %v4455_v48, %v4455_v48 }
 0x300   :  { %4441 = vmatpush2.bf16.msra.mxu1 %v5668_v46  ;;  %4401 = vmatprep.subr.bf16.mxu0 %v5533_v57  ;;  %v5934_v46 = vld [vmem:[%s6625_s7 + $0x1f0] sm:$0xff]  }
 0x301   :  { %4442 = vmatprep.subr.bf16.mxu1 %v5661_v47  ;;  %v5919_v57 = vld [vmem:[%s6625_s7 + $0x130] sm:$0xff]   ;;  %v5920_v47 = vld [vmem:[%s6625_s7 + $0x168] sm:$0xff]  }
 0x303   :  { %4402 = vmatpush2.bf16.msra.mxu0 %v5532_v18  ;;  %v5936_v18 = vld [vmem:[%s6625_s7 + $0x1e8] sm:$0xff]  }
 0x304   :  { %4443 = vmatpush2.bf16.msra.mxu1 %v5660_v10  ;;  %5784 = vmatprep.subr.bf16.mxu0 %v5884_v51  ;;  %v5921_v10 = vld [vmem:[%s6625_s7 + $0x128] sm:$0xff]   ;;  %v5922_v51 = vld [vmem:[%s6625_s7 + $0x160] sm:$0xff]  }
 0x305   :  { %5806 = vmatprep.subr.bf16.mxu1 %v5885_v12  ;;  %v5937_v12 = vld [vmem:[%s6625_s7 + $0x1a8] sm:$0xff]  }
 0x306   :  { %v6413_v60 = vpop.f32.mrf.mxu0  ;;  %4404 = vmatmul.mubr.bf16.vlgmr.msra.gmra.mxu0 %v6331_v6  ;;  %v5891_v6 = vld [vmem:[%s6625_s7 + $0xb0] sm:$0xff]  }
 0x307   :  { %v6419_v63 = vpop.f32.mrf.mxu1  ;;  %4445 = vmatmul.mubr.bf16.vlgmr.msra.gmra.mxu1 %v6333_v17  ;;  %5785 = vmatpush3.bf16.msra.mxu0 %v5886_v3  ;;  %v5893_v17 = vld [vmem:[%s6625_s7 + $0xe8] sm:$0xff]   ;;  %v5924_v3 = vld [vmem:[%s6625_s7 + $0x158] sm:$0xff]  }
 0x308   :  { %5020 = vmatprep.mubr.bf16.mxu0 %v4462_v58  ;;  %5807 = vmatpush3.bf16.msra.mxu1 %v5887_v52  ;;  %v6425_v61 = vpop.f32.mrf.mxu0  ;;  %v5939_v52 = vld [vmem:[%s6625_s7 + $0x1a0] sm:$0xff]   ;;  %v5925_v58 = vld [vmem:[%s6625_s7 + $0x118] sm:$0xff]  }
 0x309   :  { %5060 = vmatprep.mubr.bf16.mxu1 %v4464_v62  ;;  %v6433_v8 = vpop.f32.mrf.mxu1  ;;  %5786 = vmatprep.subr.bf16.mxu0 %v5888_v49  ;;  %v5940_v49 = vld [vmem:[%s6625_s7 + $0x1d8] sm:$0xff]  }
 0x30a   :  { %v4163_v20 = vpop.f32.mrf.mxu0  ;;  %5808 = vmatprep.subr.bf16.mxu1 %v5889_v5  ;;  %v5926_v5 = vld [vmem:[%s6625_s7 + $0x150] sm:$0xff]   ;;  %v5941_v62 = vld [vmem:[%s6625_s7 + $0x198] sm:$0xff]  }
 0x30b   :  { %v4204_v4 = vpop.f32.mrf.mxu1  ;;  %5787 = vmatpush3.bf16.msra.mxu0 %v5890_v1  ;;  %v5927_v1 = vld [vmem:[%s6625_s7 + $0x110] sm:$0xff]   ;;  %v5952_v20 = vld [vmem:[#allocation13] sm:$0xff] }
 0x30c   :  { %5809 = vmatpush3.bf16.msra.mxu1 %v5891_v6  ;;  %v4164_v2 = vpop.f32.mrf.mxu0  ;;  %5788 = vmatprep.subr.bf16.mxu0 %v5892_v19  ;;  %v5928_v6 = vld [vmem:[%s6625_s7 + $0x148] sm:$0xff]   ;;  %v1216_v4 = vrot.slane %v5952_v20, %v637_v32  ;;  %v5942_v32 = vld [vmem:[%s6625_s7 + $0x1d0] sm:$0xff]  }
 0x30d   :  { %v4205_v13 = vpop.f32.mrf.mxu1  ;;  %5810 = vmatprep.subr.bf16.mxu1 %v5893_v17  ;;  %v5929_v19 = vld [vmem:[%s6625_s7 + $0x108] sm:$0xff]   ;;  %v5930_v17 = vld [vmem:[%s6625_s7 + $0x140] sm:$0xff]  }
 0x30e   :  { %v5931_v2 = vld [vmem:[%s6625_s7 + $0x100] sm:$0xff]  }
 0x30f   :  { %5789 = vmatpush3.bf16.msra.mxu0 %v5894_v23  ;;  %v1220_v23 = vrot.slane %v5952_v20, %v641_v39 }
 0x310   :  { %5811 = vmatpush3.bf16.msra.mxu1 %v5895_v21  ;;  %5790 = vmatprep.subr.bf16.mxu0 %v5896_v22  ;;  %v4160_v21 = vadd.f32 %v6413_v60, %v1216_v4 }
 0x311   :  { %5812 = vmatprep.subr.bf16.mxu1 %v5897_v9  ;;  %v4162_v22 = vadd.f32 %v6425_v61, %v1220_v23 }
 0x312   :  { %v4201_v13 = vadd.f32 %v6419_v63, %v4160_v21 }
 0x313   :  { %5791 = vmatpush3.bf16.msra.mxu0 %v5898_v24  ;;  %v4203_v39 = vadd.f32 %v6433_v8, %v4162_v22  ;;  %v5945_v8 = vld [vmem:[%s6625_s7 + $0x188] sm:$0xff]  }
 0x314   :  { %5813 = vmatpush3.bf16.msra.mxu1 %v5899_v25  ;;  %5792 = vmatprep.subr.bf16.mxu0 %v5900_v26  ;;  %v5943_v26 = vld [vmem:[%s6625_s7 + $0x190] sm:$0xff]  }
 0x315   :  { %5814 = vmatprep.subr.bf16.mxu1 %v5901_v0 }
 0x317   :  { %5793 = vmatpush3.bf16.msra.mxu0 %v5902_v27 }
 0x318   :  { %5815 = vmatpush3.bf16.msra.mxu1 %v5903_v28  ;;  %5794 = vmatprep.subr.bf16.mxu0 %v5904_v29  ;;  %v5944_v28 = vld [vmem:[%s6625_s7 + $0x1c8] sm:$0xff]  }
 0x319   :  { %5816 = vmatprep.subr.bf16.mxu1 %v5905_v30 }
 0x31b   :  { %5795 = vmatpush3.bf16.msra.mxu0 %v5906_v31 }
 0x31c   :  { %5817 = vmatpush3.bf16.msra.mxu1 %v5907_v33  ;;  %5796 = vmatprep.subr.bf16.mxu0 %v5908_v34 }
 0x31d   :  { %5818 = vmatprep.subr.bf16.mxu1 %v5909_v35 }
 0x31f   :  { %5797 = vmatpush3.bf16.msra.mxu0 %v5910_v37  ;;  %v5946_v37 = vld [vmem:[%s6625_s7 + $0x1c0] sm:$0xff]  }
 0x320   :  { %5819 = vmatpush3.bf16.msra.mxu1 %v5911_v38  ;;  %5798 = vmatprep.subr.bf16.mxu0 %v5912_v53  ;;  %v5947_v53 = vld [vmem:[%s6625_s7 + $0x180] sm:$0xff]   ;;  %s6156_s7 = smov [#allocation16]  }
 0x321   :  { %5820 = vmatprep.subr.bf16.mxu1 %v5913_v54  ;;  %s5161_s11 = sshll.u32 %s6156_s7, 4  ;;  %s5162_s11 = int_to_ptr.vmem [resolvable:$true] %s5161_s11 }
 0x322   :  { %s6113_s12 = scalar_lea.vmem %s5162_s11, 128  ;;  %p6118_p13 = scmp.lt.s32.totalorder %s5162_s11, %s5162_s11 }
 0x323   :  { %5799 = vmatpush3.bf16.msra.mxu0 %v5914_v41  ;;  %p6114_p12 = scmp.ne.s32.totalorder %s5162_s11, %s6113_s12  ;;  %p6119_p0 = scmp.lt.s32.totalorder %s6113_s12, %s6113_s12 }
 0x324   :  { %5821 = vmatpush3.bf16.msra.mxu1 %v5915_v59  ;;  %5828 = vmatprep.subr.bf16.mxu0 %v5916_v43 }
 0x325   :  { %5850 = vmatprep.subr.bf16.mxu1 %v5932_v11  ;;  %p6120_p1 = por %p6119_p0, %p6118_p13 }
 0x326   :  { %5021 = vmatmul.mubr.bf16.vlgmr.msra.gmra.mxu0 %v4461_v14 }
 0x327   :  { %5061 = vmatmul.mubr.bf16.vlgmr.msra.gmra.mxu1 %v4463_v45  ;;  %5829 = vmatpush3.bf16.msra.mxu0 %v5917_v50  ;;  %p6121_p2 = pnand %p6120_p1, %p6114_p12 }
 0x328   :  { %5830 = vmatprep.subr.bf16.mxu0 %v5918_v15  ;;  %5851 = vmatpush3.bf16.msra.mxu1 %v5933_v44  ;;  %v1224_v15 = vrot.slane %v5952_v20, %v645_v36  ;;  %v1228_v44 = vrot.slane %v5952_v20, %v649_v40 }
 0x329   :  { %5852 = vmatprep.subr.bf16.mxu1 %v5934_v46 }
 0x32b   :  { %5831 = vmatpush3.bf16.msra.mxu0 %v5919_v57 }
 0x32c   :  { %5832 = vmatprep.subr.bf16.mxu0 %v5920_v47  ;;  %5853 = vmatpush3.bf16.msra.mxu1 %v5935_v16 }
 0x32d   :  { %5854 = vmatprep.subr.bf16.mxu1 %v5936_v18 }
 0x32f   :  { %5833 = vmatpush3.bf16.msra.mxu0 %v5921_v10 }
 0x330   :  { %5834 = vmatprep.subr.bf16.mxu0 %v5922_v51  ;;  %5855 = vmatpush3.bf16.msra.mxu1 %v5937_v12 }
 0x331   :  { %5856 = vmatprep.subr.bf16.mxu1 %v5938_v56 }
 0x333   :  { %5835 = vmatpush3.bf16.msra.mxu0 %v5923_v42 }
 0x334   :  { %5836 = vmatprep.subr.bf16.mxu0 %v5924_v3  ;;  %5857 = vmatpush3.bf16.msra.mxu1 %v5939_v52 }
 0x335   :  { %5858 = vmatprep.subr.bf16.mxu1 %v5940_v49 }
 0x337   :  { %5837 = vmatpush3.bf16.msra.mxu0 %v5925_v58 }
 0x338   :  { %5838 = vmatprep.subr.bf16.mxu0 %v5926_v5  ;;  %5859 = vmatpush3.bf16.msra.mxu1 %v5941_v62 }
 0x339   :  { %5860 = vmatprep.subr.bf16.mxu1 %v5942_v32 }
 0x33b   :  { %5839 = vmatpush3.bf16.msra.mxu0 %v5927_v1 }
 0x33c   :  { %5840 = vmatprep.subr.bf16.mxu0 %v5928_v6  ;;  %5861 = vmatpush3.bf16.msra.mxu1 %v5943_v26 }
 0x33d   :  { %5862 = vmatprep.subr.bf16.mxu1 %v5944_v28 }
 0x33f   :  { %5841 = vmatpush3.bf16.msra.mxu0 %v5929_v19  ;;  %v5718_v19 = vld [vmem:[#allocation14] ss:$0 sm:$0xff] }
 0x340   :  { %5842 = vmatprep.subr.bf16.mxu0 %v5930_v17  ;;  %5863 = vmatpush3.bf16.msra.mxu1 %v5945_v8 }
 0x341   :  { %5864 = vmatprep.subr.bf16.mxu1 %v5946_v37 }
 0x343   :  { %5843 = vmatpush3.bf16.msra.mxu0 %v5931_v2 }
 0x344   :  { %5865 = vmatpush3.bf16.msra.mxu1 %v5947_v53 }
 0x346   :  { %v4241_v9 = vpop.f32.mrf.mxu0 }
 0x347   :  { %v4242_v24 = vadd.f32 %v4241_v9, %v4201_v13  ;;  %v4282_v25 = vpop.f32.mrf.mxu1 }
 0x348   :  { %v4243_v0 = vpop.f32.mrf.mxu0 }
 0x349   :  { %v4283_v60 = vadd.f32 %v4282_v25, %v4242_v24  ;;  %v4244_v61 = vadd.f32 %v4243_v0, %v4203_v39  ;;  %v4284_v27 = vpop.f32.mrf.mxu1 }
 0x34a   :  { %v4245_v63 = vpop.f32.mrf.mxu0 }
 0x34b   :  { %v4285_v29 = vadd.f32 %v4284_v27, %v4244_v61  ;;  %v4286_v30 = vpop.f32.mrf.mxu1  ;;  %v4457_v31 = vmax.f32 %v4283_v60, 0.0 }
 0x34c   :  { %v4246_v33 = vpop.f32.mrf.mxu0 }
 0x34d   :  { %v4458_v34 = vmax.f32 %v4285_v29, 0.0  ;;  %v4287_v35 = vpop.f32.mrf.mxu1  ;;  %v4465_v54 = vpack.c.bf16 %v4457_v31, %v4457_v31 }
 0x34f   :  { %v4466_v38 = vpack.c.bf16 %v4458_v34, %v4458_v34 }
 0x351   :  { %5100 = vmatprep.mubr.bf16.mxu0 %v4466_v38 }
 0x352   :  { %5101 = vmatmul.mubr.bf16.vlgmr.msra.gmra.mxu0 %v4465_v54 }
 0x386   :  { %v4323_v41 = vpop.f32.mrf.mxu0 }
 0x387   :  { %v4364_v55 = vpop.f32.mrf.mxu1  ;;  %v4324_v45 = vadd.f32 %v4323_v41, %v1224_v15 }
 0x388   :  { %v4325_v59 = vpop.f32.mrf.mxu0 }
 0x389   :  { %v4366_v43 = vpop.f32.mrf.mxu1  ;;  %v4326_v46 = vadd.f32 %v4325_v59, %v1228_v44  ;;  %v4365_v57 = vadd.f32 %v4364_v55, %v4324_v45 }
 0x38a   :  { %v4327_v48 = vpop.f32.mrf.mxu0 }
 0x38b   :  { %v4368_v11 = vpop.f32.mrf.mxu1  ;;  %v4367_v16 = vadd.f32 %v4366_v43, %v4326_v46 }
 0x38c   :  { %v4328_v50 = vpop.f32.mrf.mxu0 }
 0x38d   :  { %v4369_v14 = vpop.f32.mrf.mxu1 }
 0x3c6   :  { %v4405_v47 = vpop.f32.mrf.mxu0 }
 0x3c7   :  { %v4406_v18 = vadd.f32 %v4405_v47, %v4365_v57  ;;  %v4446_v10 = vpop.f32.mrf.mxu1 }
 0x3c8   :  { %v4407_v51 = vpop.f32.mrf.mxu0 }
 0x3c9   :  { %v4447_v12 = vadd.f32 %v4446_v10, %v4406_v18  ;;  %v4408_v56 = vadd.f32 %v4407_v51, %v4367_v16  ;;  %v4448_v42 = vpop.f32.mrf.mxu1 }
 0x3ca   :  { %v4409_v3 = vpop.f32.mrf.mxu0 }
 0x3cb   :  { %v4449_v52 = vadd.f32 %v4448_v42, %v4408_v56  ;;  %v4450_v49 = vpop.f32.mrf.mxu1  ;;  %v4459_v58 = vmax.f32 %v4447_v12, 0.0 }
 0x3cc   :  { %v4410_v5 = vpop.f32.mrf.mxu0 }
 0x3cd   :  { %v4460_v36 = vmax.f32 %v4449_v52, 0.0  ;;  %v4451_v62 = vpop.f32.mrf.mxu1  ;;  %v4467_v40 = vpack.c.bf16 %v4459_v58, %v4459_v58 }
 0x3cf   :  { %v4468_v7 = vpack.c.bf16 %v4460_v36, %v4460_v36 }
 0x3d1   :  { %5140 = vmatprep.mubr.bf16.mxu1 %v4468_v7 }
 0x3d2   :  { %5141 = vmatmul.mubr.bf16.vlgmr.msra.gmra.mxu1 %v4467_v40 }
 0x3e6   :  { %v5800_v1 = vpop.f32.mrf.mxu0 }
 0x3e7   :  { %v5822_v6 = vpop.f32.mrf.mxu1 }
 0x3e8   :  { %v5801_v17 = vpop.f32.mrf.mxu0 }
 0x3e9   :  { %v5802_v20 = vadd.f32 %v5801_v17, %v5800_v1  ;;  %v5823_v4 = vpop.f32.mrf.mxu1 }
 0x3ea   :  { %v5824_v23 = vadd.f32 %v5823_v4, %v5822_v6  ;;  %v5803_v2 = vpop.f32.mrf.mxu0 }
 0x3eb   :  { %v5023_v21 = vadd.f32 %v5802_v20, %v5718_v19  ;;  %v5825_v22 = vpop.f32.mrf.mxu1 }
 0x3ec   :  { %v5804_v13 = vpop.f32.mrf.mxu0 }
 0x3ed   :  { %v5063_v9 = vadd.f32 %v5824_v23, %v5023_v21  ;;  %v5826_v32 = vpop.f32.mrf.mxu1 }
 0x412   :  { %v5844_v39 = vpop.f32.mrf.mxu0 }
 0x414   :  { %v5845_v24 = vpop.f32.mrf.mxu0 }
 0x415   :  { %v5846_v25 = vadd.f32 %v5845_v24, %v5844_v39 }
 0x416   :  { %v5847_v26 = vpop.f32.mrf.mxu0 }
 0x417   :  { %v5103_v0 = vadd.f32 %v5846_v25, %v5063_v9 }
 0x418   :  { %v5848_v60 = vpop.f32.mrf.mxu0 }
 0x492   :  { %v5866_v61 = vpop.f32.mrf.mxu1 }
 0x494   :  { %v5867_v27 = vpop.f32.mrf.mxu1 }
 0x495   :  { %v5868_v63 = vadd.f32 %v5867_v27, %v5866_v61 }
 0x496   :  { %v5869_v28 = vpop.f32.mrf.mxu1 }
 0x497   :  { %v5143_v29 = vadd.f32 %v5868_v63, %v5103_v0 }
 0x498   :  { %v5870_v30 = vpop.f32.mrf.mxu1 }
 0x499   :  { %v5783_v8 = vmul.f32 -1.442695, %v5143_v29 }
 0x49b   :  { %5948 = vpow2.f32 %v5783_v8 }
 0x4a8   :  { %v5949_v31 = vpop.eup %5948 }
 0x4a9   :  { %v5151_v33 = vadd.f32 1.0, %v5949_v31 }
 0x4ab   :  { %5950 = vrcp.f32 %v5151_v33 }
 0x4b8   :  { %v5951_v34 = vpop.eup %5950 }
 0x4b9   :  { %5154 = vst.msk [vmem:[#allocation16] sm:$0xff] %vm449_vm1, %v5951_v34 }
 0x4ba   :  { %6124 = shalt.err (!%p6121_p2)
}
 0x4bb   :  { %5164 = dma.vmem_to_hbm [thread:$0]  %s5162_s11, 128, %s6627_s9, [#allocation4]  }
 0x4bc   :  { %6143 = dma.done.wait [#allocation4], 128  }
 0x4bd   :  { %6144 = vsyncadd [#allocation4], 4294967168 }
 0x4be   :  { %5168 = vsyncpa [#allocation3], 1 }
 0x4bf   :  { %5169 = vsyncpa [#allocation6], 1 }
 0x4c0   :  { %5170 = vsyncpa [#allocation9], 1 }
 0x4c1   :  { %5171 = vsyncpa [#allocation12], 1 }
 0x4c2   :  { %5172 = vsyncpa [#allocation15], 1 }
 0x4c3   :  { %5173 = vsyncpa [#allocation4], 1 }

</bundles_post_ra>
